<compile_context>
chip_gen: v7x
topology: tpu7x:2x2x1
jax: 0.10.0
libtpu: 0.0.40
codegen_flags: <defaults>
</compile_context>

<pallas_src>
import functools
import numpy as np
import jax
import jax.numpy as jnp
from jax import lax
from jax.experimental import pallas as pl
from jax.experimental.pallas import tpu as pltpu


# ----------------------------------------------------------------------------
# Pallas kernel: hoisted gate projection + fused, unrolled bi-directional GRU
# recurrence + final linear predictor.
#   x_ref   : (S*B, E)  bf16, time-major (row = t*B + b)
#   wih_ref : (E, 6H)   bf16, [W_ih_f | W_ih_b], gate order [r, z, n]
#   whh*_ref: (H, 3H)   bf16
#   bih_ref : (1, 6H)   f32,  [b_ih_f | b_ih_b]
#   bhh*_ref: (1, 3H)   f32
#   wp_ref  : (E, L)    f32 ; bp_ref: (1, L) f32
#   out_ref : (B, L)    f32
# ----------------------------------------------------------------------------
def bigru_predict_kernel(x_ref, wih_ref, whhf_ref, whhb_ref, bih_ref,
                         bhhf_ref, bhhb_ref, wp_ref, bp_ref, out_ref,
                         *, seq, batch):
    hidden = whhf_ref.shape[0]
    h3 = 3 * hidden

    # Hoisted input projection for BOTH directions: one big MXU matmul,
    # b_ih folded in once (off the serial critical path).
    gi_all = jnp.dot(x_ref[...], wih_ref[...],
                     preferred_element_type=jnp.float32) + bih_ref[...]  # (S*B, 6H)

    # Recurrent weights stay bf16; recurrent biases pre-broadcast once.
    whh_f = whhf_ref[...]
    whh_b = whhb_ref[...]
    bhh_f = jnp.broadcast_to(bhhf_ref[...], (batch, h3))
    bhh_b = jnp.broadcast_to(bhhb_ref[...], (batch, h3))

    def gru_step(gi, h, whh, bhh):
        # PyTorch GRU cell; only h @ W_hh remains on the serial path.
        gh = jnp.dot(h.astype(jnp.bfloat16), whh,
                     preferred_element_type=jnp.float32) + bhh
        r = jax.nn.sigmoid(gi[:, :hidden] + gh[:, :hidden])
        z = jax.nn.sigmoid(gi[:, hidden:2 * hidden] + gh[:, hidden:2 * hidden])
        n = jnp.tanh(gi[:, 2 * hidden:] + r * gh[:, 2 * hidden:])
        return (1.0 - z) * n + z * h

    h_f = jnp.zeros((batch, hidden), jnp.float32)
    h_b = jnp.zeros((batch, hidden), jnp.float32)

    # Fused, fully-unrolled time loop (seq static -> all slices static); the
    # two directions are independent so their MXU/EUP work can overlap.
    for t in range(seq):
        tb = seq - 1 - t
        gi_f = gi_all[t * batch:(t + 1) * batch, :h3]
        gi_b = gi_all[tb * batch:(tb + 1) * batch, h3:]
        h_f = gru_step(gi_f, h_f, whh_f, bhh_f)
        h_b = gru_step(gi_b, h_b, whh_b, bhh_b)

    # torch.cat((h[0], h[1]), -1) -> (B, E), then Linear(E, num_label)
    h_cat = jnp.concatenate([h_f, h_b], axis=-1)
    out_ref[...] = (jnp.dot(h_cat, wp_ref[...],
                            preferred_element_type=jnp.float32) + bp_ref[...])


# ----------------------------------------------------------------------------
# Wrapper: embedding gather (plain JAX glue) directly into time-major layout,
# weight concat / bf16 cast, then pallas_call.
# ----------------------------------------------------------------------------
def regular_rnn_forward(token_ids, p):
    batch, seq = token_ids.shape
    emb_dim = p["wemb"].shape[1]
    hidden = p["w_hh_f"].shape[0]
    num_label = p["w_pred"].shape[1]

    # Gather straight into (S*B, E) time-major (row = t*B + b): only the tiny
    # int32 id matrix is transposed, not the embeddings.
    flat_ids = token_ids.T.reshape(-1)
    x2d = jnp.take(p["wemb"], flat_ids, axis=0).astype(jnp.bfloat16)

    # Column-concatenated input weights/biases for both directions.
    w_ih = jnp.concatenate([p["w_ih_f"], p["w_ih_b"]], axis=1).astype(jnp.bfloat16)
    b_ih = jnp.concatenate([p["b_ih_f"], p["b_ih_b"]], axis=1)
    w_hh_f = p["w_hh_f"].astype(jnp.bfloat16)
    w_hh_b = p["w_hh_b"].astype(jnp.bfloat16)

    args = (x2d, w_ih, w_hh_f, w_hh_b, b_ih,
            p["b_hh_f"], p["b_hh_b"], p["w_pred"], p["b_pred"])

    flops = (2 * seq * batch * emb_dim * 6 * hidden        # hoisted input proj
             + 2 * 2 * seq * batch * hidden * 3 * hidden   # two recurrences
             + 2 * batch * emb_dim * num_label)            # predictor
    transcendentals = 2 * seq * batch * 3 * hidden
    bytes_accessed = int(sum(int(np.prod(a.shape)) * a.dtype.itemsize for a in args)
                         + batch * num_label * 4)

    vmem = pl.BlockSpec(memory_space=pltpu.MemorySpace.VMEM)
    kernel = functools.partial(bigru_predict_kernel, seq=seq, batch=batch)
    return pl.pallas_call(
        kernel,
        out_shape=jax.ShapeDtypeStruct((batch, num_label), jnp.float32),
        in_specs=[vmem] * len(args),
        out_specs=vmem,
        cost_estimate=pl.CostEstimate(flops=flops,
                                      transcendentals=transcendentals,
                                      bytes_accessed=bytes_accessed),
    )(*args)


# ----------------------------------------------------------------------------
# Pure-JAX references.
# ----------------------------------------------------------------------------
def _gru_cell(gi, gh, h, hidden):
    r = jax.nn.sigmoid(gi[:, :hidden] + gh[:, :hidden])
    z = jax.nn.sigmoid(gi[:, hidden:2 * hidden] + gh[:, hidden:2 * hidden])
    n = jnp.tanh(gi[:, 2 * hidden:] + r * gh[:, 2 * hidden:])
    return (1.0 - z) * n + z * h


def reference_forward_f32(token_ids, p):
    """Full-f32 reference with PyTorch GRU semantics."""
    emb = jnp.take(p["wemb"], token_ids, axis=0)          # (B, S, E)
    x = jnp.transpose(emb, (1, 0, 2))                     # (S, B, E)
    hidden = p["w_hh_f"].shape[0]
    h0 = jnp.zeros((x.shape[1], hidden), jnp.float32)

    def run_dir(xs, w_ih, w_hh, b_ih, b_hh):
        def step(h, x_t):
            gi = x_t @ w_ih + b_ih
            gh = h @ w_hh + b_hh
            return _gru_cell(gi, gh, h, hidden), None
        h, _ = lax.scan(step, h0, xs)
        return h

    h_f = run_dir(x, p["w_ih_f"], p["w_hh_f"], p["b_ih_f"], p["b_hh_f"])
    h_b = run_dir(x[::-1], p["w_ih_b"], p["w_hh_b"], p["b_ih_b"], p["b_hh_b"])
    h_cat = jnp.concatenate([h_f, h_b], axis=-1)
    return h_cat @ p["w_pred"] + p["b_pred"]


def reference_forward_matched(token_ids, p):
    """Same bf16-weight / f32-accumulation policy as the Pallas kernel."""
    batch, seq = token_ids.shape
    hidden = p["w_hh_f"].shape[0]
    h3 = 3 * hidden
    x2d = jnp.take(p["wemb"], token_ids.T.reshape(-1), axis=0).astype(jnp.bfloat16)
    w_ih = jnp.concatenate([p["w_ih_f"], p["w_ih_b"]], axis=1).astype(jnp.bfloat16)
    b_ih = jnp.concatenate([p["b_ih_f"], p["b_ih_b"]], axis=1)
    gi = jnp.dot(x2d, w_ih, preferred_element_type=jnp.float32) + b_ih
    gi = gi.reshape(seq, batch, 2 * h3)

    def run_dir(gis, w_hh, b_hh):
        w_hh = w_hh.astype(jnp.bfloat16)

        def step(h, gi_t):
            gh = jnp.dot(h.astype(jnp.bfloat16), w_hh,
                         preferred_element_type=jnp.float32) + b_hh
            return _gru_cell(gi_t, gh, h, hidden), None

        h, _ = lax.scan(step, jnp.zeros((batch, hidden), jnp.float32), gis)
        return h

    h_f = run_dir(gi[:, :, :h3], p["w_hh_f"], p["b_hh_f"])
    h_b = run_dir(gi[::-1, :, h3:], p["w_hh_b"], p["b_hh_b"])
    h_cat = jnp.concatenate([h_f, h_b], axis=-1)
    return jnp.dot(h_cat, p["w_pred"],
                   preferred_element_type=jnp.float32) + p["b_pred"]


# ----------------------------------------------------------------------------
# Deterministic parameter init (shapes follow the module's __init__; synthetic).
# ----------------------------------------------------------------------------
def init_params(key, vocab, emb_dim, num_label, bidirectional=True):
    hidden = emb_dim // 2 if bidirectional else emb_dim
    ks = jax.random.split(key, 12)

    def u(k, shape, scale):
        return jax.random.uniform(k, shape, jnp.float32, -scale, scale)

    g = 1.0 / float(np.sqrt(hidden))
    gp = 1.0 / float(np.sqrt(emb_dim))
    return {
        "wemb":   u(ks[0], (vocab, emb_dim), 0.5),
        # forward-direction GRU (pre-transposed: (in, 3*hidden), gates [r,z,n])
        "w_ih_f": u(ks[1], (emb_dim, 3 * hidden), g),
        "w_hh_f": u(ks[2], (hidden, 3 * hidden), g),
        "b_ih_f": u(ks[3], (1, 3 * hidden), g),
        "b_hh_f": u(ks[4], (1, 3 * hidden), g),
        # backward-direction GRU
        "w_ih_b": u(ks[5], (emb_dim, 3 * hidden), g),
        "w_hh_b": u(ks[6], (hidden, 3 * hidden), g),
        "b_ih_b": u(ks[7], (1, 3 * hidden), g),
        "b_hh_b": u(ks[8], (1, 3 * hidden), g),
        # predictor: Linear(emb_dim, num_label)
        "w_pred": u(ks[9], (emb_dim, num_label), gp),
        "b_pred": u(ks[10], (1, num_label), gp),
    }


if __name__ == "__main__":
    # params analog: {'max_feature': 64, 'emb_dim': 256, 'bidirectional': True,
    #                 'num_label': 8, 'dp_rate': 0.0}
    batch, seq = 8, 8
    vocab, emb_dim, num_label = 64, 256, 8

    key = jax.random.PRNGKey(0)
    k_tok, k_par = jax.random.split(key)
    token_ids = jax.random.randint(k_tok, (batch, seq), 0, vocab, dtype=jnp.int32)
    params = init_params(k_par, vocab, emb_dim, num_label, bidirectional=True)

    fwd = jax.jit(regular_rnn_forward)
    out = jax.block_until_ready(fwd(token_ids, params))

    ref_match = jax.block_until_ready(reference_forward_matched(token_ids, params))
    ref_f32 = jax.block_until_ready(reference_forward_f32(token_ids, params))

    assert out.shape == (batch, num_label), out.shape
    # Same-precision reference (bf16 weights, f32 accumulation): tight check.
    assert np.allclose(np.asarray(out), np.asarray(ref_match), atol=2e-3, rtol=2e-3)
    # Full-f32 reference: looser tolerance because of bf16 weight quantization.
    assert np.allclose(np.asarray(out), np.asarray(ref_f32), atol=5e-2, rtol=5e-2)
    print("KERNEL_OK")
</pallas_src>

<mosaic_0001>
module attributes {stable_mosaic.version = 11 : i64} {
  func.func @bigru_predict_kernel(%arg0: memref<64x256xbf16, #tpu.memory_space<vmem>>, %arg1: memref<256x768xbf16, #tpu.memory_space<vmem>>, %arg2: memref<128x384xbf16, #tpu.memory_space<vmem>>, %arg3: memref<128x384xbf16, #tpu.memory_space<vmem>>, %arg4: memref<1x768xf32, #tpu.memory_space<vmem>>, %arg5: memref<1x384xf32, #tpu.memory_space<vmem>>, %arg6: memref<1x384xf32, #tpu.memory_space<vmem>>, %arg7: memref<256x8xf32, #tpu.memory_space<vmem>>, %arg8: memref<1x8xf32, #tpu.memory_space<vmem>>, %arg9: memref<8x8xf32, #tpu.memory_space<vmem>>) attributes {dimension_semantics = [], scalar_prefetch = 0 : i64, scratch_operands = 0 : i64, tpu.core_type = #tpu.core_type<tc>} {
    %c0 = arith.constant 0 : index
    %c0_0 = arith.constant 0 : index
    %0 = vector.load %arg0[%c0, %c0_0] : memref<64x256xbf16, #tpu.memory_space<vmem>>, vector<64x256xbf16>
    %c0_1 = arith.constant 0 : index
    %c0_2 = arith.constant 0 : index
    %1 = vector.load %arg1[%c0_1, %c0_2] : memref<256x768xbf16, #tpu.memory_space<vmem>>, vector<256x768xbf16>
    %cst = arith.constant dense<0.000000e+00> : vector<64x768xf32>
    %2 = tpu.matmul %0, %1, %cst {dimension_numbers = #tpu.dot_dimension_numbers<[1], [0], [0], [1], [0, 0, 1, 1], [], []>} : vector<64x256xbf16>, vector<256x768xbf16>, vector<64x768xf32> -> vector<64x768xf32>
    %c0_3 = arith.constant 0 : index
    %c0_4 = arith.constant 0 : index
    %3 = vector.load %arg4[%c0_3, %c0_4] : memref<1x768xf32, #tpu.memory_space<vmem>>, vector<1x768xf32>
    %4 = vector.broadcast %3 : vector<1x768xf32> to vector<64x768xf32>
    %5 = arith.addf %2, %4 : vector<64x768xf32>
    %c0_5 = arith.constant 0 : index
    %c0_6 = arith.constant 0 : index
    %6 = vector.load %arg2[%c0_5, %c0_6] : memref<128x384xbf16, #tpu.memory_space<vmem>>, vector<128x384xbf16>
    %c0_7 = arith.constant 0 : index
    %c0_8 = arith.constant 0 : index
    %7 = vector.load %arg3[%c0_7, %c0_8] : memref<128x384xbf16, #tpu.memory_space<vmem>>, vector<128x384xbf16>
    %c0_9 = arith.constant 0 : index
    %c0_10 = arith.constant 0 : index
    %8 = vector.load %arg5[%c0_9, %c0_10] : memref<1x384xf32, #tpu.memory_space<vmem>>, vector<1x384xf32>
    %9 = vector.shape_cast %8 : vector<1x384xf32> to vector<1x384xf32>
    %10 = vector.broadcast %9 : vector<1x384xf32> to vector<8x384xf32>
    %c0_11 = arith.constant 0 : index
    %c0_12 = arith.constant 0 : index
    %11 = vector.load %arg6[%c0_11, %c0_12] : memref<1x384xf32, #tpu.memory_space<vmem>>, vector<1x384xf32>
    %12 = vector.shape_cast %11 : vector<1x384xf32> to vector<1x384xf32>
    %13 = vector.broadcast %12 : vector<1x384xf32> to vector<8x384xf32>
    %cst_13 = arith.constant 0.000000e+00 : f32
    %14 = vector.broadcast %cst_13 : f32 to vector<8x128xf32>
    %cst_14 = arith.constant 0.000000e+00 : f32
    %15 = vector.broadcast %cst_14 : f32 to vector<8x128xf32>
    %16 = vector.extract_strided_slice %5 {offsets = [0, 0], sizes = [8, 384], strides = [1, 1]} : vector<64x768xf32> to vector<8x384xf32>
    %17 = vector.extract_strided_slice %5 {offsets = [56, 384], sizes = [8, 384], strides = [1, 1]} : vector<64x768xf32> to vector<8x384xf32>
    %18 = arith.truncf %14 : vector<8x128xf32> to vector<8x128xbf16>
    %cst_15 = arith.constant dense<0.000000e+00> : vector<8x384xf32>
    %19 = tpu.matmul %18, %6, %cst_15 {dimension_numbers = #tpu.dot_dimension_numbers<[1], [0], [0], [1], [0, 0, 1, 1], [], []>} : vector<8x128xbf16>, vector<128x384xbf16>, vector<8x384xf32> -> vector<8x384xf32>
    %20 = arith.addf %19, %10 : vector<8x384xf32>
    %21 = vector.extract_strided_slice %16 {offsets = [0, 0], sizes = [8, 128], strides = [1, 1]} : vector<8x384xf32> to vector<8x128xf32>
    %22 = vector.extract_strided_slice %20 {offsets = [0, 0], sizes = [8, 128], strides = [1, 1]} : vector<8x384xf32> to vector<8x128xf32>
    %23 = arith.addf %21, %22 : vector<8x128xf32>
    %24 = arith.negf %23 : vector<8x128xf32>
    %25 = math.exp %24 : vector<8x128xf32>
    %cst_16 = arith.constant 1.000000e+00 : f32
    %26 = vector.broadcast %cst_16 : f32 to vector<8x128xf32>
    %27 = arith.addf %26, %25 : vector<8x128xf32>
    %28 = arith.divf %26, %27 : vector<8x128xf32>
    %29 = vector.extract_strided_slice %16 {offsets = [0, 128], sizes = [8, 128], strides = [1, 1]} : vector<8x384xf32> to vector<8x128xf32>
    %30 = vector.extract_strided_slice %20 {offsets = [0, 128], sizes = [8, 128], strides = [1, 1]} : vector<8x384xf32> to vector<8x128xf32>
    %31 = arith.addf %29, %30 : vector<8x128xf32>
    %32 = arith.negf %31 : vector<8x128xf32>
    %33 = math.exp %32 : vector<8x128xf32>
    %cst_17 = arith.constant 1.000000e+00 : f32
    %34 = vector.broadcast %cst_17 : f32 to vector<8x128xf32>
    %35 = arith.addf %34, %33 : vector<8x128xf32>
    %36 = arith.divf %34, %35 : vector<8x128xf32>
    %37 = vector.extract_strided_slice %16 {offsets = [0, 256], sizes = [8, 128], strides = [1, 1]} : vector<8x384xf32> to vector<8x128xf32>
    %38 = vector.extract_strided_slice %20 {offsets = [0, 256], sizes = [8, 128], strides = [1, 1]} : vector<8x384xf32> to vector<8x128xf32>
    %39 = arith.mulf %28, %38 : vector<8x128xf32>
    %40 = arith.addf %37, %39 : vector<8x128xf32>
    %41 = math.tanh %40 : vector<8x128xf32>
    %cst_18 = arith.constant 1.000000e+00 : f32
    %42 = vector.broadcast %cst_18 : f32 to vector<8x128xf32>
    %43 = arith.subf %42, %36 : vector<8x128xf32>
    %44 = arith.mulf %43, %41 : vector<8x128xf32>
    %45 = arith.mulf %36, %14 : vector<8x128xf32>
    %46 = arith.addf %44, %45 : vector<8x128xf32>
    %47 = arith.truncf %15 : vector<8x128xf32> to vector<8x128xbf16>
    %cst_19 = arith.constant dense<0.000000e+00> : vector<8x384xf32>
    %48 = tpu.matmul %47, %7, %cst_19 {dimension_numbers = #tpu.dot_dimension_numbers<[1], [0], [0], [1], [0, 0, 1, 1], [], []>} : vector<8x128xbf16>, vector<128x384xbf16>, vector<8x384xf32> -> vector<8x384xf32>
    %49 = arith.addf %48, %13 : vector<8x384xf32>
    %50 = vector.extract_strided_slice %17 {offsets = [0, 0], sizes = [8, 128], strides = [1, 1]} : vector<8x384xf32> to vector<8x128xf32>
    %51 = vector.extract_strided_slice %49 {offsets = [0, 0], sizes = [8, 128], strides = [1, 1]} : vector<8x384xf32> to vector<8x128xf32>
    %52 = arith.addf %50, %51 : vector<8x128xf32>
    %53 = arith.negf %52 : vector<8x128xf32>
    %54 = math.exp %53 : vector<8x128xf32>
    %cst_20 = arith.constant 1.000000e+00 : f32
    %55 = vector.broadcast %cst_20 : f32 to vector<8x128xf32>
    %56 = arith.addf %55, %54 : vector<8x128xf32>
    %57 = arith.divf %55, %56 : vector<8x128xf32>
    %58 = vector.extract_strided_slice %17 {offsets = [0, 128], sizes = [8, 128], strides = [1, 1]} : vector<8x384xf32> to vector<8x128xf32>
    %59 = vector.extract_strided_slice %49 {offsets = [0, 128], sizes = [8, 128], strides = [1, 1]} : vector<8x384xf32> to vector<8x128xf32>
    %60 = arith.addf %58, %59 : vector<8x128xf32>
    %61 = arith.negf %60 : vector<8x128xf32>
    %62 = math.exp %61 : vector<8x128xf32>
    %cst_21 = arith.constant 1.000000e+00 : f32
    %63 = vector.broadcast %cst_21 : f32 to vector<8x128xf32>
    %64 = arith.addf %63, %62 : vector<8x128xf32>
    %65 = arith.divf %63, %64 : vector<8x128xf32>
    %66 = vector.extract_strided_slice %17 {offsets = [0, 256], sizes = [8, 128], strides = [1, 1]} : vector<8x384xf32> to vector<8x128xf32>
    %67 = vector.extract_strided_slice %49 {offsets = [0, 256], sizes = [8, 128], strides = [1, 1]} : vector<8x384xf32> to vector<8x128xf32>
    %68 = arith.mulf %57, %67 : vector<8x128xf32>
    %69 = arith.addf %66, %68 : vector<8x128xf32>
    %70 = math.tanh %69 : vector<8x128xf32>
    %cst_22 = arith.constant 1.000000e+00 : f32
    %71 = vector.broadcast %cst_22 : f32 to vector<8x128xf32>
    %72 = arith.subf %71, %65 : vector<8x128xf32>
    %73 = arith.mulf %72, %70 : vector<8x128xf32>
    %74 = arith.mulf %65, %15 : vector<8x128xf32>
    %75 = arith.addf %73, %74 : vector<8x128xf32>
    %76 = vector.extract_strided_slice %5 {offsets = [8, 0], sizes = [8, 384], strides = [1, 1]} : vector<64x768xf32> to vector<8x384xf32>
    %77 = vector.extract_strided_slice %5 {offsets = [48, 384], sizes = [8, 384], strides = [1, 1]} : vector<64x768xf32> to vector<8x384xf32>
    %78 = arith.truncf %46 : vector<8x128xf32> to vector<8x128xbf16>
    %cst_23 = arith.constant dense<0.000000e+00> : vector<8x384xf32>
    %79 = tpu.matmul %78, %6, %cst_23 {dimension_numbers = #tpu.dot_dimension_numbers<[1], [0], [0], [1], [0, 0, 1, 1], [], []>} : vector<8x128xbf16>, vector<128x384xbf16>, vector<8x384xf32> -> vector<8x384xf32>
    %80 = arith.addf %79, %10 : vector<8x384xf32>
    %81 = vector.extract_strided_slice %76 {offsets = [0, 0], sizes = [8, 128], strides = [1, 1]} : vector<8x384xf32> to vector<8x128xf32>
    %82 = vector.extract_strided_slice %80 {offsets = [0, 0], sizes = [8, 128], strides = [1, 1]} : vector<8x384xf32> to vector<8x128xf32>
    %83 = arith.addf %81, %82 : vector<8x128xf32>
    %84 = arith.negf %83 : vector<8x128xf32>
    %85 = math.exp %84 : vector<8x128xf32>
    %cst_24 = arith.constant 1.000000e+00 : f32
    %86 = vector.broadcast %cst_24 : f32 to vector<8x128xf32>
    %87 = arith.addf %86, %85 : vector<8x128xf32>
    %88 = arith.divf %86, %87 : vector<8x128xf32>
    %89 = vector.extract_strided_slice %76 {offsets = [0, 128], sizes = [8, 128], strides = [1, 1]} : vector<8x384xf32> to vector<8x128xf32>
    %90 = vector.extract_strided_slice %80 {offsets = [0, 128], sizes = [8, 128], strides = [1, 1]} : vector<8x384xf32> to vector<8x128xf32>
    %91 = arith.addf %89, %90 : vector<8x128xf32>
    %92 = arith.negf %91 : vector<8x128xf32>
    %93 = math.exp %92 : vector<8x128xf32>
    %cst_25 = arith.constant 1.000000e+00 : f32
    %94 = vector.broadcast %cst_25 : f32 to vector<8x128xf32>
    %95 = arith.addf %94, %93 : vector<8x128xf32>
    %96 = arith.divf %94, %95 : vector<8x128xf32>
    %97 = vector.extract_strided_slice %76 {offsets = [0, 256], sizes = [8, 128], strides = [1, 1]} : vector<8x384xf32> to vector<8x128xf32>
    %98 = vector.extract_strided_slice %80 {offsets = [0, 256], sizes = [8, 128], strides = [1, 1]} : vector<8x384xf32> to vector<8x128xf32>
    %99 = arith.mulf %88, %98 : vector<8x128xf32>
    %100 = arith.addf %97, %99 : vector<8x128xf32>
    %101 = math.tanh %100 : vector<8x128xf32>
    %cst_26 = arith.constant 1.000000e+00 : f32
    %102 = vector.broadcast %cst_26 : f32 to vector<8x128xf32>
    %103 = arith.subf %102, %96 : vector<8x128xf32>
    %104 = arith.mulf %103, %101 : vector<8x128xf32>
    %105 = arith.mulf %96, %46 : vector<8x128xf32>
    %106 = arith.addf %104, %105 : vector<8x128xf32>
    %107 = arith.truncf %75 : vector<8x128xf32> to vector<8x128xbf16>
    %cst_27 = arith.constant dense<0.000000e+00> : vector<8x384xf32>
    %108 = tpu.matmul %107, %7, %cst_27 {dimension_numbers = #tpu.dot_dimension_numbers<[1], [0], [0], [1], [0, 0, 1, 1], [], []>} : vector<8x128xbf16>, vector<128x384xbf16>, vector<8x384xf32> -> vector<8x384xf32>
    %109 = arith.addf %108, %13 : vector<8x384xf32>
    %110 = vector.extract_strided_slice %77 {offsets = [0, 0], sizes = [8, 128], strides = [1, 1]} : vector<8x384xf32> to vector<8x128xf32>
    %111 = vector.extract_strided_slice %109 {offsets = [0, 0], sizes = [8, 128], strides = [1, 1]} : vector<8x384xf32> to vector<8x128xf32>
    %112 = arith.addf %110, %111 : vector<8x128xf32>
    %113 = arith.negf %112 : vector<8x128xf32>
    %114 = math.exp %113 : vector<8x128xf32>
    %cst_28 = arith.constant 1.000000e+00 : f32
    %115 = vector.broadcast %cst_28 : f32 to vector<8x128xf32>
    %116 = arith.addf %115, %114 : vector<8x128xf32>
    %117 = arith.divf %115, %116 : vector<8x128xf32>
    %118 = vector.extract_strided_slice %77 {offsets = [0, 128], sizes = [8, 128], strides = [1, 1]} : vector<8x384xf32> to vector<8x128xf32>
    %119 = vector.extract_strided_slice %109 {offsets = [0, 128], sizes = [8, 128], strides = [1, 1]} : vector<8x384xf32> to vector<8x128xf32>
    %120 = arith.addf %118, %119 : vector<8x128xf32>
    %121 = arith.negf %120 : vector<8x128xf32>
    %122 = math.exp %121 : vector<8x128xf32>
    %cst_29 = arith.constant 1.000000e+00 : f32
    %123 = vector.broadcast %cst_29 : f32 to vector<8x128xf32>
    %124 = arith.addf %123, %122 : vector<8x128xf32>
    %125 = arith.divf %123, %124 : vector<8x128xf32>
    %126 = vector.extract_strided_slice %77 {offsets = [0, 256], sizes = [8, 128], strides = [1, 1]} : vector<8x384xf32> to vector<8x128xf32>
    %127 = vector.extract_strided_slice %109 {offsets = [0, 256], sizes = [8, 128], strides = [1, 1]} : vector<8x384xf32> to vector<8x128xf32>
    %128 = arith.mulf %117, %127 : vector<8x128xf32>
    %129 = arith.addf %126, %128 : vector<8x128xf32>
    %130 = math.tanh %129 : vector<8x128xf32>
    %cst_30 = arith.constant 1.000000e+00 : f32
    %131 = vector.broadcast %cst_30 : f32 to vector<8x128xf32>
    %132 = arith.subf %131, %125 : vector<8x128xf32>
    %133 = arith.mulf %132, %130 : vector<8x128xf32>
    %134 = arith.mulf %125, %75 : vector<8x128xf32>
    %135 = arith.addf %133, %134 : vector<8x128xf32>
    %136 = vector.extract_strided_slice %5 {offsets = [16, 0], sizes = [8, 384], strides = [1, 1]} : vector<64x768xf32> to vector<8x384xf32>
    %137 = vector.extract_strided_slice %5 {offsets = [40, 384], sizes = [8, 384], strides = [1, 1]} : vector<64x768xf32> to vector<8x384xf32>
    %138 = arith.truncf %106 : vector<8x128xf32> to vector<8x128xbf16>
    %cst_31 = arith.constant dense<0.000000e+00> : vector<8x384xf32>
    %139 = tpu.matmul %138, %6, %cst_31 {dimension_numbers = #tpu.dot_dimension_numbers<[1], [0], [0], [1], [0, 0, 1, 1], [], []>} : vector<8x128xbf16>, vector<128x384xbf16>, vector<8x384xf32> -> vector<8x384xf32>
    %140 = arith.addf %139, %10 : vector<8x384xf32>
    %141 = vector.extract_strided_slice %136 {offsets = [0, 0], sizes = [8, 128], strides = [1, 1]} : vector<8x384xf32> to vector<8x128xf32>
    %142 = vector.extract_strided_slice %140 {offsets = [0, 0], sizes = [8, 128], strides = [1, 1]} : vector<8x384xf32> to vector<8x128xf32>
    %143 = arith.addf %141, %142 : vector<8x128xf32>
    %144 = arith.negf %143 : vector<8x128xf32>
    %145 = math.exp %144 : vector<8x128xf32>
    %cst_32 = arith.constant 1.000000e+00 : f32
    %146 = vector.broadcast %cst_32 : f32 to vector<8x128xf32>
    %147 = arith.addf %146, %145 : vector<8x128xf32>
    %148 = arith.divf %146, %147 : vector<8x128xf32>
    %149 = vector.extract_strided_slice %136 {offsets = [0, 128], sizes = [8, 128], strides = [1, 1]} : vector<8x384xf32> to vector<8x128xf32>
    %150 = vector.extract_strided_slice %140 {offsets = [0, 128], sizes = [8, 128], strides = [1, 1]} : vector<8x384xf32> to vector<8x128xf32>
    %151 = arith.addf %149, %150 : vector<8x128xf32>
    %152 = arith.negf %151 : vector<8x128xf32>
    %153 = math.exp %152 : vector<8x128xf32>
    %cst_33 = arith.constant 1.000000e+00 : f32
    %154 = vector.broadcast %cst_33 : f32 to vector<8x128xf32>
    %155 = arith.addf %154, %153 : vector<8x128xf32>
    %156 = arith.divf %154, %155 : vector<8x128xf32>
    %157 = vector.extract_strided_slice %136 {offsets = [0, 256], sizes = [8, 128], strides = [1, 1]} : vector<8x384xf32> to vector<8x128xf32>
    %158 = vector.extract_strided_slice %140 {offsets = [0, 256], sizes = [8, 128], strides = [1, 1]} : vector<8x384xf32> to vector<8x128xf32>
    %159 = arith.mulf %148, %158 : vector<8x128xf32>
    %160 = arith.addf %157, %159 : vector<8x128xf32>
    %161 = math.tanh %160 : vector<8x128xf32>
    %cst_34 = arith.constant 1.000000e+00 : f32
    %162 = vector.broadcast %cst_34 : f32 to vector<8x128xf32>
    %163 = arith.subf %162, %156 : vector<8x128xf32>
    %164 = arith.mulf %163, %161 : vector<8x128xf32>
    %165 = arith.mulf %156, %106 : vector<8x128xf32>
    %166 = arith.addf %164, %165 : vector<8x128xf32>
    %167 = arith.truncf %135 : vector<8x128xf32> to vector<8x128xbf16>
    %cst_35 = arith.constant dense<0.000000e+00> : vector<8x384xf32>
    %168 = tpu.matmul %167, %7, %cst_35 {dimension_numbers = #tpu.dot_dimension_numbers<[1], [0], [0], [1], [0, 0, 1, 1], [], []>} : vector<8x128xbf16>, vector<128x384xbf16>, vector<8x384xf32> -> vector<8x384xf32>
    %169 = arith.addf %168, %13 : vector<8x384xf32>
    %170 = vector.extract_strided_slice %137 {offsets = [0, 0], sizes = [8, 128], strides = [1, 1]} : vector<8x384xf32> to vector<8x128xf32>
    %171 = vector.extract_strided_slice %169 {offsets = [0, 0], sizes = [8, 128], strides = [1, 1]} : vector<8x384xf32> to vector<8x128xf32>
    %172 = arith.addf %170, %171 : vector<8x128xf32>
    %173 = arith.negf %172 : vector<8x128xf32>
    %174 = math.exp %173 : vector<8x128xf32>
    %cst_36 = arith.constant 1.000000e+00 : f32
    %175 = vector.broadcast %cst_36 : f32 to vector<8x128xf32>
    %176 = arith.addf %175, %174 : vector<8x128xf32>
    %177 = arith.divf %175, %176 : vector<8x128xf32>
    %178 = vector.extract_strided_slice %137 {offsets = [0, 128], sizes = [8, 128], strides = [1, 1]} : vector<8x384xf32> to vector<8x128xf32>
    %179 = vector.extract_strided_slice %169 {offsets = [0, 128], sizes = [8, 128], strides = [1, 1]} : vector<8x384xf32> to vector<8x128xf32>
    %180 = arith.addf %178, %179 : vector<8x128xf32>
    %181 = arith.negf %180 : vector<8x128xf32>
    %182 = math.exp %181 : vector<8x128xf32>
    %cst_37 = arith.constant 1.000000e+00 : f32
    %183 = vector.broadcast %cst_37 : f32 to vector<8x128xf32>
    %184 = arith.addf %183, %182 : vector<8x128xf32>
    %185 = arith.divf %183, %184 : vector<8x128xf32>
    %186 = vector.extract_strided_slice %137 {offsets = [0, 256], sizes = [8, 128], strides = [1, 1]} : vector<8x384xf32> to vector<8x128xf32>
    %187 = vector.extract_strided_slice %169 {offsets = [0, 256], sizes = [8, 128], strides = [1, 1]} : vector<8x384xf32> to vector<8x128xf32>
    %188 = arith.mulf %177, %187 : vector<8x128xf32>
    %189 = arith.addf %186, %188 : vector<8x128xf32>
    %190 = math.tanh %189 : vector<8x128xf32>
    %cst_38 = arith.constant 1.000000e+00 : f32
    %191 = vector.broadcast %cst_38 : f32 to vector<8x128xf32>
    %192 = arith.subf %191, %185 : vector<8x128xf32>
    %193 = arith.mulf %192, %190 : vector<8x128xf32>
    %194 = arith.mulf %185, %135 : vector<8x128xf32>
    %195 = arith.addf %193, %194 : vector<8x128xf32>
    %196 = vector.extract_strided_slice %5 {offsets = [24, 0], sizes = [8, 384], strides = [1, 1]} : vector<64x768xf32> to vector<8x384xf32>
    %197 = vector.extract_strided_slice %5 {offsets = [32, 384], sizes = [8, 384], strides = [1, 1]} : vector<64x768xf32> to vector<8x384xf32>
    %198 = arith.truncf %166 : vector<8x128xf32> to vector<8x128xbf16>
    %cst_39 = arith.constant dense<0.000000e+00> : vector<8x384xf32>
    %199 = tpu.matmul %198, %6, %cst_39 {dimension_numbers = #tpu.dot_dimension_numbers<[1], [0], [0], [1], [0, 0, 1, 1], [], []>} : vector<8x128xbf16>, vector<128x384xbf16>, vector<8x384xf32> -> vector<8x384xf32>
    %200 = arith.addf %199, %10 : vector<8x384xf32>
    %201 = vector.extract_strided_slice %196 {offsets = [0, 0], sizes = [8, 128], strides = [1, 1]} : vector<8x384xf32> to vector<8x128xf32>
    %202 = vector.extract_strided_slice %200 {offsets = [0, 0], sizes = [8, 128], strides = [1, 1]} : vector<8x384xf32> to vector<8x128xf32>
    %203 = arith.addf %201, %202 : vector<8x128xf32>
    %204 = arith.negf %203 : vector<8x128xf32>
    %205 = math.exp %204 : vector<8x128xf32>
    %cst_40 = arith.constant 1.000000e+00 : f32
    %206 = vector.broadcast %cst_40 : f32 to vector<8x128xf32>
    %207 = arith.addf %206, %205 : vector<8x128xf32>
    %208 = arith.divf %206, %207 : vector<8x128xf32>
    %209 = vector.extract_strided_slice %196 {offsets = [0, 128], sizes = [8, 128], strides = [1, 1]} : vector<8x384xf32> to vector<8x128xf32>
    %210 = vector.extract_strided_slice %200 {offsets = [0, 128], sizes = [8, 128], strides = [1, 1]} : vector<8x384xf32> to vector<8x128xf32>
    %211 = arith.addf %209, %210 : vector<8x128xf32>
    %212 = arith.negf %211 : vector<8x128xf32>
    %213 = math.exp %212 : vector<8x128xf32>
    %cst_41 = arith.constant 1.000000e+00 : f32
    %214 = vector.broadcast %cst_41 : f32 to vector<8x128xf32>
    %215 = arith.addf %214, %213 : vector<8x128xf32>
    %216 = arith.divf %214, %215 : vector<8x128xf32>
    %217 = vector.extract_strided_slice %196 {offsets = [0, 256], sizes = [8, 128], strides = [1, 1]} : vector<8x384xf32> to vector<8x128xf32>
    %218 = vector.extract_strided_slice %200 {offsets = [0, 256], sizes = [8, 128], strides = [1, 1]} : vector<8x384xf32> to vector<8x128xf32>
    %219 = arith.mulf %208, %218 : vector<8x128xf32>
    %220 = arith.addf %217, %219 : vector<8x128xf32>
    %221 = math.tanh %220 : vector<8x128xf32>
    %cst_42 = arith.constant 1.000000e+00 : f32
    %222 = vector.broadcast %cst_42 : f32 to vector<8x128xf32>
    %223 = arith.subf %222, %216 : vector<8x128xf32>
    %224 = arith.mulf %223, %221 : vector<8x128xf32>
    %225 = arith.mulf %216, %166 : vector<8x128xf32>
    %226 = arith.addf %224, %225 : vector<8x128xf32>
    %227 = arith.truncf %195 : vector<8x128xf32> to vector<8x128xbf16>
    %cst_43 = arith.constant dense<0.000000e+00> : vector<8x384xf32>
    %228 = tpu.matmul %227, %7, %cst_43 {dimension_numbers = #tpu.dot_dimension_numbers<[1], [0], [0], [1], [0, 0, 1, 1], [], []>} : vector<8x128xbf16>, vector<128x384xbf16>, vector<8x384xf32> -> vector<8x384xf32>
    %229 = arith.addf %228, %13 : vector<8x384xf32>
    %230 = vector.extract_strided_slice %197 {offsets = [0, 0], sizes = [8, 128], strides = [1, 1]} : vector<8x384xf32> to vector<8x128xf32>
    %231 = vector.extract_strided_slice %229 {offsets = [0, 0], sizes = [8, 128], strides = [1, 1]} : vector<8x384xf32> to vector<8x128xf32>
    %232 = arith.addf %230, %231 : vector<8x128xf32>
    %233 = arith.negf %232 : vector<8x128xf32>
    %234 = math.exp %233 : vector<8x128xf32>
    %cst_44 = arith.constant 1.000000e+00 : f32
    %235 = vector.broadcast %cst_44 : f32 to vector<8x128xf32>
    %236 = arith.addf %235, %234 : vector<8x128xf32>
    %237 = arith.divf %235, %236 : vector<8x128xf32>
    %238 = vector.extract_strided_slice %197 {offsets = [0, 128], sizes = [8, 128], strides = [1, 1]} : vector<8x384xf32> to vector<8x128xf32>
    %239 = vector.extract_strided_slice %229 {offsets = [0, 128], sizes = [8, 128], strides = [1, 1]} : vector<8x384xf32> to vector<8x128xf32>
    %240 = arith.addf %238, %239 : vector<8x128xf32>
    %241 = arith.negf %240 : vector<8x128xf32>
    %242 = math.exp %241 : vector<8x128xf32>
    %cst_45 = arith.constant 1.000000e+00 : f32
    %243 = vector.broadcast %cst_45 : f32 to vector<8x128xf32>
    %244 = arith.addf %243, %242 : vector<8x128xf32>
    %245 = arith.divf %243, %244 : vector<8x128xf32>
    %246 = vector.extract_strided_slice %197 {offsets = [0, 256], sizes = [8, 128], strides = [1, 1]} : vector<8x384xf32> to vector<8x128xf32>
    %247 = vector.extract_strided_slice %229 {offsets = [0, 256], sizes = [8, 128], strides = [1, 1]} : vector<8x384xf32> to vector<8x128xf32>
    %248 = arith.mulf %237, %247 : vector<8x128xf32>
    %249 = arith.addf %246, %248 : vector<8x128xf32>
    %250 = math.tanh %249 : vector<8x128xf32>
    %cst_46 = arith.constant 1.000000e+00 : f32
    %251 = vector.broadcast %cst_46 : f32 to vector<8x128xf32>
    %252 = arith.subf %251, %245 : vector<8x128xf32>
    %253 = arith.mulf %252, %250 : vector<8x128xf32>
    %254 = arith.mulf %245, %195 : vector<8x128xf32>
    %255 = arith.addf %253, %254 : vector<8x128xf32>
    %256 = vector.extract_strided_slice %5 {offsets = [32, 0], sizes = [8, 384], strides = [1, 1]} : vector<64x768xf32> to vector<8x384xf32>
    %257 = vector.extract_strided_slice %5 {offsets = [24, 384], sizes = [8, 384], strides = [1, 1]} : vector<64x768xf32> to vector<8x384xf32>
    %258 = arith.truncf %226 : vector<8x128xf32> to vector<8x128xbf16>
    %cst_47 = arith.constant dense<0.000000e+00> : vector<8x384xf32>
    %259 = tpu.matmul %258, %6, %cst_47 {dimension_numbers = #tpu.dot_dimension_numbers<[1], [0], [0], [1], [0, 0, 1, 1], [], []>} : vector<8x128xbf16>, vector<128x384xbf16>, vector<8x384xf32> -> vector<8x384xf32>
    %260 = arith.addf %259, %10 : vector<8x384xf32>
    %261 = vector.extract_strided_slice %256 {offsets = [0, 0], sizes = [8, 128], strides = [1, 1]} : vector<8x384xf32> to vector<8x128xf32>
    %262 = vector.extract_strided_slice %260 {offsets = [0, 0], sizes = [8, 128], strides = [1, 1]} : vector<8x384xf32> to vector<8x128xf32>
    %263 = arith.addf %261, %262 : vector<8x128xf32>
    %264 = arith.negf %263 : vector<8x128xf32>
    %265 = math.exp %264 : vector<8x128xf32>
    %cst_48 = arith.constant 1.000000e+00 : f32
    %266 = vector.broadcast %cst_48 : f32 to vector<8x128xf32>
    %267 = arith.addf %266, %265 : vector<8x128xf32>
    %268 = arith.divf %266, %267 : vector<8x128xf32>
    %269 = vector.extract_strided_slice %256 {offsets = [0, 128], sizes = [8, 128], strides = [1, 1]} : vector<8x384xf32> to vector<8x128xf32>
    %270 = vector.extract_strided_slice %260 {offsets = [0, 128], sizes = [8, 128], strides = [1, 1]} : vector<8x384xf32> to vector<8x128xf32>
    %271 = arith.addf %269, %270 : vector<8x128xf32>
    %272 = arith.negf %271 : vector<8x128xf32>
    %273 = math.exp %272 : vector<8x128xf32>
    %cst_49 = arith.constant 1.000000e+00 : f32
    %274 = vector.broadcast %cst_49 : f32 to vector<8x128xf32>
    %275 = arith.addf %274, %273 : vector<8x128xf32>
    %276 = arith.divf %274, %275 : vector<8x128xf32>
    %277 = vector.extract_strided_slice %256 {offsets = [0, 256], sizes = [8, 128], strides = [1, 1]} : vector<8x384xf32> to vector<8x128xf32>
    %278 = vector.extract_strided_slice %260 {offsets = [0, 256], sizes = [8, 128], strides = [1, 1]} : vector<8x384xf32> to vector<8x128xf32>
    %279 = arith.mulf %268, %278 : vector<8x128xf32>
    %280 = arith.addf %277, %279 : vector<8x128xf32>
    %281 = math.tanh %280 : vector<8x128xf32>
    %cst_50 = arith.constant 1.000000e+00 : f32
    %282 = vector.broadcast %cst_50 : f32 to vector<8x128xf32>
    %283 = arith.subf %282, %276 : vector<8x128xf32>
    %284 = arith.mulf %283, %281 : vector<8x128xf32>
    %285 = arith.mulf %276, %226 : vector<8x128xf32>
    %286 = arith.addf %284, %285 : vector<8x128xf32>
    %287 = arith.truncf %255 : vector<8x128xf32> to vector<8x128xbf16>
    %cst_51 = arith.constant dense<0.000000e+00> : vector<8x384xf32>
    %288 = tpu.matmul %287, %7, %cst_51 {dimension_numbers = #tpu.dot_dimension_numbers<[1], [0], [0], [1], [0, 0, 1, 1], [], []>} : vector<8x128xbf16>, vector<128x384xbf16>, vector<8x384xf32> -> vector<8x384xf32>
    %289 = arith.addf %288, %13 : vector<8x384xf32>
    %290 = vector.extract_strided_slice %257 {offsets = [0, 0], sizes = [8, 128], strides = [1, 1]} : vector<8x384xf32> to vector<8x128xf32>
    %291 = vector.extract_strided_slice %289 {offsets = [0, 0], sizes = [8, 128], strides = [1, 1]} : vector<8x384xf32> to vector<8x128xf32>
    %292 = arith.addf %290, %291 : vector<8x128xf32>
    %293 = arith.negf %292 : vector<8x128xf32>
    %294 = math.exp %293 : vector<8x128xf32>
    %cst_52 = arith.constant 1.000000e+00 : f32
    %295 = vector.broadcast %cst_52 : f32 to vector<8x128xf32>
    %296 = arith.addf %295, %294 : vector<8x128xf32>
    %297 = arith.divf %295, %296 : vector<8x128xf32>
    %298 = vector.extract_strided_slice %257 {offsets = [0, 128], sizes = [8, 128], strides = [1, 1]} : vector<8x384xf32> to vector<8x128xf32>
    %299 = vector.extract_strided_slice %289 {offsets = [0, 128], sizes = [8, 128], strides = [1, 1]} : vector<8x384xf32> to vector<8x128xf32>
    %300 = arith.addf %298, %299 : vector<8x128xf32>
    %301 = arith.negf %300 : vector<8x128xf32>
    %302 = math.exp %301 : vector<8x128xf32>
    %cst_53 = arith.constant 1.000000e+00 : f32
    %303 = vector.broadcast %cst_53 : f32 to vector<8x128xf32>
    %304 = arith.addf %303, %302 : vector<8x128xf32>
    %305 = arith.divf %303, %304 : vector<8x128xf32>
    %306 = vector.extract_strided_slice %257 {offsets = [0, 256], sizes = [8, 128], strides = [1, 1]} : vector<8x384xf32> to vector<8x128xf32>
    %307 = vector.extract_strided_slice %289 {offsets = [0, 256], sizes = [8, 128], strides = [1, 1]} : vector<8x384xf32> to vector<8x128xf32>
    %308 = arith.mulf %297, %307 : vector<8x128xf32>
    %309 = arith.addf %306, %308 : vector<8x128xf32>
    %310 = math.tanh %309 : vector<8x128xf32>
    %cst_54 = arith.constant 1.000000e+00 : f32
    %311 = vector.broadcast %cst_54 : f32 to vector<8x128xf32>
    %312 = arith.subf %311, %305 : vector<8x128xf32>
    %313 = arith.mulf %312, %310 : vector<8x128xf32>
    %314 = arith.mulf %305, %255 : vector<8x128xf32>
    %315 = arith.addf %313, %314 : vector<8x128xf32>
    %316 = vector.extract_strided_slice %5 {offsets = [40, 0], sizes = [8, 384], strides = [1, 1]} : vector<64x768xf32> to vector<8x384xf32>
    %317 = vector.extract_strided_slice %5 {offsets = [16, 384], sizes = [8, 384], strides = [1, 1]} : vector<64x768xf32> to vector<8x384xf32>
    %318 = arith.truncf %286 : vector<8x128xf32> to vector<8x128xbf16>
    %cst_55 = arith.constant dense<0.000000e+00> : vector<8x384xf32>
    %319 = tpu.matmul %318, %6, %cst_55 {dimension_numbers = #tpu.dot_dimension_numbers<[1], [0], [0], [1], [0, 0, 1, 1], [], []>} : vector<8x128xbf16>, vector<128x384xbf16>, vector<8x384xf32> -> vector<8x384xf32>
    %320 = arith.addf %319, %10 : vector<8x384xf32>
    %321 = vector.extract_strided_slice %316 {offsets = [0, 0], sizes = [8, 128], strides = [1, 1]} : vector<8x384xf32> to vector<8x128xf32>
    %322 = vector.extract_strided_slice %320 {offsets = [0, 0], sizes = [8, 128], strides = [1, 1]} : vector<8x384xf32> to vector<8x128xf32>
    %323 = arith.addf %321, %322 : vector<8x128xf32>
    %324 = arith.negf %323 : vector<8x128xf32>
    %325 = math.exp %324 : vector<8x128xf32>
    %cst_56 = arith.constant 1.000000e+00 : f32
    %326 = vector.broadcast %cst_56 : f32 to vector<8x128xf32>
    %327 = arith.addf %326, %325 : vector<8x128xf32>
    %328 = arith.divf %326, %327 : vector<8x128xf32>
    %329 = vector.extract_strided_slice %316 {offsets = [0, 128], sizes = [8, 128], strides = [1, 1]} : vector<8x384xf32> to vector<8x128xf32>
    %330 = vector.extract_strided_slice %320 {offsets = [0, 128], sizes = [8, 128], strides = [1, 1]} : vector<8x384xf32> to vector<8x128xf32>
    %331 = arith.addf %329, %330 : vector<8x128xf32>
    %332 = arith.negf %331 : vector<8x128xf32>
    %333 = math.exp %332 : vector<8x128xf32>
    %cst_57 = arith.constant 1.000000e+00 : f32
    %334 = vector.broadcast %cst_57 : f32 to vector<8x128xf32>
    %335 = arith.addf %334, %333 : vector<8x128xf32>
    %336 = arith.divf %334, %335 : vector<8x128xf32>
    %337 = vector.extract_strided_slice %316 {offsets = [0, 256], sizes = [8, 128], strides = [1, 1]} : vector<8x384xf32> to vector<8x128xf32>
    %338 = vector.extract_strided_slice %320 {offsets = [0, 256], sizes = [8, 128], strides = [1, 1]} : vector<8x384xf32> to vector<8x128xf32>
    %339 = arith.mulf %328, %338 : vector<8x128xf32>
    %340 = arith.addf %337, %339 : vector<8x128xf32>
    %341 = math.tanh %340 : vector<8x128xf32>
    %cst_58 = arith.constant 1.000000e+00 : f32
    %342 = vector.broadcast %cst_58 : f32 to vector<8x128xf32>
    %343 = arith.subf %342, %336 : vector<8x128xf32>
    %344 = arith.mulf %343, %341 : vector<8x128xf32>
    %345 = arith.mulf %336, %286 : vector<8x128xf32>
    %346 = arith.addf %344, %345 : vector<8x128xf32>
    %347 = arith.truncf %315 : vector<8x128xf32> to vector<8x128xbf16>
    %cst_59 = arith.constant dense<0.000000e+00> : vector<8x384xf32>
    %348 = tpu.matmul %347, %7, %cst_59 {dimension_numbers = #tpu.dot_dimension_numbers<[1], [0], [0], [1], [0, 0, 1, 1], [], []>} : vector<8x128xbf16>, vector<128x384xbf16>, vector<8x384xf32> -> vector<8x384xf32>
    %349 = arith.addf %348, %13 : vector<8x384xf32>
    %350 = vector.extract_strided_slice %317 {offsets = [0, 0], sizes = [8, 128], strides = [1, 1]} : vector<8x384xf32> to vector<8x128xf32>
    %351 = vector.extract_strided_slice %349 {offsets = [0, 0], sizes = [8, 128], strides = [1, 1]} : vector<8x384xf32> to vector<8x128xf32>
    %352 = arith.addf %350, %351 : vector<8x128xf32>
    %353 = arith.negf %352 : vector<8x128xf32>
    %354 = math.exp %353 : vector<8x128xf32>
    %cst_60 = arith.constant 1.000000e+00 : f32
    %355 = vector.broadcast %cst_60 : f32 to vector<8x128xf32>
    %356 = arith.addf %355, %354 : vector<8x128xf32>
    %357 = arith.divf %355, %356 : vector<8x128xf32>
    %358 = vector.extract_strided_slice %317 {offsets = [0, 128], sizes = [8, 128], strides = [1, 1]} : vector<8x384xf32> to vector<8x128xf32>
    %359 = vector.extract_strided_slice %349 {offsets = [0, 128], sizes = [8, 128], strides = [1, 1]} : vector<8x384xf32> to vector<8x128xf32>
    %360 = arith.addf %358, %359 : vector<8x128xf32>
    %361 = arith.negf %360 : vector<8x128xf32>
    %362 = math.exp %361 : vector<8x128xf32>
    %cst_61 = arith.constant 1.000000e+00 : f32
    %363 = vector.broadcast %cst_61 : f32 to vector<8x128xf32>
    %364 = arith.addf %363, %362 : vector<8x128xf32>
    %365 = arith.divf %363, %364 : vector<8x128xf32>
    %366 = vector.extract_strided_slice %317 {offsets = [0, 256], sizes = [8, 128], strides = [1, 1]} : vector<8x384xf32> to vector<8x128xf32>
    %367 = vector.extract_strided_slice %349 {offsets = [0, 256], sizes = [8, 128], strides = [1, 1]} : vector<8x384xf32> to vector<8x128xf32>
    %368 = arith.mulf %357, %367 : vector<8x128xf32>
    %369 = arith.addf %366, %368 : vector<8x128xf32>
    %370 = math.tanh %369 : vector<8x128xf32>
    %cst_62 = arith.constant 1.000000e+00 : f32
    %371 = vector.broadcast %cst_62 : f32 to vector<8x128xf32>
    %372 = arith.subf %371, %365 : vector<8x128xf32>
    %373 = arith.mulf %372, %370 : vector<8x128xf32>
    %374 = arith.mulf %365, %315 : vector<8x128xf32>
    %375 = arith.addf %373, %374 : vector<8x128xf32>
    %376 = vector.extract_strided_slice %5 {offsets = [48, 0], sizes = [8, 384], strides = [1, 1]} : vector<64x768xf32> to vector<8x384xf32>
    %377 = vector.extract_strided_slice %5 {offsets = [8, 384], sizes = [8, 384], strides = [1, 1]} : vector<64x768xf32> to vector<8x384xf32>
    %378 = arith.truncf %346 : vector<8x128xf32> to vector<8x128xbf16>
    %cst_63 = arith.constant dense<0.000000e+00> : vector<8x384xf32>
    %379 = tpu.matmul %378, %6, %cst_63 {dimension_numbers = #tpu.dot_dimension_numbers<[1], [0], [0], [1], [0, 0, 1, 1], [], []>} : vector<8x128xbf16>, vector<128x384xbf16>, vector<8x384xf32> -> vector<8x384xf32>
    %380 = arith.addf %379, %10 : vector<8x384xf32>
    %381 = vector.extract_strided_slice %376 {offsets = [0, 0], sizes = [8, 128], strides = [1, 1]} : vector<8x384xf32> to vector<8x128xf32>
    %382 = vector.extract_strided_slice %380 {offsets = [0, 0], sizes = [8, 128], strides = [1, 1]} : vector<8x384xf32> to vector<8x128xf32>
    %383 = arith.addf %381, %382 : vector<8x128xf32>
    %384 = arith.negf %383 : vector<8x128xf32>
    %385 = math.exp %384 : vector<8x128xf32>
    %cst_64 = arith.constant 1.000000e+00 : f32
    %386 = vector.broadcast %cst_64 : f32 to vector<8x128xf32>
    %387 = arith.addf %386, %385 : vector<8x128xf32>
    %388 = arith.divf %386, %387 : vector<8x128xf32>
    %389 = vector.extract_strided_slice %376 {offsets = [0, 128], sizes = [8, 128], strides = [1, 1]} : vector<8x384xf32> to vector<8x128xf32>
    %390 = vector.extract_strided_slice %380 {offsets = [0, 128], sizes = [8, 128], strides = [1, 1]} : vector<8x384xf32> to vector<8x128xf32>
    %391 = arith.addf %389, %390 : vector<8x128xf32>
    %392 = arith.negf %391 : vector<8x128xf32>
    %393 = math.exp %392 : vector<8x128xf32>
    %cst_65 = arith.constant 1.000000e+00 : f32
    %394 = vector.broadcast %cst_65 : f32 to vector<8x128xf32>
    %395 = arith.addf %394, %393 : vector<8x128xf32>
    %396 = arith.divf %394, %395 : vector<8x128xf32>
    %397 = vector.extract_strided_slice %376 {offsets = [0, 256], sizes = [8, 128], strides = [1, 1]} : vector<8x384xf32> to vector<8x128xf32>
    %398 = vector.extract_strided_slice %380 {offsets = [0, 256], sizes = [8, 128], strides = [1, 1]} : vector<8x384xf32> to vector<8x128xf32>
    %399 = arith.mulf %388, %398 : vector<8x128xf32>
    %400 = arith.addf %397, %399 : vector<8x128xf32>
    %401 = math.tanh %400 : vector<8x128xf32>
    %cst_66 = arith.constant 1.000000e+00 : f32
    %402 = vector.broadcast %cst_66 : f32 to vector<8x128xf32>
    %403 = arith.subf %402, %396 : vector<8x128xf32>
    %404 = arith.mulf %403, %401 : vector<8x128xf32>
    %405 = arith.mulf %396, %346 : vector<8x128xf32>
    %406 = arith.addf %404, %405 : vector<8x128xf32>
    %407 = arith.truncf %375 : vector<8x128xf32> to vector<8x128xbf16>
    %cst_67 = arith.constant dense<0.000000e+00> : vector<8x384xf32>
    %408 = tpu.matmul %407, %7, %cst_67 {dimension_numbers = #tpu.dot_dimension_numbers<[1], [0], [0], [1], [0, 0, 1, 1], [], []>} : vector<8x128xbf16>, vector<128x384xbf16>, vector<8x384xf32> -> vector<8x384xf32>
    %409 = arith.addf %408, %13 : vector<8x384xf32>
    %410 = vector.extract_strided_slice %377 {offsets = [0, 0], sizes = [8, 128], strides = [1, 1]} : vector<8x384xf32> to vector<8x128xf32>
    %411 = vector.extract_strided_slice %409 {offsets = [0, 0], sizes = [8, 128], strides = [1, 1]} : vector<8x384xf32> to vector<8x128xf32>
    %412 = arith.addf %410, %411 : vector<8x128xf32>
    %413 = arith.negf %412 : vector<8x128xf32>
    %414 = math.exp %413 : vector<8x128xf32>
    %cst_68 = arith.constant 1.000000e+00 : f32
    %415 = vector.broadcast %cst_68 : f32 to vector<8x128xf32>
    %416 = arith.addf %415, %414 : vector<8x128xf32>
    %417 = arith.divf %415, %416 : vector<8x128xf32>
    %418 = vector.extract_strided_slice %377 {offsets = [0, 128], sizes = [8, 128], strides = [1, 1]} : vector<8x384xf32> to vector<8x128xf32>
    %419 = vector.extract_strided_slice %409 {offsets = [0, 128], sizes = [8, 128], strides = [1, 1]} : vector<8x384xf32> to vector<8x128xf32>
    %420 = arith.addf %418, %419 : vector<8x128xf32>
    %421 = arith.negf %420 : vector<8x128xf32>
    %422 = math.exp %421 : vector<8x128xf32>
    %cst_69 = arith.constant 1.000000e+00 : f32
    %423 = vector.broadcast %cst_69 : f32 to vector<8x128xf32>
    %424 = arith.addf %423, %422 : vector<8x128xf32>
    %425 = arith.divf %423, %424 : vector<8x128xf32>
    %426 = vector.extract_strided_slice %377 {offsets = [0, 256], sizes = [8, 128], strides = [1, 1]} : vector<8x384xf32> to vector<8x128xf32>
    %427 = vector.extract_strided_slice %409 {offsets = [0, 256], sizes = [8, 128], strides = [1, 1]} : vector<8x384xf32> to vector<8x128xf32>
    %428 = arith.mulf %417, %427 : vector<8x128xf32>
    %429 = arith.addf %426, %428 : vector<8x128xf32>
    %430 = math.tanh %429 : vector<8x128xf32>
    %cst_70 = arith.constant 1.000000e+00 : f32
    %431 = vector.broadcast %cst_70 : f32 to vector<8x128xf32>
    %432 = arith.subf %431, %425 : vector<8x128xf32>
    %433 = arith.mulf %432, %430 : vector<8x128xf32>
    %434 = arith.mulf %425, %375 : vector<8x128xf32>
    %435 = arith.addf %433, %434 : vector<8x128xf32>
    %436 = vector.extract_strided_slice %5 {offsets = [56, 0], sizes = [8, 384], strides = [1, 1]} : vector<64x768xf32> to vector<8x384xf32>
    %437 = vector.extract_strided_slice %5 {offsets = [0, 384], sizes = [8, 384], strides = [1, 1]} : vector<64x768xf32> to vector<8x384xf32>
    %438 = arith.truncf %406 : vector<8x128xf32> to vector<8x128xbf16>
    %cst_71 = arith.constant dense<0.000000e+00> : vector<8x384xf32>
    %439 = tpu.matmul %438, %6, %cst_71 {dimension_numbers = #tpu.dot_dimension_numbers<[1], [0], [0], [1], [0, 0, 1, 1], [], []>} : vector<8x128xbf16>, vector<128x384xbf16>, vector<8x384xf32> -> vector<8x384xf32>
    %440 = arith.addf %439, %10 : vector<8x384xf32>
    %441 = vector.extract_strided_slice %436 {offsets = [0, 0], sizes = [8, 128], strides = [1, 1]} : vector<8x384xf32> to vector<8x128xf32>
    %442 = vector.extract_strided_slice %440 {offsets = [0, 0], sizes = [8, 128], strides = [1, 1]} : vector<8x384xf32> to vector<8x128xf32>
    %443 = arith.addf %441, %442 : vector<8x128xf32>
    %444 = arith.negf %443 : vector<8x128xf32>
    %445 = math.exp %444 : vector<8x128xf32>
    %cst_72 = arith.constant 1.000000e+00 : f32
    %446 = vector.broadcast %cst_72 : f32 to vector<8x128xf32>
    %447 = arith.addf %446, %445 : vector<8x128xf32>
    %448 = arith.divf %446, %447 : vector<8x128xf32>
    %449 = vector.extract_strided_slice %436 {offsets = [0, 128], sizes = [8, 128], strides = [1, 1]} : vector<8x384xf32> to vector<8x128xf32>
    %450 = vector.extract_strided_slice %440 {offsets = [0, 128], sizes = [8, 128], strides = [1, 1]} : vector<8x384xf32> to vector<8x128xf32>
    %451 = arith.addf %449, %450 : vector<8x128xf32>
    %452 = arith.negf %451 : vector<8x128xf32>
    %453 = math.exp %452 : vector<8x128xf32>
    %cst_73 = arith.constant 1.000000e+00 : f32
    %454 = vector.broadcast %cst_73 : f32 to vector<8x128xf32>
    %455 = arith.addf %454, %453 : vector<8x128xf32>
    %456 = arith.divf %454, %455 : vector<8x128xf32>
    %457 = vector.extract_strided_slice %436 {offsets = [0, 256], sizes = [8, 128], strides = [1, 1]} : vector<8x384xf32> to vector<8x128xf32>
    %458 = vector.extract_strided_slice %440 {offsets = [0, 256], sizes = [8, 128], strides = [1, 1]} : vector<8x384xf32> to vector<8x128xf32>
    %459 = arith.mulf %448, %458 : vector<8x128xf32>
    %460 = arith.addf %457, %459 : vector<8x128xf32>
    %461 = math.tanh %460 : vector<8x128xf32>
    %cst_74 = arith.constant 1.000000e+00 : f32
    %462 = vector.broadcast %cst_74 : f32 to vector<8x128xf32>
    %463 = arith.subf %462, %456 : vector<8x128xf32>
    %464 = arith.mulf %463, %461 : vector<8x128xf32>
    %465 = arith.mulf %456, %406 : vector<8x128xf32>
    %466 = arith.addf %464, %465 : vector<8x128xf32>
    %467 = arith.truncf %435 : vector<8x128xf32> to vector<8x128xbf16>
    %cst_75 = arith.constant dense<0.000000e+00> : vector<8x384xf32>
    %468 = tpu.matmul %467, %7, %cst_75 {dimension_numbers = #tpu.dot_dimension_numbers<[1], [0], [0], [1], [0, 0, 1, 1], [], []>} : vector<8x128xbf16>, vector<128x384xbf16>, vector<8x384xf32> -> vector<8x384xf32>
    %469 = arith.addf %468, %13 : vector<8x384xf32>
    %470 = vector.extract_strided_slice %437 {offsets = [0, 0], sizes = [8, 128], strides = [1, 1]} : vector<8x384xf32> to vector<8x128xf32>
    %471 = vector.extract_strided_slice %469 {offsets = [0, 0], sizes = [8, 128], strides = [1, 1]} : vector<8x384xf32> to vector<8x128xf32>
    %472 = arith.addf %470, %471 : vector<8x128xf32>
    %473 = arith.negf %472 : vector<8x128xf32>
    %474 = math.exp %473 : vector<8x128xf32>
    %cst_76 = arith.constant 1.000000e+00 : f32
    %475 = vector.broadcast %cst_76 : f32 to vector<8x128xf32>
    %476 = arith.addf %475, %474 : vector<8x128xf32>
    %477 = arith.divf %475, %476 : vector<8x128xf32>
    %478 = vector.extract_strided_slice %437 {offsets = [0, 128], sizes = [8, 128], strides = [1, 1]} : vector<8x384xf32> to vector<8x128xf32>
    %479 = vector.extract_strided_slice %469 {offsets = [0, 128], sizes = [8, 128], strides = [1, 1]} : vector<8x384xf32> to vector<8x128xf32>
    %480 = arith.addf %478, %479 : vector<8x128xf32>
    %481 = arith.negf %480 : vector<8x128xf32>
    %482 = math.exp %481 : vector<8x128xf32>
    %cst_77 = arith.constant 1.000000e+00 : f32
    %483 = vector.broadcast %cst_77 : f32 to vector<8x128xf32>
    %484 = arith.addf %483, %482 : vector<8x128xf32>
    %485 = arith.divf %483, %484 : vector<8x128xf32>
    %486 = vector.extract_strided_slice %437 {offsets = [0, 256], sizes = [8, 128], strides = [1, 1]} : vector<8x384xf32> to vector<8x128xf32>
    %487 = vector.extract_strided_slice %469 {offsets = [0, 256], sizes = [8, 128], strides = [1, 1]} : vector<8x384xf32> to vector<8x128xf32>
    %488 = arith.mulf %477, %487 : vector<8x128xf32>
    %489 = arith.addf %486, %488 : vector<8x128xf32>
    %490 = math.tanh %489 : vector<8x128xf32>
    %cst_78 = arith.constant 1.000000e+00 : f32
    %491 = vector.broadcast %cst_78 : f32 to vector<8x128xf32>
    %492 = arith.subf %491, %485 : vector<8x128xf32>
    %493 = arith.mulf %492, %490 : vector<8x128xf32>
    %494 = arith.mulf %485, %435 : vector<8x128xf32>
    %495 = arith.addf %493, %494 : vector<8x128xf32>
    %496 = tpu.concatenate %466, %495 in 1 : vector<8x128xf32>, vector<8x128xf32> -> vector<8x256xf32>
    %c0_79 = arith.constant 0 : index
    %c0_80 = arith.constant 0 : index
    %497 = vector.load %arg7[%c0_79, %c0_80] : memref<256x8xf32, #tpu.memory_space<vmem>>, vector<256x8xf32>
    %cst_81 = arith.constant dense<0.000000e+00> : vector<8x8xf32>
    %498 = tpu.matmul %496, %497, %cst_81 {dimension_numbers = #tpu.dot_dimension_numbers<[1], [0], [0], [1], [0, 0, 1, 1], [], []>} : vector<8x256xf32>, vector<256x8xf32>, vector<8x8xf32> -> vector<8x8xf32>
    %c0_82 = arith.constant 0 : index
    %c0_83 = arith.constant 0 : index
    %499 = vector.load %arg8[%c0_82, %c0_83] : memref<1x8xf32, #tpu.memory_space<vmem>>, vector<1x8xf32>
    %500 = vector.broadcast %499 : vector<1x8xf32> to vector<8x8xf32>
    %501 = arith.addf %498, %500 : vector<8x8xf32>
    %c0_84 = arith.constant 0 : index
    %c0_85 = arith.constant 0 : index
    %502 = vector.load %arg9[%c0_84, %c0_85] : memref<8x8xf32, #tpu.memory_space<vmem>>, vector<8x8xf32>
    tpu.vector_store %arg9[%c0_84, %c0_85], %501 {strides = array<i32>} : memref<8x8xf32, #tpu.memory_space<vmem>>, vector<8x8xf32>,
    return
  }
}

</mosaic_0001>

<bundles_post_ra>
// kernel: regular_rnn_forward.1
= control target key start
LH: loop header
LB: loop body
LE: loop exit
PB: predicated region body
PF: predicated region fallthrough
CT: control target
= control target key end

     0   :  { %vm4252_vm0 = vmmov 0   ;;  %s6288_s0 = inlined_call_operand.vmem [shape: bf16[64,256], index: 0, kind: input, shape index: {}]   ;;  %s6289_s1 = inlined_call_operand.vmem [shape: bf16[256,768], index: 1, kind: input, shape index: {}]   ;;  %s6290_s2 = inlined_call_operand.vmem [shape: bf16[128,384], index: 2, kind: input, shape index: {}]   ;;  %s6291_s3 = inlined_call_operand.vmem [shape: bf16[128,384], index: 3, kind: input, shape index: {}]   ;;  %s6292_s4 = inlined_call_operand.vmem [shape: f32[1,768], index: 4, kind: input, shape index: {}]   ;;  %s6293_s5 = inlined_call_operand.vmem [shape: f32[1,384], index: 5, kind: input, shape index: {}]   ;;  %s6294_s6 = inlined_call_operand.vmem [shape: f32[1,384], index: 6, kind: input, shape index: {}]   ;;  %s6295_s7 = inlined_call_operand.vmem [shape: f32[256,8], index: 7, kind: input, shape index: {}]   ;;  %s6296_s8 = inlined_call_operand.vmem [shape: f32[1,8], index: 8, kind: input, shape index: {}]   ;;  %s6297_s9 = inlined_call_operand.hbm [shape: f32[8,8], index: 9, kind: output, shape index: {}]  }
   0x1   :  { %v3754_v0 = vld [vmem:[%s6289_s1 + $0x4] ss:$24 sps:$4 sm:$0xff]   ;;  %v3758_v2 = vld [vmem:[%s6289_s1] ss:$24 sps:$4 sm:$0xff]   ;;  %v3760_v4 = vld [vmem:[%s6289_s1 + $0x34] ss:$24 sps:$4 sm:$0xff]  }
   0x2   :  { %v3756_v1 = vld [vmem:[%s6289_s1 + $0xc] ss:$24 sps:$4 sm:$0xff]   ;;  %690 = vmatprep.subr.bf16.mxu0 %v3754_v0  ;;  %v3759_v3 = vld [vmem:[%s6289_s1 + $0x8] ss:$24 sps:$4 sm:$0xff]   ;;  %v3762_v5 = vld [vmem:[%s6289_s1 + $0x3c] ss:$24 sps:$4 sm:$0xff]  }
   0x3   :  { %763 = vmatprep.subr.bf16.mxu1 %v3756_v1  ;;  %691 = vmatpush1.bf16.msra.mxu0 %v3758_v2  ;;  %v3764_v6 = vld [vmem:[%s6289_s1 + $0x30] ss:$24 sps:$4 sm:$0xff]   ;;  %v3766_v8 = vld [vmem:[%s6289_s1 + $0x64] ss:$24 sps:$4 sm:$0xff]   ;;  %v3770_v10 = vld [vmem:[%s6289_s1 + $0x60] ss:$24 sps:$4 sm:$0xff]  }
   0x4   :  { %764 = vmatpush1.bf16.msra.mxu1 %v3759_v3  ;;  %692 = vmatprep.subr.bf16.mxu0 %v3760_v4  ;;  %v3765_v7 = vld [vmem:[%s6289_s1 + $0x38] ss:$24 sps:$4 sm:$0xff]   ;;  %v3768_v9 = vld [vmem:[%s6289_s1 + $0x6c] ss:$24 sps:$4 sm:$0xff]   ;;  %v3771_v11 = vld [vmem:[%s6289_s1 + $0x68] ss:$24 sps:$4 sm:$0xff]  }
   0x5   :  { %765 = vmatprep.subr.bf16.mxu1 %v3762_v5  ;;  %v3772_v12 = vld [vmem:[%s6289_s1 + $0x94] ss:$24 sps:$4 sm:$0xff]   ;;  %v3776_v14 = vld [vmem:[%s6289_s1 + $0x90] ss:$24 sps:$4 sm:$0xff]   ;;  %v3778_v16 = vld [vmem:[%s6289_s1 + $0xc4] ss:$24 sps:$4 sm:$0xff]  }
   0x6   :  { %v3774_v13 = vld [vmem:[%s6289_s1 + $0x9c] ss:$24 sps:$4 sm:$0xff]   ;;  %v3777_v15 = vld [vmem:[%s6289_s1 + $0x98] ss:$24 sps:$4 sm:$0xff]   ;;  %v3780_v17 = vld [vmem:[%s6289_s1 + $0xcc] ss:$24 sps:$4 sm:$0xff]  }
   0x7   :  { %693 = vmatpush1.bf16.msra.mxu0 %v3764_v6  ;;  %v3782_v18 = vld [vmem:[%s6289_s1 + $0xc0] ss:$24 sps:$4 sm:$0xff]   ;;  %v3784_v20 = vld [vmem:[%s6289_s1 + $0xf4] ss:$24 sps:$4 sm:$0xff]   ;;  %v3788_v22 = vld [vmem:[%s6289_s1 + $0xf0] ss:$24 sps:$4 sm:$0xff]  }
   0x8   :  { %766 = vmatpush1.bf16.msra.mxu1 %v3765_v7  ;;  %694 = vmatprep.subr.bf16.mxu0 %v3766_v8  ;;  %v3783_v19 = vld [vmem:[%s6289_s1 + $0xc8] ss:$24 sps:$4 sm:$0xff]   ;;  %v3786_v21 = vld [vmem:[%s6289_s1 + $0xfc] ss:$24 sps:$4 sm:$0xff]   ;;  %v3789_v23 = vld [vmem:[%s6289_s1 + $0xf8] ss:$24 sps:$4 sm:$0xff]  }
   0x9   :  { %767 = vmatprep.subr.bf16.mxu1 %v3768_v9  ;;  %v3790_v24 = vld [vmem:[%s6289_s1 + $0x124] ss:$24 sps:$4 sm:$0xff]   ;;  %v3794_v26 = vld [vmem:[%s6289_s1 + $0x120] ss:$24 sps:$4 sm:$0xff]   ;;  %v3796_v28 = vld [vmem:[%s6289_s1 + $0x154] ss:$24 sps:$4 sm:$0xff]  }
   0xa   :  { %v3792_v25 = vld [vmem:[%s6289_s1 + $0x12c] ss:$24 sps:$4 sm:$0xff]   ;;  %v3795_v27 = vld [vmem:[%s6289_s1 + $0x128] ss:$24 sps:$4 sm:$0xff]   ;;  %v3798_v29 = vld [vmem:[%s6289_s1 + $0x15c] ss:$24 sps:$4 sm:$0xff]  }
   0xb   :  { %695 = vmatpush1.bf16.msra.mxu0 %v3770_v10  ;;  %v3800_v30 = vld [vmem:[%s6289_s1 + $0x150] ss:$24 sps:$4 sm:$0xff]   ;;  %v3802_v32 = vld [vmem:[%s6289_s1 + $0x184] ss:$24 sps:$4 sm:$0xff]   ;;  %v3806_v34 = vld [vmem:[%s6289_s1 + $0x180] ss:$24 sps:$4 sm:$0xff]  }
   0xc   :  { %768 = vmatpush1.bf16.msra.mxu1 %v3771_v11  ;;  %696 = vmatprep.subr.bf16.mxu0 %v3772_v12  ;;  %v3801_v31 = vld [vmem:[%s6289_s1 + $0x158] ss:$24 sps:$4 sm:$0xff]   ;;  %v3804_v33 = vld [vmem:[%s6289_s1 + $0x18c] ss:$24 sps:$4 sm:$0xff]   ;;  %v3807_v35 = vld [vmem:[%s6289_s1 + $0x188] ss:$24 sps:$4 sm:$0xff]  }
   0xd   :  { %769 = vmatprep.subr.bf16.mxu1 %v3774_v13  ;;  %v3808_v36 = vld [vmem:[%s6289_s1 + $0x1b4] ss:$24 sps:$4 sm:$0xff]   ;;  %v3812_v38 = vld [vmem:[%s6289_s1 + $0x1b0] ss:$24 sps:$4 sm:$0xff]   ;;  %v3814_v40 = vld [vmem:[%s6289_s1 + $0x1e4] ss:$24 sps:$4 sm:$0xff]  }
   0xe   :  { %v3810_v37 = vld [vmem:[%s6289_s1 + $0x1bc] ss:$24 sps:$4 sm:$0xff]   ;;  %v3813_v39 = vld [vmem:[%s6289_s1 + $0x1b8] ss:$24 sps:$4 sm:$0xff]   ;;  %v3816_v41 = vld [vmem:[%s6289_s1 + $0x1ec] ss:$24 sps:$4 sm:$0xff]  }
   0xf   :  { %697 = vmatpush1.bf16.msra.mxu0 %v3776_v14  ;;  %v3818_v42 = vld [vmem:[%s6289_s1 + $0x1e0] ss:$24 sps:$4 sm:$0xff]   ;;  %v3820_v44 = vld [vmem:[%s6289_s1 + $0x214] ss:$24 sps:$4 sm:$0xff]   ;;  %v3824_v46 = vld [vmem:[%s6289_s1 + $0x210] ss:$24 sps:$4 sm:$0xff]  }
  0x10   :  { %770 = vmatpush1.bf16.msra.mxu1 %v3777_v15  ;;  %698 = vmatprep.subr.bf16.mxu0 %v3778_v16  ;;  %v3819_v43 = vld [vmem:[%s6289_s1 + $0x1e8] ss:$24 sps:$4 sm:$0xff]   ;;  %v3822_v45 = vld [vmem:[%s6289_s1 + $0x21c] ss:$24 sps:$4 sm:$0xff]   ;;  %v3825_v47 = vld [vmem:[%s6289_s1 + $0x218] ss:$24 sps:$4 sm:$0xff]  }
  0x11   :  { %771 = vmatprep.subr.bf16.mxu1 %v3780_v17  ;;  %v4451_v48 = vld [vmem:[%s6288_s0 + $0x4] ss:$8 sps:$4 sm:$0xff]   ;;  %v3830_v51 = vld [vmem:[%s6289_s1 + $0x240] ss:$24 sps:$4 sm:$0xff]   ;;  %v3834_v54 = vld [vmem:[%s6289_s1 + $0x27c] ss:$24 sps:$4 sm:$0xff]  }
  0x12   :  { %v3826_v49 = vld [vmem:[%s6289_s1 + $0x244] ss:$24 sps:$4 sm:$0xff]   ;;  %722 = vmatprep.mubr.bf16.mxu0 %v4451_v48  ;;  %795 = vmatprep.mubr.bf16.mxu1 %v4451_v48  ;;  %v3831_v52 = vld [vmem:[%s6289_s1 + $0x248] ss:$24 sps:$4 sm:$0xff]   ;;  %v3832_v53 = vld [vmem:[%s6289_s1 + $0x274] ss:$24 sps:$4 sm:$0xff]  }
  0x13   :  { %699 = vmatpush1.bf16.msra.mxu0 %v3782_v18  ;;  %v3828_v50 = vld [vmem:[%s6289_s1 + $0x24c] ss:$24 sps:$4 sm:$0xff]   ;;  %v3836_v55 = vld [vmem:[%s6289_s1 + $0x270] ss:$24 sps:$4 sm:$0xff]   ;;  %v3842_v59 = vld [vmem:[%s6289_s1 + $0x2a0] ss:$24 sps:$4 sm:$0xff]  }
  0x14   :  { %772 = vmatpush1.bf16.msra.mxu1 %v3783_v19  ;;  %700 = vmatprep.subr.bf16.mxu0 %v3784_v20  ;;  %v3837_v56 = vld [vmem:[%s6289_s1 + $0x278] ss:$24 sps:$4 sm:$0xff]   ;;  %v3838_v57 = vld [vmem:[%s6289_s1 + $0x2a4] ss:$24 sps:$4 sm:$0xff]   ;;  %v3843_v60 = vld [vmem:[%s6289_s1 + $0x2a8] ss:$24 sps:$4 sm:$0xff]  }
  0x15   :  { %773 = vmatprep.subr.bf16.mxu1 %v3786_v21  ;;  %v3840_v58 = vld [vmem:[%s6289_s1 + $0x2ac] ss:$24 sps:$4 sm:$0xff]   ;;  %v3846_v62 = vld [vmem:[%s6289_s1 + $0x2dc] ss:$24 sps:$4 sm:$0xff]   ;;  %v3848_v63 = vld [vmem:[%s6289_s1 + $0x2d0] ss:$24 sps:$4 sm:$0xff]  }
  0x16   :  { %v3844_v61 = vld [vmem:[%s6289_s1 + $0x2d4] ss:$24 sps:$4 sm:$0xff]   ;;  %v3849_v0 = vld [vmem:[%s6289_s1 + $0x2d8] ss:$24 sps:$4 sm:$0xff]   ;;  %v4514_v3 = vld [vmem:[%s6288_s0] ss:$8 sps:$4 sm:$0xff]  }
  0x17   :  { %701 = vmatpush1.bf16.msra.mxu0 %v3788_v22  ;;  %v3855_v1 = vld [vmem:[%s6289_s1 + $0x14] ss:$24 sps:$4 sm:$0xff]   ;;  %v4509_v2 = vld [vmem:[%s6290_s2 + $0x4] ss:$12 sps:$4 sm:$0xff]   ;;  %v4531_v7 = vld [vmem:[%s6290_s2 + $0x1c] ss:$12 sps:$4 sm:$0xff]  }
  0x18   :  { %774 = vmatpush1.bf16.msra.mxu1 %v3789_v23  ;;  %702 = vmatprep.subr.bf16.mxu0 %v3790_v24  ;;  %v3853_v4 = vld [vmem:[%s6289_s1 + $0x10] ss:$24 sps:$4 sm:$0xff]   ;;  %v4522_v5 = vld [vmem:[%s6290_s2] ss:$12 sps:$4 sm:$0xff]   ;;  %v3861_v6 = vld [vmem:[%s6289_s1 + $0x44] ss:$24 sps:$4 sm:$0xff]  }
  0x19   :  { %775 = vmatprep.subr.bf16.mxu1 %v3792_v25  ;;  %v4536_v8 = vld [vmem:[%s6288_s0 + $0x14] ss:$8 sps:$4 sm:$0xff]   ;;  %v3859_v9 = vld [vmem:[%s6289_s1 + $0x40] ss:$24 sps:$4 sm:$0xff]   ;;  %v3868_v14 = vld [vmem:[%s6289_s1 + $0x70] ss:$24 sps:$4 sm:$0xff]  }
  0x1a   :  { %v4546_v10 = vld [vmem:[%s6290_s2 + $0x18] ss:$12 sps:$4 sm:$0xff]   ;;  %v3870_v11 = vld [vmem:[%s6289_s1 + $0x74] ss:$24 sps:$4 sm:$0xff]   ;;  %v4572_v15 = vld [vmem:[%s6290_s2 + $0x30] ss:$12 sps:$4 sm:$0xff]  }
  0x1b   :  { %703 = vmatpush1.bf16.msra.mxu0 %v3794_v26  ;;  %v4556_v12 = vld [vmem:[%s6290_s2 + $0x34] ss:$12 sps:$4 sm:$0xff]   ;;  %v4562_v13 = vld [vmem:[%s6288_s0 + $0x10] ss:$8 sps:$4 sm:$0xff]   ;;  %v3876_v16 = vld [vmem:[%s6289_s1 + $0xa4] ss:$24 sps:$4 sm:$0xff]  }
  0x1c   :  { %776 = vmatpush1.bf16.msra.mxu1 %v3795_v27  ;;  %704 = vmatprep.subr.bf16.mxu0 %v3796_v28  ;;  %v4581_v17 = vld [vmem:[%s6290_s2 + $0x4c] ss:$12 sps:$4 sm:$0xff]   ;;  %v4597_v20 = vld [vmem:[%s6290_s2 + $0x48] ss:$12 sps:$4 sm:$0xff]   ;;  %v4606_v22 = vld [vmem:[%s6290_s2 + $0x64] ss:$12 sps:$4 sm:$0xff]  }
  0x1d   :  { %777 = vmatprep.subr.bf16.mxu1 %v3798_v29  ;;  %v4586_v18 = vld [vmem:[%s6288_s0 + $0x24] ss:$8 sps:$4 sm:$0xff]   ;;  %v3874_v19 = vld [vmem:[%s6289_s1 + $0xa0] ss:$24 sps:$4 sm:$0xff]   ;;  %v3883_v24 = vld [vmem:[%s6289_s1 + $0xd0] ss:$24 sps:$4 sm:$0xff]  }
  0x1e   :  { %v3885_v21 = vld [vmem:[%s6289_s1 + $0xd4] ss:$24 sps:$4 sm:$0xff]   ;;  %v4612_v23 = vld [vmem:[%s6288_s0 + $0x20] ss:$8 sps:$4 sm:$0xff]   ;;  %v3891_v26 = vld [vmem:[%s6289_s1 + $0x104] ss:$24 sps:$4 sm:$0xff]  }
  0x1f   :  { %705 = vmatpush1.bf16.msra.mxu0 %v3800_v30  ;;  %v4621_v25 = vld [vmem:[%s6290_s2 + $0x60] ss:$12 sps:$4 sm:$0xff]   ;;  %v4631_v27 = vld [vmem:[%s6290_s2 + $0x7c] ss:$12 sps:$4 sm:$0xff]   ;;  %v4647_v30 = vld [vmem:[%s6290_s2 + $0x78] ss:$12 sps:$4 sm:$0xff]  }
  0x20   :  { %778 = vmatpush1.bf16.msra.mxu1 %v3801_v31  ;;  %706 = vmatprep.subr.bf16.mxu0 %v3802_v32  ;;  %v4636_v28 = vld [vmem:[%s6288_s0 + $0x34] ss:$8 sps:$4 sm:$0xff]   ;;  %v3889_v29 = vld [vmem:[%s6289_s1 + $0x100] ss:$24 sps:$4 sm:$0xff]  }
  0x21   :  { %779 = vmatprep.subr.bf16.mxu1 %v3804_v33  ;;  %v3900_v31 = vld [vmem:[%s6289_s1 + $0x134] ss:$24 sps:$4 sm:$0xff]   ;;  %v4662_v33 = vld [vmem:[%s6288_s0 + $0x30] ss:$8 sps:$4 sm:$0xff]  }
  0x22   :  { %v4656_v32 = vld [vmem:[%s6290_s2 + $0x94] ss:$12 sps:$4 sm:$0xff]  }
  0x23   :  { %707 = vmatpush1.bf16.msra.mxu0 %v3806_v34  ;;  %6338 = vst [vmem:[#allocation5_spill] sm:$0xff] %v4656_v32  ;;  %v3898_v34 = vld [vmem:[%s6289_s1 + $0x130] ss:$24 sps:$4 sm:$0xff]  }
  0x24   :  { %780 = vmatpush1.bf16.msra.mxu1 %v3807_v35  ;;  %708 = vmatprep.subr.bf16.mxu0 %v3808_v36  ;;  %v4671_v35 = vld [vmem:[%s6290_s2 + $0x90] ss:$12 sps:$4 sm:$0xff]  }
  0x25   :  { %781 = vmatprep.subr.bf16.mxu1 %v3810_v37  ;;  %6339 = vst [vmem:[#allocation6_spill] sm:$0xff] %v4671_v35  ;;  %v3906_v36 = vld [vmem:[%s6289_s1 + $0x164] ss:$24 sps:$4 sm:$0xff]   ;;  %v4681_v37 = vld [vmem:[%s6290_s2 + $0xac] ss:$12 sps:$4 sm:$0xff]  }
  0x26   :  { %6340 = vst [vmem:[#allocation7_spill] sm:$0xff] %v4681_v37 }
  0x27   :  { %709 = vmatpush1.bf16.msra.mxu0 %v3812_v38  ;;  %v3904_v38 = vld [vmem:[%s6289_s1 + $0x160] ss:$24 sps:$4 sm:$0xff]  }
  0x28   :  { %782 = vmatpush1.bf16.msra.mxu1 %v3813_v39  ;;  %710 = vmatprep.subr.bf16.mxu0 %v3814_v40  ;;  %v4692_v39 = vld [vmem:[%s6290_s2 + $0xa8] ss:$12 sps:$4 sm:$0xff]  }
  0x29   :  { %783 = vmatprep.subr.bf16.mxu1 %v3816_v41  ;;  %6341 = vst [vmem:[#allocation8_spill] sm:$0xff] %v4692_v39  ;;  %v3912_v40 = vld [vmem:[%s6289_s1 + $0x194] ss:$24 sps:$4 sm:$0xff]   ;;  %v6298_v41 = vmov 0  }
  0x2b   :  { %711 = vmatpush1.bf16.msra.mxu0 %v3818_v42  ;;  %v3910_v42 = vld [vmem:[%s6289_s1 + $0x190] ss:$24 sps:$4 sm:$0xff]  }
  0x2c   :  { %784 = vmatpush1.bf16.msra.mxu1 %v3819_v43  ;;  %712 = vmatprep.subr.bf16.mxu0 %v3820_v44  ;;  %v4707_v43 = vld [vmem:[%s6290_s2 + $0x8] ss:$12 sps:$4 sm:$0xff]   ;;  %v6300_v44 = vmov 0.0  }
  0x2d   :  { %785 = vmatprep.subr.bf16.mxu1 %v3822_v45  ;;  %v3916_v45 = vld [vmem:[%s6289_s1 + $0x1c4] ss:$24 sps:$4 sm:$0xff]  }
  0x2f   :  { %713 = vmatpush1.bf16.msra.mxu0 %v3824_v46  ;;  %v3914_v46 = vld [vmem:[%s6289_s1 + $0x1c0] ss:$24 sps:$4 sm:$0xff]  }
  0x30   :  { %786 = vmatpush1.bf16.msra.mxu1 %v3825_v47  ;;  %714 = vmatprep.subr.bf16.mxu0 %v3826_v49  ;;  %v4721_v47 = vld [vmem:[%s6290_s2 + $0x20] ss:$12 sps:$4 sm:$0xff]   ;;  %v3918_v49 = vld [vmem:[%s6289_s1 + $0x1f0] ss:$24 sps:$4 sm:$0xff]  }
  0x31   :  { %787 = vmatprep.subr.bf16.mxu1 %v3828_v50  ;;  %v4736_v50 = vld [vmem:[%s6290_s2 + $0x38] ss:$12 sps:$4 sm:$0xff]  }
  0x33   :  { %715 = vmatpush1.bf16.msra.mxu0 %v3830_v51  ;;  %v3924_v51 = vld [vmem:[%s6289_s1 + $0x224] ss:$24 sps:$4 sm:$0xff]  }
  0x34   :  { %788 = vmatpush1.bf16.msra.mxu1 %v3831_v52  ;;  %716 = vmatprep.subr.bf16.mxu0 %v3832_v53 }
  0x35   :  { %789 = vmatprep.subr.bf16.mxu1 %v3834_v54 }
  0x37   :  { %717 = vmatpush1.bf16.msra.mxu0 %v3836_v55 }
  0x38   :  { %790 = vmatpush1.bf16.msra.mxu1 %v3837_v56  ;;  %718 = vmatprep.subr.bf16.mxu0 %v3838_v57 }
  0x39   :  { %791 = vmatprep.subr.bf16.mxu1 %v3840_v58 }
  0x3b   :  { %719 = vmatpush1.bf16.msra.mxu0 %v3842_v59 }
  0x3c   :  { %792 = vmatpush1.bf16.msra.mxu1 %v3843_v60  ;;  %720 = vmatprep.subr.bf16.mxu0 %v3844_v61 }
  0x3d   :  { %793 = vmatprep.subr.bf16.mxu1 %v3846_v62 }
  0x3f   :  { %721 = vmatpush1.bf16.msra.mxu0 %v3848_v63 }
  0x40   :  { %794 = vmatpush1.bf16.msra.mxu1 %v3849_v0  ;;  %836 = vmatprep.subr.bf16.mxu0 %v3855_v1 }
  0x41   :  { %1135 = vmatprep.subr.bf16.mxu1 %v4509_v2 }
  0x42   :  { %723 = vmatmul.mubr.bf16.vlgmr.msra.gmra.mrb[0].mxu0 %v4514_v3 }
  0x43   :  { %796 = vmatmul.mubr.bf16.vlgmr.msra.gmra.mrb[0].mxu1 %v4514_v3  ;;  %837 = vmatpush1.bf16.msra.mxu0 %v3853_v4 }
  0x44   :  { %1136 = vmatpush1.bf16.msra.mxu1 %v4522_v5  ;;  %838 = vmatprep.subr.bf16.mxu0 %v3861_v6 }
  0x45   :  { %1137 = vmatprep.subr.bf16.mxu1 %v4531_v7  ;;  %805 = vmatprep.mubr.bf16.mxu1 %v4536_v8 }
  0x46   :  { %732 = vmatprep.mubr.bf16.mxu0 %v4536_v8 }
  0x47   :  { %839 = vmatpush1.bf16.msra.mxu0 %v3859_v9 }
  0x48   :  { %1138 = vmatpush1.bf16.msra.mxu1 %v4546_v10  ;;  %840 = vmatprep.subr.bf16.mxu0 %v3870_v11 }
  0x49   :  { %1139 = vmatprep.subr.bf16.mxu1 %v4556_v12 }
  0x4a   :  { %733 = vmatmul.mubr.bf16.gmra.mrb[4].mxu0 %v4562_v13 }
  0x4b   :  { %806 = vmatmul.mubr.bf16.gmra.mrb[4].mxu1 %v4562_v13  ;;  %841 = vmatpush1.bf16.msra.mxu0 %v3868_v14 }
  0x4c   :  { %1140 = vmatpush1.bf16.msra.mxu1 %v4572_v15  ;;  %842 = vmatprep.subr.bf16.mxu0 %v3876_v16 }
  0x4d   :  { %1141 = vmatprep.subr.bf16.mxu1 %v4581_v17  ;;  %815 = vmatprep.mubr.bf16.mxu1 %v4586_v18 }
  0x4e   :  { %742 = vmatprep.mubr.bf16.mxu0 %v4586_v18 }
  0x4f   :  { %843 = vmatpush1.bf16.msra.mxu0 %v3874_v19 }
  0x50   :  { %1142 = vmatpush1.bf16.msra.mxu1 %v4597_v20  ;;  %844 = vmatprep.subr.bf16.mxu0 %v3885_v21 }
  0x51   :  { %1143 = vmatprep.subr.bf16.mxu1 %v4606_v22 }
  0x52   :  { %743 = vmatmul.mubr.bf16.gmra.mrb[8].mxu0 %v4612_v23 }
  0x53   :  { %816 = vmatmul.mubr.bf16.gmra.mrb[8].mxu1 %v4612_v23  ;;  %845 = vmatpush1.bf16.msra.mxu0 %v3883_v24 }
  0x54   :  { %1144 = vmatpush1.bf16.msra.mxu1 %v4621_v25  ;;  %846 = vmatprep.subr.bf16.mxu0 %v3891_v26 }
  0x55   :  { %1145 = vmatprep.subr.bf16.mxu1 %v4631_v27  ;;  %825 = vmatprep.mubr.bf16.mxu1 %v4636_v28 }
  0x56   :  { %752 = vmatprep.mubr.bf16.mxu0 %v4636_v28 }
  0x57   :  { %847 = vmatpush1.bf16.msra.mxu0 %v3889_v29 }
  0x58   :  { %1146 = vmatpush1.bf16.msra.mxu1 %v4647_v30  ;;  %848 = vmatprep.subr.bf16.mxu0 %v3900_v31 }
  0x59   :  { %1147 = vmatprep.subr.bf16.mxu1 %v4656_v32 }
  0x5a   :  { %753 = vmatmul.mubr.bf16.gmra.mrb[12].mxu0 %v4662_v33 }
  0x5b   :  { %826 = vmatmul.mubr.bf16.gmra.mrb[12].mxu1 %v4662_v33  ;;  %849 = vmatpush1.bf16.msra.mxu0 %v3898_v34 }
  0x5c   :  { %1148 = vmatpush1.bf16.msra.mxu1 %v4671_v35  ;;  %850 = vmatprep.subr.bf16.mxu0 %v3906_v36 }
  0x5d   :  { %1149 = vmatprep.subr.bf16.mxu1 %v4681_v37  ;;  %1167 = vmatprep.mubr.bf16.mxu1 %v6298_v41 }
  0x5e   :  { %868 = vmatprep.mubr.bf16.mxu0 %v4451_v48  ;;  %v3920_v48 = vld [vmem:[%s6289_s1 + $0x1f4] ss:$24 sps:$4 sm:$0xff]  }
  0x5f   :  { %851 = vmatpush1.bf16.msra.mxu0 %v3904_v38 }
  0x60   :  { %1150 = vmatpush1.bf16.msra.mxu1 %v4692_v39  ;;  %852 = vmatprep.subr.bf16.mxu0 %v3912_v40 }
  0x61   :  { %3398 = vmatprep.subr.bf16.mxu1 %v6300_v44 }
  0x63   :  { %1168 = vmatmul.mubr.bf16.vlgmr.msra.gmra.mrb[16].mxu1 %v6298_v41  ;;  %853 = vmatpush1.bf16.msra.mxu0 %v3910_v42 }
  0x64   :  { %3399 = vmatpush3.bf16.msra.mxu1 %v4707_v43  ;;  %854 = vmatprep.subr.bf16.mxu0 %v3916_v45 }
  0x65   :  { %3400 = vmatprep.subr.bf16.mxu1 %v6300_v44  ;;  %3414 = vmatprep.mubr.msk.bf16.mxu1 %vm4252_vm0, %v6300_v44 }
  0x67   :  { %855 = vmatpush1.bf16.msra.mxu0 %v3914_v46 }
  0x68   :  { %3401 = vmatpush3.bf16.msra.mxu1 %v4721_v47  ;;  %856 = vmatprep.subr.bf16.mxu0 %v3920_v48 }
  0x69   :  { %3402 = vmatprep.subr.bf16.mxu1 %v6300_v44 }
  0x6a   :  { %14 = vsyncpa [#allocation3], 0  ;;  %v3922_v52 = vld [vmem:[%s6289_s1 + $0x220] ss:$24 sps:$4 sm:$0xff]   ;;  %v4749_v53 = vld [vmem:[%s6290_s2 + $0x50] ss:$12 sps:$4 sm:$0xff]  }
  0x6b   :  { %857 = vmatpush1.bf16.msra.mxu0 %v3918_v49  ;;  %v3928_v54 = vld [vmem:[%s6289_s1 + $0x254] ss:$24 sps:$4 sm:$0xff]   ;;  %v3926_v55 = vld [vmem:[%s6289_s1 + $0x250] ss:$24 sps:$4 sm:$0xff]   ;;  %v3932_v57 = vld [vmem:[%s6289_s1 + $0x284] ss:$24 sps:$4 sm:$0xff]  }
  0x6c   :  { %3403 = vmatpush3.bf16.msra.mxu1 %v4736_v50  ;;  %858 = vmatprep.subr.bf16.mxu0 %v3924_v51  ;;  %v4762_v56 = vld [vmem:[%s6290_s2 + $0x68] ss:$12 sps:$4 sm:$0xff]   ;;  %v3930_v58 = vld [vmem:[%s6289_s1 + $0x280] ss:$24 sps:$4 sm:$0xff]   ;;  %v3940_v63 = vld [vmem:[%s6289_s1 + $0x2e4] ss:$24 sps:$4 sm:$0xff]  }
  0x6d   :  { %3404 = vmatprep.subr.bf16.mxu1 %v6300_v44  ;;  %v4775_v59 = vld [vmem:[%s6290_s2 + $0x80] ss:$12 sps:$4 sm:$0xff]   ;;  %v3934_v61 = vld [vmem:[%s6289_s1 + $0x2b0] ss:$24 sps:$4 sm:$0xff]   ;;  %v4788_v62 = vld [vmem:[%s6290_s2 + $0x98] ss:$12 sps:$4 sm:$0xff]  }
  0x6e   :  { %v3936_v60 = vld [vmem:[%s6289_s1 + $0x2b4] ss:$24 sps:$4 sm:$0xff]   ;;  %6342 = vst [vmem:[#allocation9_spill] sm:$0xff] %v4788_v62  ;;  %v3938_v0 = vld [vmem:[%s6289_s1 + $0x2e0] ss:$24 sps:$4 sm:$0xff]   ;;  %vm3018_vm1 = vcmask 64512  }
  0x6f   :  { %859 = vmatpush1.bf16.msra.mxu0 %v3922_v52  ;;  %v4801_v1 = vld [vmem:[%s6290_s2 + $0xb0] ss:$12 sps:$4 sm:$0xff]   ;;  %v4813_v6 = vld [vmem:[%s6291_s3] ss:$12 sps:$4 sm:$0xff]   ;;  %v4825_v11 = vld [vmem:[%s6291_s3 + $0x8] ss:$12 sps:$4 sm:$0xff]  }
  0x70   :  { %3405 = vmatpush3.bf16.msra.mxu1 %v4749_v53  ;;  %860 = vmatprep.subr.bf16.mxu0 %v3928_v54  ;;  %6343 = vst [vmem:[#allocation10_spill] sm:$0xff] %v4801_v1  ;;  %v4807_v4 = vld [vmem:[%s6291_s3 + $0x4] ss:$12 sps:$4 sm:$0xff]   ;;  %v4819_v9 = vld [vmem:[%s6291_s3 + $0x1c] ss:$12 sps:$4 sm:$0xff]  }
  0x71   :  { %3406 = vmatprep.subr.bf16.mxu1 %v6300_v44  ;;  %6344 = vst [vmem:[#allocation11_spill] sm:$0xff] %v4807_v4  ;;  %v4833_v14 = vld [vmem:[%s6291_s3 + $0x18] ss:$12 sps:$4 sm:$0xff]   ;;  %v4840_v16 = vld [vmem:[%s6291_s3 + $0x34] ss:$12 sps:$4 sm:$0xff]  }
  0x72   :  { %v4861_v19 = vld [vmem:[%s6291_s3 + $0x4c] ss:$12 sps:$4 sm:$0xff]   ;;  %v4875_v24 = vld [vmem:[%s6291_s3 + $0x48] ss:$12 sps:$4 sm:$0xff]   ;;  %v4882_v26 = vld [vmem:[%s6291_s3 + $0x64] ss:$12 sps:$4 sm:$0xff]  }
  0x73   :  { %861 = vmatpush1.bf16.msra.mxu0 %v3926_v55  ;;  %v4867_v21 = vld [vmem:[%s6291_s3 + $0x38] ss:$12 sps:$4 sm:$0xff]   ;;  %v4901_v29 = vld [vmem:[%s6291_s3 + $0x7c] ss:$12 sps:$4 sm:$0xff]   ;;  %v4922_v36 = vld [vmem:[%s6291_s3 + $0x94] ss:$12 sps:$4 sm:$0xff]  }
  0x74   :  { %3407 = vmatpush3.bf16.msra.mxu1 %v4762_v56  ;;  %862 = vmatprep.subr.bf16.mxu0 %v3932_v57  ;;  %v4907_v31 = vld [vmem:[%s6291_s3 + $0x68] ss:$12 sps:$4 sm:$0xff]   ;;  %v4915_v34 = vld [vmem:[%s6291_s3 + $0x78] ss:$12 sps:$4 sm:$0xff]   ;;  %v4963_v45 = vld [vmem:[%s6291_s3 + $0xb0] ss:$12 sps:$4 sm:$0xff]  }
  0x75   :  { %3408 = vmatprep.subr.bf16.mxu1 %v6300_v44  ;;  %v4941_v38 = vld [vmem:[%s6291_s3 + $0xac] ss:$12 sps:$4 sm:$0xff]   ;;  %v4955_v42 = vld [vmem:[%s6291_s3 + $0xa8] ss:$12 sps:$4 sm:$0xff]  }
  0x76   :  { %v4947_v40 = vld [vmem:[%s6291_s3 + $0x98] ss:$12 sps:$4 sm:$0xff]  }
  0x77   :  { %863 = vmatpush1.bf16.msra.mxu0 %v3930_v58 }
  0x78   :  { %3409 = vmatpush3.bf16.msra.mxu1 %v4775_v59  ;;  %864 = vmatprep.subr.bf16.mxu0 %v3936_v60 }
  0x79   :  { %3410 = vmatprep.subr.bf16.mxu1 %v6300_v44 }
  0x7b   :  { %865 = vmatpush1.bf16.msra.mxu0 %v3934_v61 }
  0x7c   :  { %3411 = vmatpush3.bf16.msra.mxu1 %v4788_v62  ;;  %866 = vmatprep.subr.bf16.mxu0 %v3940_v63 }
  0x7d   :  { %3412 = vmatprep.subr.bf16.mxu1 %v6300_v44 }
  0x7f   :  { %867 = vmatpush1.bf16.msra.mxu0 %v3938_v0 }
  0x80   :  { %3413 = vmatpush3.bf16.msra.mxu1 %v4801_v1  ;;  %1365 = vmatprep.subr.bf16.mxu0 %v4807_v4 }
  0x81   :  { %3418 = vmatprep.subr.bf16.mxu1 %v6300_v44 }
  0x82   :  { %869 = vmatmul.mubr.bf16.vlgmr.msra.gmra.mrb[16].mxu0 %v4514_v3  ;;  %v4846_v3 = vld [vmem:[%s6291_s3 + $0x20] ss:$12 sps:$4 sm:$0xff]  }
  0x83   :  { %3415 = vmatmul.mubr.bf16.vlgmr.msra.gmra.mrb[20].mxu1 %v6298_v41  ;;  %1366 = vmatpush1.bf16.msra.mxu0 %v4813_v6 }
  0x84   :  { %878 = vmatprep.mubr.bf16.mxu0 %v4536_v8  ;;  %1367 = vmatprep.subr.bf16.mxu0 %v4819_v9  ;;  %v4855_v8 = vld [vmem:[%s6291_s3 + $0x30] ss:$12 sps:$4 sm:$0xff]  }
  0x85   :  { %3419 = vmatpush3.bf16.msra.mxu1 %v4825_v11  ;;  %3434 = vmatprep.mubr.msk.bf16.mxu1 %vm4252_vm0, %v6300_v44 }
  0x86   :  { %3420 = vmatprep.subr.bf16.mxu1 %v6300_v44 }
  0x87   :  { %1368 = vmatpush1.bf16.msra.mxu0 %v4833_v14 }
  0x88   :  { %1369 = vmatprep.subr.bf16.mxu0 %v4840_v16 }
  0x89   :  { %3421 = vmatpush3.bf16.msra.mxu1 %v4846_v3 }
  0x8a   :  { %3422 = vmatprep.subr.bf16.mxu1 %v6300_v44  ;;  %879 = vmatmul.mubr.bf16.gmra.mrb[20].mxu0 %v4562_v13  ;;  %v4888_v13 = vld [vmem:[%s6291_s3 + $0x50] ss:$12 sps:$4 sm:$0xff]  }
  0x8b   :  { %1370 = vmatpush1.bf16.msra.mxu0 %v4855_v8  ;;  %888 = vmatprep.mubr.bf16.mxu0 %v4586_v18  ;;  %v4895_v18 = vld [vmem:[%s6291_s3 + $0x60] ss:$12 sps:$4 sm:$0xff]  }
  0x8c   :  { %1371 = vmatprep.subr.bf16.mxu0 %v4861_v19 }
  0x8d   :  { %3423 = vmatpush3.bf16.msra.mxu1 %v4867_v21 }
  0x8e   :  { %3424 = vmatprep.subr.bf16.mxu1 %v6300_v44 }
  0x8f   :  { %1372 = vmatpush1.bf16.msra.mxu0 %v4875_v24 }
  0x90   :  { %1373 = vmatprep.subr.bf16.mxu0 %v4882_v26 }
  0x91   :  { %3425 = vmatpush3.bf16.msra.mxu1 %v4888_v13 }
  0x92   :  { %3426 = vmatprep.subr.bf16.mxu1 %v6300_v44  ;;  %889 = vmatmul.mubr.bf16.gmra.mrb[24].mxu0 %v4612_v23  ;;  %v4928_v23 = vld [vmem:[%s6291_s3 + $0x80] ss:$12 sps:$4 sm:$0xff]  }
  0x93   :  { %1374 = vmatpush1.bf16.msra.mxu0 %v4895_v18  ;;  %898 = vmatprep.mubr.bf16.mxu0 %v4636_v28  ;;  %v4935_v28 = vld [vmem:[%s6291_s3 + $0x90] ss:$12 sps:$4 sm:$0xff]  }
  0x94   :  { %1375 = vmatprep.subr.bf16.mxu0 %v4901_v29 }
  0x95   :  { %3427 = vmatpush3.bf16.msra.mxu1 %v4907_v31 }
  0x96   :  { %3428 = vmatprep.subr.bf16.mxu1 %v6300_v44 }
  0x97   :  { %1376 = vmatpush1.bf16.msra.mxu0 %v4915_v34 }
  0x98   :  { %1377 = vmatprep.subr.bf16.mxu0 %v4922_v36 }
  0x99   :  { %3429 = vmatpush3.bf16.msra.mxu1 %v4928_v23 }
  0x9a   :  { %3430 = vmatprep.subr.bf16.mxu1 %v6300_v44  ;;  %899 = vmatmul.mubr.bf16.gmra.mrb[28].mxu0 %v4662_v33 }
  0x9b   :  { %1378 = vmatpush1.bf16.msra.mxu0 %v4935_v28  ;;  %1397 = vmatprep.mubr.bf16.mxu0 %v6298_v41 }
  0x9c   :  { %1379 = vmatprep.subr.bf16.mxu0 %v4941_v38 }
  0x9d   :  { %3431 = vmatpush3.bf16.msra.mxu1 %v4947_v40 }
  0x9e   :  { %3432 = vmatprep.subr.bf16.mxu1 %v6300_v44 }
  0x9f   :  { %1380 = vmatpush1.bf16.msra.mxu0 %v4955_v42 }
  0xa0   :  { %1468 = vmatprep.subr.bf16.mxu0 %v4509_v2  ;;  %v140_v2 = vlaneseq }
  0xa1   :  { %3433 = vmatpush3.bf16.msra.mxu1 %v4963_v45 }
  0xa2   :  { %3438 = vmatprep.subr.bf16.mxu1 %v6300_v44  ;;  %1398 = vmatmul.mubr.bf16.vlgmr.msra.gmra.mrb[32].mxu0 %v6298_v41 }
  0xa3   :  { %1469 = vmatpush1.bf16.msra.mxu0 %v4522_v5  ;;  %1500 = vmatprep.mubr.bf16.mxu0 %v6298_v41  ;;  %v5007_v5 = vshrl.u32 %v140_v2, 7 }
  0xa4   :  { %3435 = vmatmul.mubr.bf16.vlgmr.msra.gmra.mrb[24].mxu1 %v6298_v41  ;;  %1470 = vmatprep.subr.bf16.mxu0 %v4531_v7 }
  0xa5   :  { %3439 = vmatpush3.bf16.msra.mxu1 %v4707_v43  ;;  %3454 = vmatprep.mubr.msk.bf16.mxu1 %vm4252_vm0, %v6300_v44  ;;  %v154_v7 = vsub.s32 3, %v5007_v5 }
  0xa6   :  { %3440 = vmatprep.subr.bf16.mxu1 %v6300_v44 }
  0xa7   :  { %1471 = vmatpush1.bf16.msra.mxu0 %v4546_v10  ;;  %v5011_v10 = vsub.s32 0, %v5007_v5 }
  0xa8   :  { %1472 = vmatprep.subr.bf16.mxu0 %v4556_v12  ;;  %v5014_v12 = vsub.s32 2, %v5007_v5 }
  0xa9   :  { %3441 = vmatpush3.bf16.msra.mxu1 %v4721_v47 }
  0xaa   :  { %3442 = vmatprep.subr.bf16.mxu1 %v6300_v44 }
  0xab   :  { %1473 = vmatpush1.bf16.msra.mxu0 %v4572_v15  ;;  %v5019_v15 = vld [vmem:[%s6292_s4] sm:$0x3f] }
  0xac   :  { %1474 = vmatprep.subr.bf16.mxu0 %v4581_v17  ;;  %v5022_v17 = vsub.s32 1, %v5007_v5  ;;  %v5025_v33 = vrot.slane %v5019_v15, %v154_v7  ;;  %v5029_v46 = vrot.slane %v5019_v15, %v5011_v10  ;;  %v5033_v48 = vrot.slane %v5019_v15, %v5014_v12 }
  0xad   :  { %3443 = vmatpush3.bf16.msra.mxu1 %v4736_v50 }
  0xae   :  { %3444 = vmatprep.subr.bf16.mxu1 %v6300_v44  ;;  %v5043_v55 = vrot.slane %v5019_v15, %v5022_v17 }
  0xaf   :  { %1475 = vmatpush1.bf16.msra.mxu0 %v4597_v20 }
  0xb0   :  { %1476 = vmatprep.subr.bf16.mxu0 %v4606_v22 }
  0xb1   :  { %3445 = vmatpush3.bf16.msra.mxu1 %v4749_v53 }
  0xb2   :  { %3446 = vmatprep.subr.bf16.mxu1 %v6300_v44 }
  0xb3   :  { %1477 = vmatpush1.bf16.msra.mxu0 %v4621_v25 }
  0xb4   :  { %1478 = vmatprep.subr.bf16.mxu0 %v4631_v27 }
  0xb5   :  { %3447 = vmatpush3.bf16.msra.mxu1 %v4762_v56 }
  0xb6   :  { %3448 = vmatprep.subr.bf16.mxu1 %v6300_v44 }
  0xb7   :  { %1479 = vmatpush1.bf16.msra.mxu0 %v4647_v30 }
  0xb8   :  { %1480 = vmatprep.subr.bf16.mxu0 %v4656_v32 }
  0xb9   :  { %3449 = vmatpush3.bf16.msra.mxu1 %v4775_v59 }
  0xba   :  { %3450 = vmatprep.subr.bf16.mxu1 %v6300_v44 }
  0xbb   :  { %1481 = vmatpush1.bf16.msra.mxu0 %v4671_v35 }
  0xbc   :  { %1482 = vmatprep.subr.bf16.mxu0 %v4681_v37 }
  0xbd   :  { %3451 = vmatpush3.bf16.msra.mxu1 %v4788_v62 }
  0xbe   :  { %3452 = vmatprep.subr.bf16.mxu1 %v6300_v44 }
  0xbf   :  { %1483 = vmatpush1.bf16.msra.mxu0 %v4692_v39 }
  0xc0   :  { %1571 = vmatprep.subr.bf16.mxu0 %v4807_v4 }
  0xc1   :  { %3453 = vmatpush3.bf16.msra.mxu1 %v4801_v1 }
  0xc2   :  { %3458 = vmatprep.subr.bf16.mxu1 %v6300_v44 }
 0x115   :  { %v5035_v49 = vpop.f32.mrb[0].mxu0 }
 0x116   :  { %v5037_v51 = vpop.f32.mrb[0].mxu1  ;;  %v5039_v52 = vpop.f32.mrb[1].mxu0 }
 0x117   :  { %v799_v54 = vpop.f32.mrb[1].mxu1  ;;  %v728_v57 = vpop.f32.mrb[2].mxu0 }
 0x118   :  { %v5046_v58 = vadd.f32 %v799_v54, %v5025_v33  ;;  %v801_v60 = vpop.f32.mrb[2].mxu1  ;;  %v5049_v61 = vadd.f32 %v728_v57, %v5029_v46  ;;  %v730_v63 = vpop.f32.mrb[3].mxu0 }
 0x119   :  { %v5052_v0 = vadd.f32 %v801_v60, %v5033_v48  ;;  %v803_v2 = vpop.f32.mrb[3].mxu1  ;;  %v5055_v7 = vadd.f32 %v730_v63, %v5043_v55 }
 0x11a   :  { %6345 = vst [vmem:[#allocation12_spill] sm:$0xff] %v5046_v58  ;;  %6346 = vst [vmem:[#allocation13_spill] sm:$0xff] %v5049_v61  ;;  %v5058_v41 = vadd.f32 %v803_v2, %v5025_v33 }
 0x11b   :  { %6347 = vst [vmem:[#allocation14_spill] sm:$0xff] %v5052_v0  ;;  %6348 = vst [vmem:[#allocation15_spill] sm:$0xff] %v5055_v7 }
 0x11c   :  { %6349 = vst [vmem:[#allocation16_spill] sm:$0xff] %v5058_v41 }
 0x11d   :  { %v734_v4 = vpop.f32.mrb[4].mxu0 }
 0x11e   :  { %v807_v44 = vpop.f32.mrb[4].mxu1  ;;  %v5064_v57 = vadd.f32 %v734_v4, %v5029_v46  ;;  %v736_v61 = vpop.f32.mrb[5].mxu0 }
 0x11f   :  { %v5061_v54 = vadd.f32 %v807_v44, %v5033_v48  ;;  %v809_v58 = vpop.f32.mrb[5].mxu1  ;;  %v5070_v63 = vadd.f32 %v736_v61, %v5043_v55  ;;  %v738_v7 = vpop.f32.mrb[6].mxu0 }
 0x120   :  { %6351 = vst [vmem:[#allocation18_spill] sm:$0xff] %v5064_v57  ;;  %v5067_v60 = vadd.f32 %v809_v58, %v5025_v33  ;;  %v811_v0 = vpop.f32.mrb[6].mxu1  ;;  %v5076_v44 = vadd.f32 %v738_v7, %v5029_v46 }
 0x121   :  { %6350 = vst [vmem:[#allocation17_spill] sm:$0xff] %v5061_v54  ;;  %6353 = vst [vmem:[#allocation20_spill] sm:$0xff] %v5070_v63  ;;  %v5073_v2 = vadd.f32 %v811_v0, %v5033_v48  ;;  %v813_v41 = vpop.f32.mrb[7].mxu1  ;;  %v740_v54 = vpop.f32.mrb[7].mxu0 }
 0x122   :  { %6352 = vst [vmem:[#allocation19_spill] sm:$0xff] %v5067_v60  ;;  %6355 = vst [vmem:[#allocation22_spill] sm:$0xff] %v5076_v44  ;;  %v5079_v4 = vadd.f32 %v813_v41, %v5025_v33  ;;  %v5082_v57 = vadd.f32 %v740_v54, %v5043_v55 }
 0x123   :  { %6354 = vst [vmem:[#allocation21_spill] sm:$0xff] %v5073_v2 }
 0x124   :  { %6356 = vst [vmem:[#allocation23_spill] sm:$0xff] %v5079_v4  ;;  %6357 = vst [vmem:[#allocation24_spill] sm:$0xff] %v5082_v57 }
 0x125   :  { %v744_v60 = vpop.f32.mrb[8].mxu0 }
 0x126   :  { %v817_v58 = vpop.f32.mrb[8].mxu1  ;;  %v5088_v0 = vadd.f32 %v744_v60, %v5029_v46  ;;  %v746_v2 = vpop.f32.mrb[9].mxu0 }
 0x127   :  { %v5085_v61 = vadd.f32 %v817_v58, %v5033_v48  ;;  %v819_v63 = vpop.f32.mrb[9].mxu1  ;;  %v5094_v41 = vadd.f32 %v746_v2, %v5043_v55  ;;  %v748_v4 = vpop.f32.mrb[10].mxu0 }
 0x128   :  { %6359 = vst [vmem:[#allocation26_spill] sm:$0xff] %v5088_v0  ;;  %v5091_v7 = vadd.f32 %v819_v63, %v5025_v33  ;;  %v821_v44 = vpop.f32.mrb[10].mxu1  ;;  %v5100_v58 = vadd.f32 %v748_v4, %v5029_v46 }
 0x129   :  { %6358 = vst [vmem:[#allocation25_spill] sm:$0xff] %v5085_v61  ;;  %6361 = vst [vmem:[#allocation28_spill] sm:$0xff] %v5094_v41  ;;  %v5097_v54 = vadd.f32 %v821_v44, %v5033_v48  ;;  %v823_v57 = vpop.f32.mrb[11].mxu1  ;;  %v750_v61 = vpop.f32.mrb[11].mxu0 }
 0x12a   :  { %6360 = vst [vmem:[#allocation27_spill] sm:$0xff] %v5091_v7  ;;  %6363 = vst [vmem:[#allocation30_spill] sm:$0xff] %v5100_v58  ;;  %v5103_v60 = vadd.f32 %v823_v57, %v5025_v33  ;;  %v5106_v0 = vadd.f32 %v750_v61, %v5043_v55  ;;  %v973_v57 = vld [vmem:[%s6293_s5] sm:$0x7] }
 0x12b   :  { %6362 = vst [vmem:[#allocation29_spill] sm:$0xff] %v5097_v54 }
 0x12c   :  { %6364 = vst [vmem:[#allocation31_spill] sm:$0xff] %v5103_v60  ;;  %6365 = vst [vmem:[#allocation32_spill] sm:$0xff] %v5106_v0  ;;  %v5135_v60 = vrot.slane %v973_v57, %v5011_v10 }
 0x12d   :  { %v754_v7 = vpop.f32.mrb[12].mxu0 }
 0x12e   :  { %v827_v63 = vpop.f32.mrb[12].mxu1  ;;  %v5112_v44 = vadd.f32 %v754_v7, %v5029_v46  ;;  %v756_v54 = vpop.f32.mrb[13].mxu0  ;;  %6373 = vst [vmem:[#allocation40_spill] sm:$0xff] %v5135_v60 }
 0x12f   :  { %v5109_v2 = vadd.f32 %v827_v63, %v5033_v48  ;;  %v829_v41 = vpop.f32.mrb[13].mxu1  ;;  %v5121_v61 = vadd.f32 %v756_v54, %v5043_v55  ;;  %v758_v0 = vpop.f32.mrb[14].mxu0 }
 0x130   :  { %6367 = vst [vmem:[#allocation34_spill] sm:$0xff] %v5112_v44  ;;  %v5115_v4 = vadd.f32 %v829_v41, %v5025_v33  ;;  %v831_v58 = vpop.f32.mrb[14].mxu1  ;;  %v5129_v7 = vadd.f32 %v758_v0, %v5029_v46  ;;  %v760_v44 = vpop.f32.mrb[15].mxu0  ;;  %v727_v0 = vadd.f32 %v5039_v52, %v5043_v55 }
 0x131   :  { %6366 = vst [vmem:[#allocation33_spill] sm:$0xff] %v5109_v2  ;;  %6369 = vst [vmem:[#allocation36_spill] sm:$0xff] %v5121_v61  ;;  %v5124_v63 = vadd.f32 %v831_v58, %v5033_v48  ;;  %v5126_v2 = vpop.f32.mrb[15].mxu1  ;;  %v5132_v41 = vadd.f32 %v760_v44, %v5043_v55  ;;  %v725_v58 = vadd.f32 %v5035_v49, %v5029_v46  ;;  %v158_v46 = vsub.s32 4, %v5007_v5 }
 0x132   :  { %6368 = vst [vmem:[#allocation35_spill] sm:$0xff] %v5115_v4  ;;  %6371 = vst [vmem:[#allocation38_spill] sm:$0xff] %v5129_v7  ;;  %v5138_v4 = vrot.slane %v973_v57, %v5022_v17  ;;  %v162_v49 = vsub.s32 5, %v5007_v5  ;;  %v5152_v55 = vrot.slane %v973_v57, %v5014_v12 }
 0x133   :  { %6370 = vst [vmem:[#allocation37_spill] sm:$0xff] %v5124_v63  ;;  %6372 = vst [vmem:[#allocation39_spill] sm:$0xff] %v5132_v41  ;;  %v5149_v52 = vrot.slane %v5019_v15, %v158_v46 }
 0x136   :  { %v1169_v54 = vpop.f32.mrb[16].mxu1 }
 0x137   :  { %v1170_v63 = vadd.f32 %v1169_v54, %v5135_v60  ;;  %v1171_v61 = vpop.f32.mrb[17].mxu1 }
 0x138   :  { %v1172_v7 = vadd.f32 %v1171_v61, %v5138_v4  ;;  %v1173_v44 = vpop.f32.mrb[18].mxu1 }
 0x139   :  { %v1216_v41 = vadd.f32 %v1170_v63, %v725_v58  ;;  %v1174_v1 = vpop.f32.mrb[19].mxu1 }
 0x13a   :  { %v1223_v39 = vadd.f32 %v1172_v7, %v727_v0  ;;  %v5155_v1 = vrot.slane %v5019_v15, %v162_v49  ;;  %v798_v15 = vadd.f32 %v5037_v51, %v5033_v48 }
 0x13b   :  { %v3162_v37 = vmul.f32 -1.442695, %v1216_v41 }
 0x13c   :  { %v3163_v62 = vmul.f32 -1.442695, %v1223_v39 }
 0x13d   :  { %3974 = vpow2.f32 %v3162_v37 }
 0x13e   :  { %3976 = vpow2.f32 %v3163_v62 }
 0x147   :  { %v3975_v35 = vpop.eup %3974 }
 0x148   :  { %v1220_v32 = vadd.f32 1.0, %v3975_v35  ;;  %v3977_v54 = vpop.eup %3976 }
 0x149   :  { %v1227_v37 = vadd.f32 1.0, %v3977_v54 }
 0x14a   :  { %3978 = vrcp.f32 %v1220_v32 }
 0x14b   :  { %3980 = vrcp.f32 %v1227_v37 }
 0x154   :  { %v3979_v63 = vpop.eup %3978 }
 0x155   :  { %v870_v39 = vpop.f32.mrb[16].mxu0 }
 0x156   :  { %v1210_v61 = vpop.f32.mrb[20].mxu1  ;;  %v5158_v35 = vadd.f32 %v870_v39, %v5149_v52  ;;  %v872_v62 = vpop.f32.mrb[17].mxu0 }
 0x157   :  { %v1211_v32 = vadd.f32 %v1210_v61, %v5152_v55  ;;  %v3416_v5 = vpop.f32.mrb[21].mxu1  ;;  %v5162_v7 = vadd.f32 %v872_v62, %v5155_v1  ;;  %v874_v41 = vpop.f32.mrb[18].mxu0 }
 0x158   :  { %6374 = vst [vmem:[#allocation41_spill] sm:$0xff] %v5158_v35  ;;  %v1213_v57 = vpop.f32.mrb[22].mxu1  ;;  %v5167_v0 = vadd.f32 %v874_v41, %v5149_v52  ;;  %v876_v44 = vpop.f32.mrb[19].mxu0 }
 0x159   :  { %6375 = vst [vmem:[#allocation42_spill] sm:$0xff] %v5162_v7  ;;  %v1230_v58 = vmul.f32 %v3979_v63, %v1211_v32  ;;  %v3417_v46 = vpop.f32.mrb[23].mxu1  ;;  %v5170_v49 = vadd.f32 %v876_v44, %v5155_v1  ;;  %v3981_v63 = vpop.eup %3980 }
 0x15a   :  { %6376 = vst [vmem:[#allocation43_spill] sm:$0xff] %v5167_v0  ;;  %v1233_v57 = vsub.f32 1.0, %v3981_v63  ;;  %v834_v0 = vadd.f32 %v5126_v2, %v5025_v33 }
 0x15b   :  { %6377 = vst [vmem:[#allocation44_spill] sm:$0xff] %v5170_v49  ;;  %v1231_v54 = vadd.f32 %v1230_v58, %v798_v15 }
 0x15d   :  { %3982 = vtanh.f32 %v1231_v54  ;;  %v880_v39 = vpop.f32.mrb[20].mxu0 }
 0x15e   :  { %v5173_v61 = vadd.f32 %v880_v39, %v5149_v52  ;;  %v882_v62 = vpop.f32.mrb[21].mxu0 }
 0x15f   :  { %v5176_v5 = vadd.f32 %v882_v62, %v5155_v1  ;;  %v884_v48 = vpop.f32.mrb[22].mxu0  ;;  %v1235_v62 = vmul.f32 0.0, %v3981_v63 }
 0x160   :  { %6378 = vst [vmem:[#allocation45_spill] sm:$0xff] %v5173_v61  ;;  %v5179_v51 = vadd.f32 %v884_v48, %v5149_v52  ;;  %v886_v37 = vpop.f32.mrb[23].mxu0 }
 0x161   :  { %6379 = vst [vmem:[#allocation46_spill] sm:$0xff] %v5176_v5  ;;  %v5182_v32 = vadd.f32 %v886_v37, %v5155_v1 }
 0x162   :  { %6380 = vst [vmem:[#allocation47_spill] sm:$0xff] %v5179_v51 }
 0x163   :  { %6381 = vst [vmem:[#allocation48_spill] sm:$0xff] %v5182_v32 }
 0x165   :  { %v890_v41 = vpop.f32.mrb[24].mxu0 }
 0x166   :  { %v5185_v58 = vadd.f32 %v890_v41, %v5149_v52  ;;  %v892_v44 = vpop.f32.mrb[25].mxu0 }
 0x167   :  { %v3983_v15 = vpop.eup %3982  ;;  %v5188_v46 = vadd.f32 %v892_v44, %v5155_v1  ;;  %v894_v54 = vpop.f32.mrb[26].mxu0 }
 0x168   :  { %6382 = vst [vmem:[#allocation49_spill] sm:$0xff] %v5185_v58  ;;  %v1234_v39 = vmul.f32 %v3983_v15, %v1233_v57  ;;  %v5191_v48 = vadd.f32 %v894_v54, %v5149_v52  ;;  %v896_v7 = vpop.f32.mrb[27].mxu0  ;;  %v990_v15 = vld [vmem:[%s6294_s6] sm:$0x7]  ;;  %v6386_v54 = vmov 0.0  }
 0x169   :  { %6383 = vst [vmem:[#allocation50_spill] sm:$0xff] %v5188_v46  ;;  %v5194_v37 = vadd.f32 %v896_v7, %v5155_v1 }
 0x16a   :  { %6384 = vst [vmem:[#allocation51_spill] sm:$0xff] %v5191_v48  ;;  %v5196_v35 = vadd.f32 %v1235_v62, %v1234_v39  ;;  %v5217_v62 = vrot.slane %v990_v15, %v5011_v10 }
 0x16b   :  { %6385 = vst [vmem:[#allocation52_spill] sm:$0xff] %v5194_v37 }
 0x16c   :  { %v1467_v41 = vpack.c.bf16 %v5196_v35, %v5196_v35 }
 0x16d   :  { %v900_v49 = vpop.f32.mrb[28].mxu0 }
 0x16e   :  { %1501 = vmatmul.mubr.bf16.vlgmr.msra.gmra.mrb[36].mxu0 %v1467_v41  ;;  %3455 = vmatmul.mubr.bf16.vlgmr.msra.gmra.mrb[28].mxu1 %v1467_v41  ;;  %v5201_v44 = vadd.f32 %v900_v49, %v5149_v52  ;;  %v902_v57 = vpop.f32.mrb[29].mxu0  ;;  %v6387_v49 = vmov 0   ;;  %v5222_v41 = vrot.slane %v990_v15, %v5022_v17 }
 0x16f   :  { %1572 = vmatpush1.bf16.msra.mxu0 %v4813_v6  ;;  %3459 = vmatpush3.bf16.msra.mxu1 %v4825_v11  ;;  %v5206_v63 = vadd.f32 %v902_v57, %v5155_v1  ;;  %v904_v7 = vpop.f32.mrb[30].mxu0 }
 0x170   :  { %1573 = vmatprep.subr.bf16.mxu0 %v4819_v9  ;;  %3460 = vmatprep.subr.bf16.mxu1 %v6386_v54  ;;  %v906_v39 = vpop.f32.mrb[31].mxu0  ;;  %v905_v32 = vadd.f32 %v904_v7, %v5149_v52 }
 0x171   :  { %1603 = vmatprep.mubr.bf16.mxu0 %v6387_v49  ;;  %3474 = vmatprep.mubr.msk.bf16.mxu1 %vm4252_vm0, %v6386_v54 }
 0x173   :  { %1574 = vmatpush1.bf16.msra.mxu0 %v4833_v14  ;;  %3461 = vmatpush3.bf16.msra.mxu1 %v4846_v3 }
 0x174   :  { %1575 = vmatprep.subr.bf16.mxu0 %v4840_v16  ;;  %3462 = vmatprep.subr.bf16.mxu1 %v6386_v54 }
 0x175   :  { %v1399_v57 = vpop.f32.mrb[32].mxu0 }
 0x176   :  { %v1400_v5 = vadd.f32 %v1399_v57, %v5217_v62  ;;  %v1401_v61 = vpop.f32.mrb[33].mxu0 }
 0x177   :  { %v1440_v10 = vpop.f32.mrb[24].mxu1  ;;  %1576 = vmatpush1.bf16.msra.mxu0 %v4855_v8  ;;  %3463 = vmatpush3.bf16.msra.mxu1 %v4867_v21  ;;  %v1402_v17 = vadd.f32 %v1401_v61, %v5222_v41  ;;  %v1403_v51 = vpop.f32.mrb[34].mxu0 }
 0x178   :  { %v3436_v46 = vpop.f32.mrb[25].mxu1  ;;  %1577 = vmatprep.subr.bf16.mxu0 %v4861_v19  ;;  %3464 = vmatprep.subr.bf16.mxu1 %v6386_v54  ;;  %v1446_v58 = vadd.f32 %v1400_v5, %v834_v0  ;;  %v1404_v33 = vpop.f32.mrb[35].mxu0  ;;  %v5256_v5 = vld [vmem:[%s6290_s2 + $0x4] ss:$12 sps:$4 sm:$0xff]   ;;  %v5261_v51 = vrot.slane %v990_v15, %v5014_v12  ;;  %v5279_v15 = vld [vmem:[%s6290_s2 + $0x1c] ss:$12 sps:$4 sm:$0xff]  }
 0x179   :  { %v1443_v2 = vpop.f32.mrb[26].mxu1  ;;  %v1453_v57 = vadd.f32 %v1402_v17, %v905_v32  ;;  %6388 = vst [vmem:[#allocation53_spill] sm:$0xff] %v5256_v5 }
 0x17a   :  { %v3437_v37 = vpop.f32.mrb[27].mxu1  ;;  %v3188_v48 = vmul.f32 -1.442695, %v1446_v58  ;;  %v1441_v46 = vadd.f32 %v1440_v10, %v5261_v51  ;;  %v5303_v10 = vld [vmem:[%s6290_s2 + $0x30] ss:$12 sps:$4 sm:$0xff]  }
 0x17b   :  { %1578 = vmatpush1.bf16.msra.mxu0 %v4875_v24  ;;  %3465 = vmatpush3.bf16.msra.mxu1 %v4888_v13  ;;  %v3189_v52 = vmul.f32 -1.442695, %v1453_v57  ;;  %v907_v37 = vadd.f32 %v906_v39, %v5155_v1  ;;  %v5272_v1 = vld [vmem:[%s6290_s2] ss:$12 sps:$4 sm:$0xff]   ;;  %v5289_v39 = vld [vmem:[%s6290_s2 + $0x18] ss:$12 sps:$4 sm:$0xff]  }
 0x17c   :  { %1579 = vmatprep.subr.bf16.mxu0 %v4882_v26  ;;  %3466 = vmatprep.subr.bf16.mxu1 %v6386_v54  ;;  %3984 = vpow2.f32 %v3188_v48 }
 0x17d   :  { %3986 = vpow2.f32 %v3189_v52 }
 0x17f   :  { %1580 = vmatpush1.bf16.msra.mxu0 %v4895_v18  ;;  %3467 = vmatpush3.bf16.msra.mxu1 %v4907_v31 }
 0x180   :  { %1581 = vmatprep.subr.bf16.mxu0 %v4901_v29  ;;  %3468 = vmatprep.subr.bf16.mxu1 %v6386_v54 }
 0x183   :  { %1582 = vmatpush1.bf16.msra.mxu0 %v4915_v34  ;;  %3469 = vmatpush3.bf16.msra.mxu1 %v4928_v23 }
 0x184   :  { %1583 = vmatprep.subr.bf16.mxu0 %v4922_v36  ;;  %3470 = vmatprep.subr.bf16.mxu1 %v6386_v54 }
 0x186   :  { %v3985_v0 = vpop.eup %3984 }
 0x187   :  { %1584 = vmatpush1.bf16.msra.mxu0 %v4935_v28  ;;  %3471 = vmatpush3.bf16.msra.mxu1 %v4947_v40  ;;  %v1450_v61 = vadd.f32 1.0, %v3985_v0  ;;  %v3987_v32 = vpop.eup %3986 }
 0x188   :  { %1585 = vmatprep.subr.bf16.mxu0 %v4941_v38  ;;  %3472 = vmatprep.subr.bf16.mxu1 %v6386_v54  ;;  %v1457_v58 = vadd.f32 1.0, %v3987_v32 }
 0x189   :  { %3988 = vrcp.f32 %v1450_v61 }
 0x18a   :  { %3990 = vrcp.f32 %v1457_v58 }
 0x18b   :  { %1586 = vmatpush1.bf16.msra.mxu0 %v4955_v42  ;;  %3473 = vmatpush3.bf16.msra.mxu1 %v4963_v45 }
 0x18c   :  { %1674 = vmatprep.subr.bf16.mxu0 %v5256_v5  ;;  %3478 = vmatprep.subr.bf16.mxu1 %v6386_v54 }
 0x193   :  { %v3989_v48 = vpop.eup %3988 }
 0x194   :  { %v1460_v7 = vmul.f32 %v3989_v48, %v1441_v46  ;;  %v3991_v33 = vpop.eup %3990 }
 0x195   :  { %v1463_v2 = vsub.f32 1.0, %v3991_v33  ;;  %v1465_v0 = vmul.f32 0.0, %v3991_v33  ;;  %v6396_v33 = vld [vmem:[#allocation13_spill] sm:$0xff] }
 0x196   :  { %v1461_v17 = vadd.f32 %v1460_v7, %v907_v37 }
 0x198   :  { %3992 = vtanh.f32 %v1461_v17 }
 0x1a2   :  { %v3993_v57 = vpop.eup %3992 }
 0x1a3   :  { %v1464_v52 = vmul.f32 %v3993_v57, %v1463_v2 }
 0x1a5   :  { %v5265_v61 = vadd.f32 %v1465_v0, %v1464_v52  ;;  %v6397_v0 = vld [vmem:[#allocation15_spill] sm:$0xff] }
 0x1a7   :  { %v1570_v12 = vpack.c.bf16 %v5265_v61, %v5265_v61 }
 0x1a9   :  { %1604 = vmatmul.mubr.bf16.vlgmr.msra.gmra.mrb[40].mxu0 %v1570_v12  ;;  %3475 = vmatmul.mubr.bf16.vlgmr.msra.gmra.mrb[32].mxu1 %v1570_v12 }
 0x1aa   :  { %1675 = vmatpush1.bf16.msra.mxu0 %v5272_v1  ;;  %3479 = vmatpush3.bf16.msra.mxu1 %v4707_v43  ;;  %v5296_v43 = vld [vmem:[%s6290_s2 + $0x34] ss:$12 sps:$4 sm:$0xff]  }
 0x1ab   :  { %1676 = vmatprep.subr.bf16.mxu0 %v5279_v15  ;;  %3480 = vmatprep.subr.bf16.mxu1 %v6386_v54 }
 0x1ac   :  { %1706 = vmatprep.mubr.bf16.mxu0 %v6387_v49  ;;  %3494 = vmatprep.mubr.msk.bf16.mxu1 %vm4252_vm0, %v6386_v54 }
 0x1ae   :  { %1677 = vmatpush1.bf16.msra.mxu0 %v5289_v39  ;;  %3481 = vmatpush3.bf16.msra.mxu1 %v4721_v47  ;;  %v5310_v47 = vld [vmem:[%s6290_s2 + $0x4c] ss:$12 sps:$4 sm:$0xff]  }
 0x1af   :  { %1678 = vmatprep.subr.bf16.mxu0 %v5296_v43  ;;  %3482 = vmatprep.subr.bf16.mxu1 %v6386_v54 }
 0x1b2   :  { %1679 = vmatpush1.bf16.msra.mxu0 %v5303_v10  ;;  %3483 = vmatpush3.bf16.msra.mxu1 %v4736_v50  ;;  %v6389_v50 = vld [vmem:[#allocation5_spill] sm:$0xff] }
 0x1b3   :  { %1680 = vmatprep.subr.bf16.mxu0 %v5310_v47  ;;  %3484 = vmatprep.subr.bf16.mxu1 %v6386_v54 }
 0x1b6   :  { %1681 = vmatpush1.bf16.msra.mxu0 %v4597_v20  ;;  %3485 = vmatpush3.bf16.msra.mxu1 %v4749_v53  ;;  %v6390_v20 = vld [vmem:[#allocation6_spill] sm:$0xff]  ;;  %v6392_v53 = vld [vmem:[#allocation7_spill] sm:$0xff] }
 0x1b7   :  { %1682 = vmatprep.subr.bf16.mxu0 %v4606_v22  ;;  %3486 = vmatprep.subr.bf16.mxu1 %v6386_v54  ;;  %v6391_v22 = vld [vmem:[#allocation9_spill] sm:$0xff] }
 0x1ba   :  { %1683 = vmatpush1.bf16.msra.mxu0 %v4621_v25  ;;  %3487 = vmatpush3.bf16.msra.mxu1 %v4762_v56  ;;  %v6393_v25 = vld [vmem:[#allocation8_spill] sm:$0xff]  ;;  %v6395_v56 = vld [vmem:[#allocation11_spill] sm:$0xff] }
 0x1bb   :  { %1684 = vmatprep.subr.bf16.mxu0 %v4631_v27  ;;  %3488 = vmatprep.subr.bf16.mxu1 %v6386_v54  ;;  %v6394_v27 = vld [vmem:[#allocation10_spill] sm:$0xff] }
 0x1be   :  { %1685 = vmatpush1.bf16.msra.mxu0 %v4647_v30  ;;  %3489 = vmatpush3.bf16.msra.mxu1 %v4775_v59 }
 0x1bf   :  { %1686 = vmatprep.subr.bf16.mxu0 %v6389_v50  ;;  %3490 = vmatprep.subr.bf16.mxu1 %v6386_v54 }
 0x1c2   :  { %1687 = vmatpush1.bf16.msra.mxu0 %v6390_v20  ;;  %3491 = vmatpush3.bf16.msra.mxu1 %v6391_v22 }
 0x1c3   :  { %1688 = vmatprep.subr.bf16.mxu0 %v6392_v53  ;;  %3492 = vmatprep.subr.bf16.mxu1 %v6386_v54 }
 0x1c6   :  { %1689 = vmatpush1.bf16.msra.mxu0 %v6393_v25  ;;  %3493 = vmatpush3.bf16.msra.mxu1 %v6394_v27 }
 0x1c7   :  { %1777 = vmatprep.subr.bf16.mxu0 %v6395_v56  ;;  %3498 = vmatprep.subr.bf16.mxu1 %v6386_v54 }
 0x241   :  { %v1502_v30 = vpop.f32.mrb[36].mxu0  ;;  %v1543_v32 = vpop.f32.mrb[28].mxu1 }
 0x242   :  { %v1503_v58 = vadd.f32 %v1502_v30, %v5135_v60  ;;  %v1504_v46 = vpop.f32.mrb[37].mxu0  ;;  %v3456_v48 = vpop.f32.mrb[29].mxu1 }
 0x243   :  { %v1505_v37 = vadd.f32 %v1504_v46, %v5138_v4  ;;  %v1506_v7 = vpop.f32.mrb[38].mxu0  ;;  %v1546_v17 = vpop.f32.mrb[30].mxu1  ;;  %v1544_v48 = vadd.f32 %v1543_v32, %v5152_v55 }
 0x244   :  { %v1549_v2 = vadd.f32 %v1503_v58, %v6396_v33  ;;  %v1507_v57 = vpop.f32.mrb[39].mxu0  ;;  %v3457_v52 = vpop.f32.mrb[31].mxu1  ;;  %v6398_v17 = vld [vmem:[#allocation14_spill] sm:$0xff] }
 0x245   :  { %v1556_v12 = vadd.f32 %v1505_v37, %v6397_v0 }
 0x246   :  { %v3190_v50 = vmul.f32 -1.442695, %v1549_v2 }
 0x247   :  { %v3191_v20 = vmul.f32 -1.442695, %v1556_v12 }
 0x248   :  { %3994 = vpow2.f32 %v3190_v50 }
 0x249   :  { %3996 = vpow2.f32 %v3191_v20 }
 0x252   :  { %v3995_v53 = vpop.eup %3994 }
 0x253   :  { %v1553_v25 = vadd.f32 1.0, %v3995_v53  ;;  %v3997_v30 = vpop.eup %3996 }
 0x254   :  { %v1560_v60 = vadd.f32 1.0, %v3997_v30 }
 0x255   :  { %3998 = vrcp.f32 %v1553_v25 }
 0x256   :  { %4000 = vrcp.f32 %v1560_v60 }
 0x25f   :  { %v3999_v46 = vpop.eup %3998 }
 0x260   :  { %v1563_v7 = vmul.f32 %v3999_v46, %v1544_v48  ;;  %v4001_v33 = vpop.eup %4000  ;;  %v5430_v48 = vld [vmem:[%s6290_s2 + $0x50] ss:$12 sps:$4 sm:$0xff]  }
 0x261   :  { %v1566_v57 = vsub.f32 1.0, %v4001_v33  ;;  %v1568_v52 = vmul.f32 %v4001_v33, %v5196_v35  ;;  %v5436_v46 = vld [vmem:[%s6290_s2 + $0x64] ss:$12 sps:$4 sm:$0xff]  }
 0x262   :  { %v1564_v58 = vadd.f32 %v1563_v7, %v6398_v17  ;;  %v5443_v7 = vld [vmem:[%s6290_s2 + $0x60] ss:$12 sps:$4 sm:$0xff]   ;;  %v5449_v17 = vld [vmem:[%s6290_s2 + $0x68] ss:$12 sps:$4 sm:$0xff]   ;;  %v5462_v33 = vld [vmem:[%s6290_s2 + $0x78] ss:$12 sps:$4 sm:$0xff]  }
 0x264   :  { %4002 = vtanh.f32 %v1564_v58  ;;  %v5455_v58 = vld [vmem:[%s6290_s2 + $0x7c] ss:$12 sps:$4 sm:$0xff]  }
 0x26e   :  { %v4003_v37 = vpop.eup %4002 }
 0x26f   :  { %v1567_v2 = vmul.f32 %v4003_v37, %v1566_v57  ;;  %v5469_v57 = vld [vmem:[%s6290_s2 + $0x94] ss:$12 sps:$4 sm:$0xff]   ;;  %v5476_v37 = vld [vmem:[%s6290_s2 + $0x90] ss:$12 sps:$4 sm:$0xff]  }
 0x270   :  { %6400 = vst [vmem:[#allocation5_spill] sm:$0xff] %v5469_v57  ;;  %6401 = vst [vmem:[#allocation6_spill] sm:$0xff] %v5476_v37 }
 0x271   :  { %v5341_v0 = vadd.f32 %v1568_v52, %v1567_v2  ;;  %v5490_v2 = vld [vmem:[%s6290_s2 + $0xa8] ss:$12 sps:$4 sm:$0xff]  }
 0x272   :  { %6403 = vst [vmem:[#allocation7_spill] sm:$0xff] %v5490_v2 }
 0x273   :  { %v1673_v12 = vpack.c.bf16 %v5341_v0, %v5341_v0 }
 0x275   :  { %1707 = vmatmul.mubr.bf16.vlgmr.msra.gmra.mrb[44].mxu0 %v1673_v12  ;;  %3495 = vmatmul.mubr.bf16.vlgmr.msra.gmra.mrb[36].mxu1 %v1673_v12  ;;  %v6404_v12 = vld [vmem:[#allocation40_spill] sm:$0xff] }
 0x276   :  { %1778 = vmatpush1.bf16.msra.mxu0 %v4813_v6  ;;  %3499 = vmatpush3.bf16.msra.mxu1 %v4825_v11 }
 0x277   :  { %1779 = vmatprep.subr.bf16.mxu0 %v4819_v9  ;;  %3500 = vmatprep.subr.bf16.mxu1 %v6386_v54 }
 0x278   :  { %1809 = vmatprep.mubr.bf16.mxu0 %v6387_v49  ;;  %3514 = vmatprep.mubr.msk.bf16.mxu1 %vm4252_vm0, %v6386_v54 }
 0x27a   :  { %1780 = vmatpush1.bf16.msra.mxu0 %v4833_v14  ;;  %3501 = vmatpush3.bf16.msra.mxu1 %v4846_v3 }
 0x27b   :  { %1781 = vmatprep.subr.bf16.mxu0 %v4840_v16  ;;  %3502 = vmatprep.subr.bf16.mxu1 %v6386_v54  ;;  %v6399_v16 = vld [vmem:[#allocation35_spill] sm:$0xff] }
 0x27c   :  { %v1605_v6 = vpop.f32.mrb[40].mxu0  ;;  %v1646_v60 = vpop.f32.mrb[32].mxu1 }
 0x27d   :  { %v1606_v11 = vadd.f32 %v1605_v6, %v5217_v62  ;;  %v1607_v9 = vpop.f32.mrb[41].mxu0  ;;  %v3476_v35 = vpop.f32.mrb[33].mxu1 }
 0x27e   :  { %1782 = vmatpush1.bf16.msra.mxu0 %v4855_v8  ;;  %3503 = vmatpush3.bf16.msra.mxu1 %v4867_v21  ;;  %v1608_v32 = vadd.f32 %v1607_v9, %v5222_v41  ;;  %v1609_v50 = vpop.f32.mrb[42].mxu0  ;;  %v1649_v14 = vpop.f32.mrb[34].mxu1 }
 0x27f   :  { %1783 = vmatprep.subr.bf16.mxu0 %v4861_v19  ;;  %3504 = vmatprep.subr.bf16.mxu1 %v6386_v54  ;;  %v1652_v3 = vadd.f32 %v1606_v11, %v6399_v16  ;;  %v1610_v20 = vpop.f32.mrb[43].mxu0  ;;  %v3477_v53 = vpop.f32.mrb[35].mxu1  ;;  %v6405_v50 = vld [vmem:[#allocation18_spill] sm:$0xff] }
 0x280   :  { %v1659_v25 = vadd.f32 %v1608_v32, %v5201_v44  ;;  %v5407_v44 = vld [vmem:[%s6290_s2 + $0x20] ss:$12 sps:$4 sm:$0xff]  }
 0x281   :  { %v3192_v30 = vmul.f32 -1.442695, %v1652_v3  ;;  %v6406_v20 = vld [vmem:[#allocation20_spill] sm:$0xff] }
 0x282   :  { %1784 = vmatpush1.bf16.msra.mxu0 %v4875_v24  ;;  %3505 = vmatpush3.bf16.msra.mxu1 %v4888_v13  ;;  %v3193_v8 = vmul.f32 -1.442695, %v1659_v25  ;;  %v1647_v13 = vadd.f32 %v1646_v60, %v5261_v51 }
 0x283   :  { %1785 = vmatprep.subr.bf16.mxu0 %v4882_v26  ;;  %3506 = vmatprep.subr.bf16.mxu1 %v6386_v54  ;;  %4004 = vpow2.f32 %v3192_v30 }
 0x284   :  { %4006 = vpow2.f32 %v3193_v8 }
 0x286   :  { %1786 = vmatpush1.bf16.msra.mxu0 %v4895_v18  ;;  %3507 = vmatpush3.bf16.msra.mxu1 %v4907_v31 }
 0x287   :  { %1787 = vmatprep.subr.bf16.mxu0 %v4901_v29  ;;  %3508 = vmatprep.subr.bf16.mxu1 %v6386_v54 }
 0x28a   :  { %1788 = vmatpush1.bf16.msra.mxu0 %v4915_v34  ;;  %3509 = vmatpush3.bf16.msra.mxu1 %v4928_v23 }
 0x28b   :  { %1789 = vmatprep.subr.bf16.mxu0 %v4922_v36  ;;  %3510 = vmatprep.subr.bf16.mxu1 %v6386_v54 }
 0x28d   :  { %v4005_v19 = vpop.eup %4004 }
 0x28e   :  { %1790 = vmatpush1.bf16.msra.mxu0 %v4935_v28  ;;  %3511 = vmatpush3.bf16.msra.mxu1 %v4947_v40  ;;  %v1656_v21 = vadd.f32 1.0, %v4005_v19  ;;  %v4007_v24 = vpop.eup %4006 }
 0x28f   :  { %1791 = vmatprep.subr.bf16.mxu0 %v4941_v38  ;;  %3512 = vmatprep.subr.bf16.mxu1 %v6386_v54  ;;  %v1663_v26 = vadd.f32 1.0, %v4007_v24 }
 0x290   :  { %4008 = vrcp.f32 %v1656_v21 }
 0x291   :  { %4010 = vrcp.f32 %v1663_v26 }
 0x292   :  { %1792 = vmatpush1.bf16.msra.mxu0 %v4955_v42  ;;  %3513 = vmatpush3.bf16.msra.mxu1 %v4963_v45  ;;  %v5395_v45 = vld [vmem:[%s6290_s2 + $0x8] ss:$12 sps:$4 sm:$0xff]  }
 0x293   :  { %1880 = vmatprep.subr.bf16.mxu0 %v5256_v5  ;;  %3518 = vmatprep.subr.bf16.mxu1 %v6386_v54 }
 0x29a   :  { %v4009_v18 = vpop.eup %4008 }
 0x29b   :  { %v1666_v29 = vmul.f32 %v4009_v18, %v1647_v13  ;;  %v4011_v34 = vpop.eup %4010  ;;  %v6407_v13 = vld [vmem:[#allocation17_spill] sm:$0xff] }
 0x29c   :  { %v1669_v36 = vsub.f32 1.0, %v4011_v34  ;;  %v1671_v38 = vmul.f32 %v4011_v34, %v5265_v61  ;;  %v5424_v61 = vld [vmem:[%s6290_s2 + $0x48] ss:$12 sps:$4 sm:$0xff]  }
 0x29d   :  { %v1667_v31 = vadd.f32 %v1666_v29, %v5206_v63  ;;  %v5416_v63 = vld [vmem:[%s6290_s2 + $0x38] ss:$12 sps:$4 sm:$0xff]  }
 0x29f   :  { %4012 = vtanh.f32 %v1667_v31 }
 0x2a9   :  { %v4013_v23 = vpop.eup %4012 }
 0x2aa   :  { %v1670_v28 = vmul.f32 %v4013_v23, %v1669_v36 }
 0x2ac   :  { %v5387_v40 = vadd.f32 %v1671_v38, %v1670_v28 }
 0x2ae   :  { %v1776_v42 = vpack.c.bf16 %v5387_v40, %v5387_v40 }
 0x2b0   :  { %1810 = vmatmul.mubr.bf16.vlgmr.msra.gmra.mrb[48].mxu0 %v1776_v42  ;;  %3515 = vmatmul.mubr.bf16.vlgmr.msra.gmra.mrb[40].mxu1 %v1776_v42  ;;  %v5510_v42 = vld [vmem:[%s6291_s3] ss:$12 sps:$4 sm:$0xff]  }
 0x2b1   :  { %1881 = vmatpush1.bf16.msra.mxu0 %v5272_v1  ;;  %3519 = vmatpush3.bf16.msra.mxu1 %v5395_v45 }
 0x2b2   :  { %1882 = vmatprep.subr.bf16.mxu0 %v5279_v15  ;;  %3520 = vmatprep.subr.bf16.mxu1 %v6386_v54 }
 0x2b3   :  { %1912 = vmatprep.mubr.bf16.mxu0 %v6387_v49  ;;  %3534 = vmatprep.mubr.msk.bf16.mxu1 %vm4252_vm0, %v6386_v54 }
 0x2b5   :  { %1883 = vmatpush1.bf16.msra.mxu0 %v5289_v39  ;;  %3521 = vmatpush3.bf16.msra.mxu1 %v5407_v44 }
 0x2b6   :  { %1884 = vmatprep.subr.bf16.mxu0 %v5296_v43  ;;  %3522 = vmatprep.subr.bf16.mxu1 %v6386_v54 }
 0x2b9   :  { %1885 = vmatpush1.bf16.msra.mxu0 %v5303_v10  ;;  %3523 = vmatpush3.bf16.msra.mxu1 %v5416_v63 }
 0x2ba   :  { %1886 = vmatprep.subr.bf16.mxu0 %v5310_v47  ;;  %3524 = vmatprep.subr.bf16.mxu1 %v6386_v54 }
 0x2bd   :  { %1887 = vmatpush1.bf16.msra.mxu0 %v5424_v61  ;;  %3525 = vmatpush3.bf16.msra.mxu1 %v5430_v48 }
 0x2be   :  { %1888 = vmatprep.subr.bf16.mxu0 %v5436_v46  ;;  %3526 = vmatprep.subr.bf16.mxu1 %v6386_v54 }
 0x2c1   :  { %1889 = vmatpush1.bf16.msra.mxu0 %v5443_v7  ;;  %3527 = vmatpush3.bf16.msra.mxu1 %v5449_v17 }
 0x2c2   :  { %1890 = vmatprep.subr.bf16.mxu0 %v5455_v58  ;;  %3528 = vmatprep.subr.bf16.mxu1 %v6386_v54 }
 0x2c5   :  { %1891 = vmatpush1.bf16.msra.mxu0 %v5462_v33  ;;  %3529 = vmatpush3.bf16.msra.mxu1 %v4775_v59  ;;  %v5483_v59 = vld [vmem:[%s6290_s2 + $0xac] ss:$12 sps:$4 sm:$0xff]  }
 0x2c6   :  { %1892 = vmatprep.subr.bf16.mxu0 %v5469_v57  ;;  %3530 = vmatprep.subr.bf16.mxu1 %v6386_v54  ;;  %6402 = vst [vmem:[#allocation9_spill] sm:$0xff] %v5483_v59 }
 0x2c9   :  { %1893 = vmatpush1.bf16.msra.mxu0 %v5476_v37  ;;  %3531 = vmatpush3.bf16.msra.mxu1 %v6391_v22 }
 0x2ca   :  { %1894 = vmatprep.subr.bf16.mxu0 %v5483_v59  ;;  %3532 = vmatprep.subr.bf16.mxu1 %v6386_v54 }
 0x2cd   :  { %1895 = vmatpush1.bf16.msra.mxu0 %v5490_v2  ;;  %3533 = vmatpush3.bf16.msra.mxu1 %v6394_v27 }
 0x2ce   :  { %1983 = vmatprep.subr.bf16.mxu0 %v6395_v56  ;;  %3538 = vmatprep.subr.bf16.mxu1 %v6386_v54 }
 0x348   :  { %v1708_v22 = vpop.f32.mrb[44].mxu0  ;;  %v1749_v52 = vpop.f32.mrb[36].mxu1 }
 0x349   :  { %v1709_v6 = vadd.f32 %v1708_v22, %v6404_v12  ;;  %v1710_v60 = vpop.f32.mrb[45].mxu0  ;;  %v3496_v11 = vpop.f32.mrb[37].mxu1  ;;  %v1750_v21 = vadd.f32 %v1749_v52, %v5152_v55  ;;  %v5516_v22 = vld [vmem:[%s6291_s3 + $0x8] ss:$12 sps:$4 sm:$0xff]   ;;  %v5532_v52 = vld [vmem:[%s6291_s3 + $0x18] ss:$12 sps:$4 sm:$0xff]  }
 0x34a   :  { %v1711_v9 = vadd.f32 %v1710_v60, %v5138_v4  ;;  %v1712_v35 = vpop.f32.mrb[46].mxu0  ;;  %v1752_v32 = vpop.f32.mrb[38].mxu1  ;;  %v5544_v60 = vld [vmem:[%s6291_s3 + $0x34] ss:$12 sps:$4 sm:$0xff]  }
 0x34b   :  { %v1755_v14 = vadd.f32 %v1709_v6, %v6405_v50  ;;  %v1713_v16 = vpop.f32.mrb[47].mxu0  ;;  %v3497_v3 = vpop.f32.mrb[39].mxu1  ;;  %v5538_v6 = vld [vmem:[%s6291_s3 + $0x20] ss:$12 sps:$4 sm:$0xff]  }
 0x34c   :  { %v1762_v27 = vadd.f32 %v1711_v9, %v6406_v20  ;;  %v5558_v16 = vld [vmem:[%s6291_s3 + $0x38] ss:$12 sps:$4 sm:$0xff]  }
 0x34d   :  { %v3194_v53 = vmul.f32 -1.442695, %v1755_v14  ;;  %v5552_v14 = vld [vmem:[%s6291_s3 + $0x30] ss:$12 sps:$4 sm:$0xff]  }
 0x34e   :  { %v3195_v56 = vmul.f32 -1.442695, %v1762_v27 }
 0x34f   :  { %4014 = vpow2.f32 %v3194_v53  ;;  %v5565_v53 = vld [vmem:[%s6291_s3 + $0x4c] ss:$12 sps:$4 sm:$0xff]  }
 0x350   :  { %4016 = vpow2.f32 %v3195_v56  ;;  %v6408_v56 = vld [vmem:[#allocation31_spill] sm:$0xff] }
 0x359   :  { %v4015_v25 = vpop.eup %4014 }
 0x35a   :  { %v1759_v30 = vadd.f32 1.0, %v4015_v25  ;;  %v4017_v8 = vpop.eup %4016 }
 0x35b   :  { %v1766_v19 = vadd.f32 1.0, %v4017_v8 }
 0x35c   :  { %4018 = vrcp.f32 %v1759_v30 }
 0x35d   :  { %4020 = vrcp.f32 %v1766_v19  ;;  %v6409_v19 = vld [vmem:[#allocation51_spill] sm:$0xff] }
 0x366   :  { %v4019_v24 = vpop.eup %4018 }
 0x367   :  { %v1769_v26 = vmul.f32 %v4019_v24, %v1750_v21  ;;  %v4021_v29 = vpop.eup %4020 }
 0x368   :  { %v1772_v31 = vsub.f32 1.0, %v4021_v29  ;;  %v1774_v23 = vmul.f32 %v4021_v29, %v5341_v0  ;;  %v5522_v0 = vld [vmem:[%s6291_s3 + $0x1c] ss:$12 sps:$4 sm:$0xff]   ;;  %v5593_v29 = vld [vmem:[%s6291_s3 + $0x60] ss:$12 sps:$4 sm:$0xff]  }
 0x369   :  { %v1770_v18 = vadd.f32 %v1769_v26, %v6407_v13  ;;  %v5574_v26 = vld [vmem:[%s6291_s3 + $0x48] ss:$12 sps:$4 sm:$0xff]   ;;  %v5580_v13 = vld [vmem:[%s6291_s3 + $0x50] ss:$12 sps:$4 sm:$0xff]  }
 0x36b   :  { %4022 = vtanh.f32 %v1770_v18  ;;  %v5586_v18 = vld [vmem:[%s6291_s3 + $0x64] ss:$12 sps:$4 sm:$0xff]  }
 0x375   :  { %v4023_v34 = vpop.eup %4022 }
 0x376   :  { %v1773_v36 = vmul.f32 %v4023_v34, %v1772_v31  ;;  %v5599_v31 = vld [vmem:[%s6291_s3 + $0x68] ss:$12 sps:$4 sm:$0xff]  }
 0x378   :  { %v5503_v28 = vadd.f32 %v1774_v23, %v1773_v36  ;;  %v5605_v36 = vld [vmem:[%s6291_s3 + $0x7c] ss:$12 sps:$4 sm:$0xff]   ;;  %v5612_v23 = vld [vmem:[%s6291_s3 + $0x78] ss:$12 sps:$4 sm:$0xff]  }
 0x37a   :  { %v1879_v38 = vpack.c.bf16 %v5503_v28, %v5503_v28 }
 0x37c   :  { %1913 = vmatmul.mubr.bf16.vlgmr.msra.gmra.mrb[52].mxu0 %v1879_v38  ;;  %3535 = vmatmul.mubr.bf16.vlgmr.msra.gmra.mrb[44].mxu1 %v1879_v38  ;;  %v5618_v38 = vld [vmem:[%s6291_s3 + $0x80] ss:$12 sps:$4 sm:$0xff]  }
 0x37d   :  { %1984 = vmatpush1.bf16.msra.mxu0 %v5510_v42  ;;  %3539 = vmatpush3.bf16.msra.mxu1 %v5516_v22 }
 0x37e   :  { %1985 = vmatprep.subr.bf16.mxu0 %v5522_v0  ;;  %3540 = vmatprep.subr.bf16.mxu1 %v6386_v54 }
 0x37f   :  { %2015 = vmatprep.mubr.bf16.mxu0 %v6387_v49  ;;  %3554 = vmatprep.mubr.msk.bf16.mxu1 %vm4252_vm0, %v6386_v54 }
 0x381   :  { %1986 = vmatpush1.bf16.msra.mxu0 %v5532_v52  ;;  %3541 = vmatpush3.bf16.msra.mxu1 %v5538_v6 }
 0x382   :  { %1987 = vmatprep.subr.bf16.mxu0 %v5544_v60  ;;  %3542 = vmatprep.subr.bf16.mxu1 %v6386_v54 }
 0x383   :  { %v1811_v11 = vpop.f32.mrb[48].mxu0  ;;  %v1852_v9 = vpop.f32.mrb[40].mxu1 }
 0x384   :  { %v1812_v35 = vadd.f32 %v1811_v11, %v5217_v62  ;;  %v1813_v32 = vpop.f32.mrb[49].mxu0  ;;  %v3516_v50 = vpop.f32.mrb[41].mxu1  ;;  %v5624_v11 = vld [vmem:[%s6291_s3 + $0x94] ss:$12 sps:$4 sm:$0xff]  }
 0x385   :  { %1988 = vmatpush1.bf16.msra.mxu0 %v5552_v14  ;;  %3543 = vmatpush3.bf16.msra.mxu1 %v5558_v16  ;;  %v1814_v3 = vadd.f32 %v1813_v32, %v5222_v41  ;;  %v1815_v20 = vpop.f32.mrb[50].mxu0  ;;  %v1855_v27 = vpop.f32.mrb[42].mxu1  ;;  %v5631_v32 = vld [vmem:[%s6291_s3 + $0x90] ss:$12 sps:$4 sm:$0xff]   ;;  %v5637_v50 = vld [vmem:[%s6291_s3 + $0x98] ss:$12 sps:$4 sm:$0xff]  }
 0x386   :  { %1989 = vmatprep.subr.bf16.mxu0 %v5565_v53  ;;  %3544 = vmatprep.subr.bf16.mxu1 %v6386_v54  ;;  %v1858_v25 = vadd.f32 %v1812_v35, %v6408_v56  ;;  %v1816_v30 = vpop.f32.mrb[51].mxu0  ;;  %v3517_v8 = vpop.f32.mrb[43].mxu1  ;;  %6410 = vst [vmem:[#allocation8_spill] sm:$0xff] %v5637_v50  ;;  %v5643_v20 = vld [vmem:[%s6291_s3 + $0xac] ss:$12 sps:$4 sm:$0xff]  }
 0x387   :  { %v1865_v21 = vadd.f32 %v1814_v3, %v6409_v19  ;;  %6411 = vst [vmem:[#allocation10_spill] sm:$0xff] %v5643_v20  ;;  %v5650_v27 = vld [vmem:[%s6291_s3 + $0xa8] ss:$12 sps:$4 sm:$0xff]   ;;  %v5656_v56 = vld [vmem:[%s6291_s3 + $0xb0] ss:$12 sps:$4 sm:$0xff]   ;;  %v1853_v8 = vadd.f32 %v1852_v9, %v5261_v51 }
 0x388   :  { %v3196_v24 = vmul.f32 -1.442695, %v1858_v25  ;;  %6412 = vst [vmem:[#allocation11_spill] sm:$0xff] %v5650_v27  ;;  %6413 = vst [vmem:[#allocation13_spill] sm:$0xff] %v5656_v56  ;;  %v5713_v9 = vld [vmem:[%s6290_s2 + $0xb0] ss:$12 sps:$4 sm:$0xff]  }
 0x389   :  { %1990 = vmatpush1.bf16.msra.mxu0 %v5574_v26  ;;  %3545 = vmatpush3.bf16.msra.mxu1 %v5580_v13  ;;  %v3197_v34 = vmul.f32 -1.442695, %v1865_v21  ;;  %6416 = vst [vmem:[#allocation14_spill] sm:$0xff] %v5713_v9 }
 0x38a   :  { %1991 = vmatprep.subr.bf16.mxu0 %v5586_v18  ;;  %3546 = vmatprep.subr.bf16.mxu1 %v6386_v54  ;;  %4024 = vpow2.f32 %v3196_v24  ;;  %v6414_v24 = vld [vmem:[#allocation52_spill] sm:$0xff] }
 0x38b   :  { %4026 = vpow2.f32 %v3197_v34 }
 0x38d   :  { %1992 = vmatpush1.bf16.msra.mxu0 %v5593_v29  ;;  %3547 = vmatpush3.bf16.msra.mxu1 %v5599_v31 }
 0x38e   :  { %1993 = vmatprep.subr.bf16.mxu0 %v5605_v36  ;;  %3548 = vmatprep.subr.bf16.mxu1 %v6386_v54 }
 0x391   :  { %1994 = vmatpush1.bf16.msra.mxu0 %v5612_v23  ;;  %3549 = vmatpush3.bf16.msra.mxu1 %v5618_v38 }
 0x392   :  { %1995 = vmatprep.subr.bf16.mxu0 %v5624_v11  ;;  %3550 = vmatprep.subr.bf16.mxu1 %v6386_v54 }
 0x394   :  { %v4025_v35 = vpop.eup %4024 }
 0x395   :  { %1996 = vmatpush1.bf16.msra.mxu0 %v5631_v32  ;;  %3551 = vmatpush3.bf16.msra.mxu1 %v5637_v50  ;;  %v1862_v3 = vadd.f32 1.0, %v4025_v35  ;;  %v4027_v25 = vpop.eup %4026 }
 0x396   :  { %1997 = vmatprep.subr.bf16.mxu0 %v5643_v20  ;;  %3552 = vmatprep.subr.bf16.mxu1 %v6386_v54  ;;  %v1869_v30 = vadd.f32 1.0, %v4027_v25 }
 0x397   :  { %4028 = vrcp.f32 %v1862_v3 }
 0x398   :  { %4030 = vrcp.f32 %v1869_v30 }
 0x399   :  { %1998 = vmatpush1.bf16.msra.mxu0 %v5650_v27  ;;  %3553 = vmatpush3.bf16.msra.mxu1 %v5656_v56 }
 0x39a   :  { %2086 = vmatprep.subr.bf16.mxu0 %v5256_v5  ;;  %3558 = vmatprep.subr.bf16.mxu1 %v6386_v54 }
 0x3a1   :  { %v4029_v19 = vpop.eup %4028 }
 0x3a2   :  { %v1872_v21 = vmul.f32 %v4029_v19, %v1853_v8  ;;  %v4031_v35 = vpop.eup %4030 }
 0x3a3   :  { %v1875_v3 = vsub.f32 1.0, %v4031_v35  ;;  %v1877_v56 = vmul.f32 %v4031_v35, %v5387_v40  ;;  %v5704_v40 = vld [vmem:[%s6290_s2 + $0x98] ss:$12 sps:$4 sm:$0xff]  }
 0x3a4   :  { %v1873_v34 = vadd.f32 %v1872_v21, %v6414_v24  ;;  %6415 = vst [vmem:[#allocation15_spill] sm:$0xff] %v5704_v40 }
 0x3a6   :  { %4032 = vtanh.f32 %v1873_v34  ;;  %v6418_v34 = vld [vmem:[#allocation22_spill] sm:$0xff] }
 0x3b0   :  { %v4033_v27 = vpop.eup %4032 }
 0x3b1   :  { %v1876_v20 = vmul.f32 %v4033_v27, %v1875_v3 }
 0x3b3   :  { %v5664_v50 = vadd.f32 %v1877_v56, %v1876_v20  ;;  %v5719_v20 = vld [vmem:[%s6291_s3 + $0x4] ss:$12 sps:$4 sm:$0xff]  }
 0x3b4   :  { %6417 = vst [vmem:[#allocation35_spill] sm:$0xff] %v5719_v20 }
 0x3b5   :  { %v1982_v5 = vpack.c.bf16 %v5664_v50, %v5664_v50 }
 0x3b7   :  { %2016 = vmatmul.mubr.bf16.vlgmr.msra.gmra.mrb[56].mxu0 %v1982_v5  ;;  %3555 = vmatmul.mubr.bf16.vlgmr.msra.gmra.mrb[48].mxu1 %v1982_v5  ;;  %v5695_v5 = vld [vmem:[%s6290_s2 + $0x80] ss:$12 sps:$4 sm:$0xff]  }
 0x3b8   :  { %2087 = vmatpush1.bf16.msra.mxu0 %v5272_v1  ;;  %3559 = vmatpush3.bf16.msra.mxu1 %v5395_v45 }
 0x3b9   :  { %2088 = vmatprep.subr.bf16.mxu0 %v5279_v15  ;;  %3560 = vmatprep.subr.bf16.mxu1 %v6386_v54 }
 0x3ba   :  { %2118 = vmatprep.mubr.bf16.mxu0 %v6387_v49  ;;  %3574 = vmatprep.mubr.msk.bf16.mxu1 %vm4252_vm0, %v6386_v54 }
 0x3bc   :  { %2089 = vmatpush1.bf16.msra.mxu0 %v5289_v39  ;;  %3561 = vmatpush3.bf16.msra.mxu1 %v5407_v44 }
 0x3bd   :  { %2090 = vmatprep.subr.bf16.mxu0 %v5296_v43  ;;  %3562 = vmatprep.subr.bf16.mxu1 %v6386_v54 }
 0x3c0   :  { %2091 = vmatpush1.bf16.msra.mxu0 %v5303_v10  ;;  %3563 = vmatpush3.bf16.msra.mxu1 %v5416_v63 }
 0x3c1   :  { %2092 = vmatprep.subr.bf16.mxu0 %v5310_v47  ;;  %3564 = vmatprep.subr.bf16.mxu1 %v6386_v54 }
 0x3c4   :  { %2093 = vmatpush1.bf16.msra.mxu0 %v5424_v61  ;;  %3565 = vmatpush3.bf16.msra.mxu1 %v5430_v48 }
 0x3c5   :  { %2094 = vmatprep.subr.bf16.mxu0 %v5436_v46  ;;  %3566 = vmatprep.subr.bf16.mxu1 %v6386_v54 }
 0x3c8   :  { %2095 = vmatpush1.bf16.msra.mxu0 %v5443_v7  ;;  %3567 = vmatpush3.bf16.msra.mxu1 %v5449_v17 }
 0x3c9   :  { %2096 = vmatprep.subr.bf16.mxu0 %v5455_v58  ;;  %3568 = vmatprep.subr.bf16.mxu1 %v6386_v54 }
 0x3cc   :  { %2097 = vmatpush1.bf16.msra.mxu0 %v5462_v33  ;;  %3569 = vmatpush3.bf16.msra.mxu1 %v5695_v5 }
 0x3cd   :  { %2098 = vmatprep.subr.bf16.mxu0 %v5469_v57  ;;  %3570 = vmatprep.subr.bf16.mxu1 %v6386_v54 }
 0x3d0   :  { %2099 = vmatpush1.bf16.msra.mxu0 %v5476_v37  ;;  %3571 = vmatpush3.bf16.msra.mxu1 %v5704_v40 }
 0x3d1   :  { %2100 = vmatprep.subr.bf16.mxu0 %v5483_v59  ;;  %3572 = vmatprep.subr.bf16.mxu1 %v6386_v54 }
 0x3d4   :  { %2101 = vmatpush1.bf16.msra.mxu0 %v5490_v2  ;;  %3573 = vmatpush3.bf16.msra.mxu1 %v5713_v9  ;;  %v6419_v2 = vld [vmem:[#allocation24_spill] sm:$0xff] }
 0x3d5   :  { %2189 = vmatprep.subr.bf16.mxu0 %v5719_v20  ;;  %3578 = vmatprep.subr.bf16.mxu1 %v6386_v54 }
 0x44f   :  { %v1914_v27 = vpop.f32.mrb[52].mxu0  ;;  %v1955_v56 = vpop.f32.mrb[44].mxu1 }
 0x450   :  { %v1915_v25 = vadd.f32 %v1914_v27, %v6404_v12  ;;  %v1916_v30 = vpop.f32.mrb[53].mxu0  ;;  %v3536_v8 = vpop.f32.mrb[45].mxu1 }
 0x451   :  { %v1917_v19 = vadd.f32 %v1916_v30, %v5138_v4  ;;  %v1918_v21 = vpop.f32.mrb[54].mxu0  ;;  %v1958_v24 = vpop.f32.mrb[46].mxu1  ;;  %v1956_v8 = vadd.f32 %v1955_v56, %v5152_v55 }
 0x452   :  { %v1961_v35 = vadd.f32 %v1915_v25, %v6418_v34  ;;  %v1919_v3 = vpop.f32.mrb[55].mxu0  ;;  %v3537_v9 = vpop.f32.mrb[47].mxu1  ;;  %v6420_v24 = vld [vmem:[#allocation21_spill] sm:$0xff] }
 0x453   :  { %v1968_v59 = vadd.f32 %v1917_v19, %v6419_v2 }
 0x454   :  { %v3198_v40 = vmul.f32 -1.442695, %v1961_v35 }
 0x455   :  { %v3199_v20 = vmul.f32 -1.442695, %v1968_v59 }
 0x456   :  { %4034 = vpow2.f32 %v3198_v40 }
 0x457   :  { %4036 = vpow2.f32 %v3199_v20 }
 0x460   :  { %v4035_v37 = vpop.eup %4034 }
 0x461   :  { %v1965_v57 = vadd.f32 1.0, %v4035_v37  ;;  %v4037_v27 = vpop.eup %4036 }
 0x462   :  { %v1972_v12 = vadd.f32 1.0, %v4037_v27 }
 0x463   :  { %4038 = vrcp.f32 %v1965_v57 }
 0x464   :  { %4040 = vrcp.f32 %v1972_v12 }
 0x46d   :  { %v4039_v30 = vpop.eup %4038 }
 0x46e   :  { %v1975_v21 = vmul.f32 %v4039_v30, %v1956_v8  ;;  %v4041_v9 = vpop.eup %4040  ;;  %v6421_v8 = vld [vmem:[#allocation27_spill] sm:$0xff] }
 0x46f   :  { %v1978_v34 = vsub.f32 1.0, %v4041_v9  ;;  %v1980_v59 = vmul.f32 %v4041_v9, %v5503_v28 }
 0x470   :  { %v1976_v25 = vadd.f32 %v1975_v21, %v6420_v24 }
 0x472   :  { %4042 = vtanh.f32 %v1976_v25  ;;  %v6422_v25 = vld [vmem:[#allocation49_spill] sm:$0xff] }
 0x47c   :  { %v4043_v2 = vpop.eup %4042 }
 0x47d   :  { %v1979_v19 = vmul.f32 %v4043_v2, %v1978_v34 }
 0x47f   :  { %v5730_v40 = vadd.f32 %v1980_v59, %v1979_v19  ;;  %v6423_v59 = vld [vmem:[#allocation8_spill] sm:$0xff] }
 0x481   :  { %v2085_v57 = vpack.c.bf16 %v5730_v40, %v5730_v40 }
 0x483   :  { %2119 = vmatmul.mubr.bf16.vlgmr.msra.gmra.mrb[60].mxu0 %v2085_v57  ;;  %3575 = vmatmul.mubr.bf16.vlgmr.msra.gmra.mrb[52].mxu1 %v2085_v57 }
 0x484   :  { %2190 = vmatpush1.bf16.msra.mxu0 %v5510_v42  ;;  %3579 = vmatpush3.bf16.msra.mxu1 %v5516_v22 }
 0x485   :  { %2191 = vmatprep.subr.bf16.mxu0 %v5522_v0  ;;  %3580 = vmatprep.subr.bf16.mxu1 %v6386_v54 }
 0x486   :  { %2221 = vmatprep.mubr.bf16.mxu0 %v6387_v49  ;;  %3594 = vmatprep.mubr.msk.bf16.mxu1 %vm4252_vm0, %v6386_v54 }
 0x488   :  { %2192 = vmatpush1.bf16.msra.mxu0 %v5532_v52  ;;  %3581 = vmatpush3.bf16.msra.mxu1 %v5538_v6 }
 0x489   :  { %2193 = vmatprep.subr.bf16.mxu0 %v5544_v60  ;;  %3582 = vmatprep.subr.bf16.mxu1 %v6386_v54 }
 0x48a   :  { %v2017_v37 = vpop.f32.mrb[56].mxu0  ;;  %v2058_v12 = vpop.f32.mrb[48].mxu1 }
 0x48b   :  { %v2018_v28 = vadd.f32 %v2017_v37, %v5217_v62  ;;  %v2019_v20 = vpop.f32.mrb[57].mxu0  ;;  %v3556_v56 = vpop.f32.mrb[49].mxu1  ;;  %v6424_v37 = vld [vmem:[#allocation10_spill] sm:$0xff] }
 0x48c   :  { %2194 = vmatpush1.bf16.msra.mxu0 %v5552_v14  ;;  %3583 = vmatpush3.bf16.msra.mxu1 %v5558_v16  ;;  %v2020_v35 = vadd.f32 %v2019_v20, %v5222_v41  ;;  %v2021_v3 = vpop.f32.mrb[58].mxu0  ;;  %v2061_v27 = vpop.f32.mrb[50].mxu1  ;;  %v6426_v20 = vld [vmem:[#allocation13_spill] sm:$0xff] }
 0x48d   :  { %2195 = vmatprep.subr.bf16.mxu0 %v5565_v53  ;;  %3584 = vmatprep.subr.bf16.mxu1 %v6386_v54  ;;  %v2064_v30 = vadd.f32 %v2018_v28, %v6421_v8  ;;  %v2022_v21 = vpop.f32.mrb[59].mxu0  ;;  %v3557_v24 = vpop.f32.mrb[51].mxu1  ;;  %v6425_v28 = vld [vmem:[#allocation11_spill] sm:$0xff]  ;;  %v6427_v56 = vld [vmem:[#allocation53_spill] sm:$0xff]  ;;  %v2059_v27 = vadd.f32 %v2058_v12, %v5261_v51 }
 0x48e   :  { %v2071_v9 = vadd.f32 %v2020_v35, %v6422_v25  ;;  %v6428_v21 = vld [vmem:[#allocation50_spill] sm:$0xff] }
 0x48f   :  { %v3200_v34 = vmul.f32 -1.442695, %v2064_v30 }
 0x490   :  { %2196 = vmatpush1.bf16.msra.mxu0 %v5574_v26  ;;  %3585 = vmatpush3.bf16.msra.mxu1 %v5580_v13  ;;  %v3201_v2 = vmul.f32 -1.442695, %v2071_v9 }
 0x491   :  { %2197 = vmatprep.subr.bf16.mxu0 %v5586_v18  ;;  %3586 = vmatprep.subr.bf16.mxu1 %v6386_v54  ;;  %4044 = vpow2.f32 %v3200_v34 }
 0x492   :  { %4046 = vpow2.f32 %v3201_v2 }
 0x494   :  { %2198 = vmatpush1.bf16.msra.mxu0 %v5593_v29  ;;  %3587 = vmatpush3.bf16.msra.mxu1 %v5599_v31 }
 0x495   :  { %2199 = vmatprep.subr.bf16.mxu0 %v5605_v36  ;;  %3588 = vmatprep.subr.bf16.mxu1 %v6386_v54 }
 0x498   :  { %2200 = vmatpush1.bf16.msra.mxu0 %v5612_v23  ;;  %3589 = vmatpush3.bf16.msra.mxu1 %v5618_v38 }
 0x499   :  { %2201 = vmatprep.subr.bf16.mxu0 %v5624_v11  ;;  %3590 = vmatprep.subr.bf16.mxu1 %v6386_v54 }
 0x49b   :  { %v4045_v19 = vpop.eup %4044 }
 0x49c   :  { %2202 = vmatpush1.bf16.msra.mxu0 %v5631_v32  ;;  %3591 = vmatpush3.bf16.msra.mxu1 %v6423_v59  ;;  %v2068_v57 = vadd.f32 1.0, %v4045_v19  ;;  %v4047_v35 = vpop.eup %4046 }
 0x49d   :  { %2203 = vmatprep.subr.bf16.mxu0 %v6424_v37  ;;  %3592 = vmatprep.subr.bf16.mxu1 %v6386_v54  ;;  %v2075_v3 = vadd.f32 1.0, %v4047_v35 }
 0x49e   :  { %4048 = vrcp.f32 %v2068_v57 }
 0x49f   :  { %4050 = vrcp.f32 %v2075_v3  ;;  %v6436_v3 = vld [vmem:[#allocation40_spill] sm:$0xff] }
 0x4a0   :  { %2204 = vmatpush1.bf16.msra.mxu0 %v6425_v28  ;;  %3593 = vmatpush3.bf16.msra.mxu1 %v6426_v20 }
 0x4a1   :  { %2292 = vmatprep.subr.bf16.mxu0 %v6427_v56  ;;  %3598 = vmatprep.subr.bf16.mxu1 %v6386_v54 }
 0x4a8   :  { %v4049_v8 = vpop.eup %4048 }
 0x4a9   :  { %v2078_v30 = vmul.f32 %v4049_v8, %v2059_v27  ;;  %v4051_v25 = vpop.eup %4050 }
 0x4aa   :  { %v2081_v9 = vsub.f32 1.0, %v4051_v25  ;;  %v2083_v19 = vmul.f32 %v4051_v25, %v5664_v50  ;;  %v6435_v50 = vld [vmem:[#allocation35_spill] sm:$0xff] }
 0x4ab   :  { %v2079_v24 = vadd.f32 %v2078_v30, %v6428_v21 }
 0x4ad   :  { %4052 = vtanh.f32 %v2079_v24 }
 0x4b7   :  { %v4053_v34 = vpop.eup %4052 }
 0x4b8   :  { %v2082_v2 = vmul.f32 %v4053_v34, %v2081_v9  ;;  %v6437_v9 = vld [vmem:[#allocation26_spill] sm:$0xff] }
 0x4ba   :  { %v5776_v57 = vadd.f32 %v2083_v19, %v2082_v2 }
 0x4bc   :  { %v2188_v56 = vpack.c.bf16 %v5776_v57, %v5776_v57 }
 0x4be   :  { %2222 = vmatmul.mubr.bf16.vlgmr.msra.gmra.mrb[64].mxu0 %v2188_v56  ;;  %3595 = vmatmul.mubr.bf16.vlgmr.msra.gmra.mrb[56].mxu1 %v2188_v56  ;;  %v6438_v56 = vld [vmem:[#allocation28_spill] sm:$0xff] }
 0x4bf   :  { %2293 = vmatpush1.bf16.msra.mxu0 %v5272_v1  ;;  %3599 = vmatpush3.bf16.msra.mxu1 %v5395_v45  ;;  %v6429_v1 = vld [vmem:[#allocation5_spill] sm:$0xff] }
 0x4c0   :  { %2294 = vmatprep.subr.bf16.mxu0 %v5279_v15  ;;  %3600 = vmatprep.subr.bf16.mxu1 %v6386_v54  ;;  %v6430_v15 = vld [vmem:[#allocation6_spill] sm:$0xff] }
 0x4c1   :  { %2324 = vmatprep.mubr.bf16.mxu0 %v6387_v49  ;;  %3614 = vmatprep.mubr.msk.bf16.mxu1 %vm4252_vm0, %v6386_v54 }
 0x4c3   :  { %2295 = vmatpush1.bf16.msra.mxu0 %v5289_v39  ;;  %3601 = vmatpush3.bf16.msra.mxu1 %v5407_v44  ;;  %v6431_v39 = vld [vmem:[#allocation15_spill] sm:$0xff] }
 0x4c4   :  { %2296 = vmatprep.subr.bf16.mxu0 %v5296_v43  ;;  %3602 = vmatprep.subr.bf16.mxu1 %v6386_v54  ;;  %v6432_v43 = vld [vmem:[#allocation9_spill] sm:$0xff] }
 0x4c7   :  { %2297 = vmatpush1.bf16.msra.mxu0 %v5303_v10  ;;  %3603 = vmatpush3.bf16.msra.mxu1 %v5416_v63  ;;  %v6433_v10 = vld [vmem:[#allocation7_spill] sm:$0xff] }
 0x4c8   :  { %2298 = vmatprep.subr.bf16.mxu0 %v5310_v47  ;;  %3604 = vmatprep.subr.bf16.mxu1 %v6386_v54  ;;  %v6434_v47 = vld [vmem:[#allocation14_spill] sm:$0xff] }
 0x4cb   :  { %2299 = vmatpush1.bf16.msra.mxu0 %v5424_v61  ;;  %3605 = vmatpush3.bf16.msra.mxu1 %v5430_v48 }
 0x4cc   :  { %2300 = vmatprep.subr.bf16.mxu0 %v5436_v46  ;;  %3606 = vmatprep.subr.bf16.mxu1 %v6386_v54 }
 0x4cf   :  { %2301 = vmatpush1.bf16.msra.mxu0 %v5443_v7  ;;  %3607 = vmatpush3.bf16.msra.mxu1 %v5449_v17 }
 0x4d0   :  { %2302 = vmatprep.subr.bf16.mxu0 %v5455_v58  ;;  %3608 = vmatprep.subr.bf16.mxu1 %v6386_v54 }
 0x4d3   :  { %2303 = vmatpush1.bf16.msra.mxu0 %v5462_v33  ;;  %3609 = vmatpush3.bf16.msra.mxu1 %v5695_v5 }
 0x4d4   :  { %2304 = vmatprep.subr.bf16.mxu0 %v6429_v1  ;;  %3610 = vmatprep.subr.bf16.mxu1 %v6386_v54 }
 0x4d7   :  { %2305 = vmatpush1.bf16.msra.mxu0 %v6430_v15  ;;  %3611 = vmatpush3.bf16.msra.mxu1 %v6431_v39 }
 0x4d8   :  { %2306 = vmatprep.subr.bf16.mxu0 %v6432_v43  ;;  %3612 = vmatprep.subr.bf16.mxu1 %v6386_v54 }
 0x4db   :  { %2307 = vmatpush1.bf16.msra.mxu0 %v6433_v10  ;;  %3613 = vmatpush3.bf16.msra.mxu1 %v6434_v47 }
 0x4dc   :  { %2395 = vmatprep.subr.bf16.mxu0 %v6435_v50  ;;  %3618 = vmatprep.subr.bf16.mxu1 %v6386_v54 }
 0x556   :  { %v2120_v12 = vpop.f32.mrb[60].mxu0  ;;  %v2161_v35 = vpop.f32.mrb[52].mxu1 }
 0x557   :  { %v2121_v27 = vadd.f32 %v2120_v12, %v6436_v3  ;;  %v2122_v8 = vpop.f32.mrb[61].mxu0  ;;  %v3576_v30 = vpop.f32.mrb[53].mxu1 }
 0x558   :  { %v2123_v21 = vadd.f32 %v2122_v8, %v5138_v4  ;;  %v2124_v24 = vpop.f32.mrb[62].mxu0  ;;  %v2164_v25 = vpop.f32.mrb[54].mxu1  ;;  %v2162_v30 = vadd.f32 %v2161_v35, %v5152_v55 }
 0x559   :  { %v2167_v34 = vadd.f32 %v2121_v27, %v6437_v9  ;;  %v2125_v2 = vpop.f32.mrb[63].mxu0  ;;  %v3577_v19 = vpop.f32.mrb[55].mxu1  ;;  %v6439_v25 = vld [vmem:[#allocation25_spill] sm:$0xff] }
 0x55a   :  { %v2174_v47 = vadd.f32 %v2123_v21, %v6438_v56 }
 0x55b   :  { %v3202_v10 = vmul.f32 -1.442695, %v2167_v34 }
 0x55c   :  { %v3203_v50 = vmul.f32 -1.442695, %v2174_v47 }
 0x55d   :  { %4054 = vpow2.f32 %v3202_v10 }
 0x55e   :  { %4056 = vpow2.f32 %v3203_v50 }
 0x567   :  { %v4055_v43 = vpop.eup %4054 }
 0x568   :  { %v2171_v39 = vadd.f32 1.0, %v4055_v43  ;;  %v4057_v12 = vpop.eup %4056 }
 0x569   :  { %v2178_v3 = vadd.f32 1.0, %v4057_v12 }
 0x56a   :  { %4058 = vrcp.f32 %v2171_v39 }
 0x56b   :  { %4060 = vrcp.f32 %v2178_v3 }
 0x574   :  { %v4059_v8 = vpop.eup %4058 }
 0x575   :  { %v2181_v24 = vmul.f32 %v4059_v8, %v2162_v30  ;;  %v4061_v9 = vpop.eup %4060  ;;  %v6440_v30 = vld [vmem:[#allocation23_spill] sm:$0xff] }
 0x576   :  { %v2184_v2 = vsub.f32 1.0, %v4061_v9  ;;  %v2186_v10 = vmul.f32 %v4061_v9, %v5730_v40 }
 0x577   :  { %v2182_v27 = vadd.f32 %v2181_v24, %v6439_v25 }
 0x579   :  { %4062 = vtanh.f32 %v2182_v27  ;;  %v6441_v27 = vld [vmem:[#allocation47_spill] sm:$0xff] }
 0x583   :  { %v4063_v21 = vpop.eup %4062 }
 0x584   :  { %v2185_v34 = vmul.f32 %v4063_v21, %v2184_v2 }
 0x586   :  { %v5822_v47 = vadd.f32 %v2186_v10, %v2185_v34 }
 0x588   :  { %v2291_v39 = vpack.c.bf16 %v5822_v47, %v5822_v47 }
 0x58a   :  { %2325 = vmatmul.mubr.bf16.vlgmr.msra.gmra.mrb[68].mxu0 %v2291_v39  ;;  %3615 = vmatmul.mubr.bf16.vlgmr.msra.gmra.mrb[60].mxu1 %v2291_v39  ;;  %v5866_v39 = vld [vmem:[%s6290_s2 + $0x4] ss:$12 sps:$4 sm:$0xff]  }
 0x58b   :  { %2396 = vmatpush1.bf16.msra.mxu0 %v5510_v42  ;;  %3619 = vmatpush3.bf16.msra.mxu1 %v5516_v22 }
 0x58c   :  { %2397 = vmatprep.subr.bf16.mxu0 %v5522_v0  ;;  %3620 = vmatprep.subr.bf16.mxu1 %v6386_v54 }
 0x58d   :  { %2427 = vmatprep.mubr.bf16.mxu0 %v6387_v49  ;;  %3634 = vmatprep.mubr.msk.bf16.mxu1 %vm4252_vm0, %v6386_v54 }
 0x58f   :  { %2398 = vmatpush1.bf16.msra.mxu0 %v5532_v52  ;;  %3621 = vmatpush3.bf16.msra.mxu1 %v5538_v6 }
 0x590   :  { %2399 = vmatprep.subr.bf16.mxu0 %v5544_v60  ;;  %3622 = vmatprep.subr.bf16.mxu1 %v6386_v54 }
 0x591   :  { %v2223_v40 = vpop.f32.mrb[64].mxu0  ;;  %v2264_v43 = vpop.f32.mrb[56].mxu1 }
 0x592   :  { %v2224_v50 = vadd.f32 %v2223_v40, %v5217_v62  ;;  %v2225_v35 = vpop.f32.mrb[65].mxu0  ;;  %v3596_v3 = vpop.f32.mrb[57].mxu1 }
 0x593   :  { %2400 = vmatpush1.bf16.msra.mxu0 %v5552_v14  ;;  %3623 = vmatpush3.bf16.msra.mxu1 %v5558_v16  ;;  %v2226_v19 = vadd.f32 %v2225_v35, %v5222_v41  ;;  %v2227_v56 = vpop.f32.mrb[66].mxu0  ;;  %v2267_v12 = vpop.f32.mrb[58].mxu1  ;;  %v2265_v35 = vadd.f32 %v2264_v43, %v5261_v51  ;;  %v5880_v43 = vld [vmem:[%s6290_s2] ss:$12 sps:$4 sm:$0xff]  }
 0x594   :  { %2401 = vmatprep.subr.bf16.mxu0 %v5565_v53  ;;  %3624 = vmatprep.subr.bf16.mxu1 %v6386_v54  ;;  %v2270_v8 = vadd.f32 %v2224_v50, %v6440_v30  ;;  %v2228_v24 = vpop.f32.mrb[67].mxu0  ;;  %v3597_v25 = vpop.f32.mrb[59].mxu1  ;;  %v6442_v56 = vld [vmem:[#allocation48_spill] sm:$0xff] }
 0x595   :  { %v2277_v9 = vadd.f32 %v2226_v19, %v6441_v27 }
 0x596   :  { %v3204_v2 = vmul.f32 -1.442695, %v2270_v8 }
 0x597   :  { %2402 = vmatpush1.bf16.msra.mxu0 %v5574_v26  ;;  %3625 = vmatpush3.bf16.msra.mxu1 %v5580_v13  ;;  %v3205_v21 = vmul.f32 -1.442695, %v2277_v9 }
 0x598   :  { %2403 = vmatprep.subr.bf16.mxu0 %v5586_v18  ;;  %3626 = vmatprep.subr.bf16.mxu1 %v6386_v54  ;;  %4064 = vpow2.f32 %v3204_v2 }
 0x599   :  { %4066 = vpow2.f32 %v3205_v21  ;;  %v5897_v21 = vld [vmem:[%s6290_s2 + $0x18] ss:$12 sps:$4 sm:$0xff]  }
 0x59b   :  { %2404 = vmatpush1.bf16.msra.mxu0 %v5593_v29  ;;  %3627 = vmatpush3.bf16.msra.mxu1 %v5599_v31 }
 0x59c   :  { %2405 = vmatprep.subr.bf16.mxu0 %v5605_v36  ;;  %3628 = vmatprep.subr.bf16.mxu1 %v6386_v54 }
 0x59f   :  { %2406 = vmatpush1.bf16.msra.mxu0 %v5612_v23  ;;  %3629 = vmatpush3.bf16.msra.mxu1 %v5618_v38 }
 0x5a0   :  { %2407 = vmatprep.subr.bf16.mxu0 %v5624_v11  ;;  %3630 = vmatprep.subr.bf16.mxu1 %v6386_v54 }
 0x5a2   :  { %v4065_v34 = vpop.eup %4064 }
 0x5a3   :  { %2408 = vmatpush1.bf16.msra.mxu0 %v5631_v32  ;;  %3631 = vmatpush3.bf16.msra.mxu1 %v6423_v59  ;;  %v2274_v10 = vadd.f32 1.0, %v4065_v34  ;;  %v4067_v40 = vpop.eup %4066  ;;  %v5911_v34 = vld [vmem:[%s6290_s2 + $0x30] ss:$12 sps:$4 sm:$0xff]  }
 0x5a4   :  { %2409 = vmatprep.subr.bf16.mxu0 %v6424_v37  ;;  %3632 = vmatprep.subr.bf16.mxu1 %v6386_v54  ;;  %v2281_v50 = vadd.f32 1.0, %v4067_v40 }
 0x5a5   :  { %4068 = vrcp.f32 %v2274_v10 }
 0x5a6   :  { %4070 = vrcp.f32 %v2281_v50 }
 0x5a7   :  { %2410 = vmatpush1.bf16.msra.mxu0 %v6425_v28  ;;  %3633 = vmatpush3.bf16.msra.mxu1 %v6426_v20 }
 0x5a8   :  { %2498 = vmatprep.subr.bf16.mxu0 %v5866_v39  ;;  %3638 = vmatprep.subr.bf16.mxu1 %v6386_v54 }
 0x5af   :  { %v4069_v3 = vpop.eup %4068 }
 0x5b0   :  { %v2284_v19 = vmul.f32 %v4069_v3, %v2265_v35  ;;  %v4071_v30 = vpop.eup %4070  ;;  %v6449_v3 = vld [vmem:[#allocation30_spill] sm:$0xff] }
 0x5b1   :  { %v2287_v8 = vsub.f32 1.0, %v4071_v30  ;;  %v2289_v27 = vmul.f32 %v4071_v30, %v5776_v57  ;;  %v5887_v57 = vld [vmem:[%s6290_s2 + $0x1c] ss:$12 sps:$4 sm:$0xff]   ;;  %v6450_v30 = vld [vmem:[#allocation32_spill] sm:$0xff] }
 0x5b2   :  { %v2285_v12 = vadd.f32 %v2284_v19, %v6442_v56 }
 0x5b4   :  { %4072 = vtanh.f32 %v2285_v12 }
 0x5be   :  { %v4073_v24 = vpop.eup %4072 }
 0x5bf   :  { %v2288_v25 = vmul.f32 %v4073_v24, %v2287_v8 }
 0x5c1   :  { %v5873_v9 = vadd.f32 %v2289_v27, %v2288_v25 }
 0x5c3   :  { %v2394_v2 = vpack.c.bf16 %v5873_v9, %v5873_v9 }
 0x5c5   :  { %2428 = vmatmul.mubr.bf16.vlgmr.msra.gmra.mrb[72].mxu0 %v2394_v2  ;;  %3635 = vmatmul.mubr.bf16.vlgmr.msra.gmra.mrb[64].mxu1 %v2394_v2 }
 0x5c6   :  { %2499 = vmatpush1.bf16.msra.mxu0 %v5880_v43  ;;  %3639 = vmatpush3.bf16.msra.mxu1 %v5395_v45  ;;  %v5904_v45 = vld [vmem:[%s6290_s2 + $0x34] ss:$12 sps:$4 sm:$0xff]  }
 0x5c7   :  { %2500 = vmatprep.subr.bf16.mxu0 %v5887_v57  ;;  %3640 = vmatprep.subr.bf16.mxu1 %v6386_v54 }
 0x5c8   :  { %2530 = vmatprep.mubr.bf16.mxu0 %v6387_v49  ;;  %3654 = vmatprep.mubr.msk.bf16.mxu1 %vm4252_vm0, %v6386_v54 }
 0x5ca   :  { %2501 = vmatpush1.bf16.msra.mxu0 %v5897_v21  ;;  %3641 = vmatpush3.bf16.msra.mxu1 %v5407_v44  ;;  %v5918_v44 = vld [vmem:[%s6290_s2 + $0x4c] ss:$12 sps:$4 sm:$0xff]  }
 0x5cb   :  { %2502 = vmatprep.subr.bf16.mxu0 %v5904_v45  ;;  %3642 = vmatprep.subr.bf16.mxu1 %v6386_v54 }
 0x5ce   :  { %2503 = vmatpush1.bf16.msra.mxu0 %v5911_v34  ;;  %3643 = vmatpush3.bf16.msra.mxu1 %v5416_v63  ;;  %v6443_v63 = vld [vmem:[#allocation15_spill] sm:$0xff] }
 0x5cf   :  { %2504 = vmatprep.subr.bf16.mxu0 %v5918_v44  ;;  %3644 = vmatprep.subr.bf16.mxu1 %v6386_v54 }
 0x5d2   :  { %2505 = vmatpush1.bf16.msra.mxu0 %v5424_v61  ;;  %3645 = vmatpush3.bf16.msra.mxu1 %v5430_v48  ;;  %v6444_v61 = vld [vmem:[#allocation9_spill] sm:$0xff]  ;;  %v6445_v48 = vld [vmem:[#allocation7_spill] sm:$0xff] }
 0x5d3   :  { %2506 = vmatprep.subr.bf16.mxu0 %v5436_v46  ;;  %3646 = vmatprep.subr.bf16.mxu1 %v6386_v54  ;;  %v6446_v46 = vld [vmem:[#allocation14_spill] sm:$0xff] }
 0x5d6   :  { %2507 = vmatpush1.bf16.msra.mxu0 %v5443_v7  ;;  %3647 = vmatpush3.bf16.msra.mxu1 %v5449_v17  ;;  %v6447_v7 = vld [vmem:[#allocation35_spill] sm:$0xff] }
 0x5d7   :  { %2508 = vmatprep.subr.bf16.mxu0 %v5455_v58  ;;  %3648 = vmatprep.subr.bf16.mxu1 %v6386_v54 }
 0x5da   :  { %2509 = vmatpush1.bf16.msra.mxu0 %v5462_v33  ;;  %3649 = vmatpush3.bf16.msra.mxu1 %v5695_v5  ;;  %v6448_v33 = vld [vmem:[#allocation40_spill] sm:$0xff] }
 0x5db   :  { %2510 = vmatprep.subr.bf16.mxu0 %v6429_v1  ;;  %3650 = vmatprep.subr.bf16.mxu1 %v6386_v54 }
 0x5de   :  { %2511 = vmatpush1.bf16.msra.mxu0 %v6430_v15  ;;  %3651 = vmatpush3.bf16.msra.mxu1 %v6443_v63 }
 0x5df   :  { %2512 = vmatprep.subr.bf16.mxu0 %v6444_v61  ;;  %3652 = vmatprep.subr.bf16.mxu1 %v6386_v54 }
 0x5e2   :  { %2513 = vmatpush1.bf16.msra.mxu0 %v6445_v48  ;;  %3653 = vmatpush3.bf16.msra.mxu1 %v6446_v46 }
 0x5e3   :  { %2601 = vmatprep.subr.bf16.mxu0 %v6447_v7  ;;  %3658 = vmatprep.subr.bf16.mxu1 %v6386_v54 }
 0x65d   :  { %v2326_v17 = vpop.f32.mrb[68].mxu0  ;;  %v2367_v58 = vpop.f32.mrb[60].mxu1 }
 0x65e   :  { %v2327_v1 = vadd.f32 %v2326_v17, %v6448_v33  ;;  %v2328_v10 = vpop.f32.mrb[69].mxu0  ;;  %v3616_v15 = vpop.f32.mrb[61].mxu1  ;;  %v2368_v17 = vadd.f32 %v2367_v58, %v5152_v55 }
 0x65f   :  { %v2329_v40 = vadd.f32 %v2328_v10, %v5138_v4  ;;  %v2330_v50 = vpop.f32.mrb[70].mxu0  ;;  %v2370_v35 = vpop.f32.mrb[62].mxu1 }
 0x660   :  { %v2373_v19 = vadd.f32 %v2327_v1, %v6449_v3  ;;  %v2331_v56 = vpop.f32.mrb[71].mxu0  ;;  %v3617_v12 = vpop.f32.mrb[63].mxu1  ;;  %v6451_v50 = vld [vmem:[#allocation29_spill] sm:$0xff] }
 0x661   :  { %v2380_v8 = vadd.f32 %v2329_v40, %v6450_v30 }
 0x662   :  { %v3206_v24 = vmul.f32 -1.442695, %v2373_v19 }
 0x663   :  { %v3207_v25 = vmul.f32 -1.442695, %v2380_v8 }
 0x664   :  { %4074 = vpow2.f32 %v3206_v24 }
 0x665   :  { %4076 = vpow2.f32 %v3207_v25 }
 0x66e   :  { %v4075_v27 = vpop.eup %4074 }
 0x66f   :  { %v2377_v2 = vadd.f32 1.0, %v4075_v27  ;;  %v4077_v61 = vpop.eup %4076 }
 0x670   :  { %v2384_v48 = vadd.f32 1.0, %v4077_v61 }
 0x671   :  { %4078 = vrcp.f32 %v2377_v2  ;;  %v6453_v2 = vld [vmem:[#allocation45_spill] sm:$0xff] }
 0x672   :  { %4080 = vrcp.f32 %v2384_v48 }
 0x67b   :  { %v4079_v10 = vpop.eup %4078 }
 0x67c   :  { %v2387_v15 = vmul.f32 %v4079_v10, %v2368_v17  ;;  %v4081_v35 = vpop.eup %4080  ;;  %v4197_v17 = vld [vmem:[%s6290_s2 + $0x7c] ss:$12 sps:$4 sm:$0xff]   ;;  %v4198_v10 = vld [vmem:[%s6290_s2 + $0x78] ss:$12 sps:$4 sm:$0xff]  }
 0x67d   :  { %v2390_v3 = vsub.f32 1.0, %v4081_v35  ;;  %v2392_v56 = vmul.f32 %v4081_v35, %v5822_v47 }
 0x67e   :  { %v2388_v1 = vadd.f32 %v2387_v15, %v6451_v50  ;;  %v4199_v15 = vld [vmem:[%s6290_s2 + $0x94] ss:$12 sps:$4 sm:$0xff]   ;;  %v4200_v50 = vld [vmem:[%s6290_s2 + $0x90] ss:$12 sps:$4 sm:$0xff]  }
 0x680   :  { %4082 = vtanh.f32 %v2388_v1  ;;  %v4201_v1 = vld [vmem:[%s6290_s2 + $0xac] ss:$12 sps:$4 sm:$0xff]  }
 0x68a   :  { %v4083_v40 = vpop.eup %4082 }
 0x68b   :  { %v2391_v19 = vmul.f32 %v4083_v40, %v2390_v3 }
 0x68d   :  { %v5949_v12 = vadd.f32 %v2392_v56, %v2391_v19 }
 0x68f   :  { %v2497_v30 = vpack.c.bf16 %v5949_v12, %v5949_v12 }
 0x691   :  { %2531 = vmatmul.mubr.bf16.vlgmr.msra.gmra.mrb[76].mxu0 %v2497_v30  ;;  %3655 = vmatmul.mubr.bf16.vlgmr.msra.gmra.mrb[68].mxu1 %v2497_v30 }
 0x692   :  { %2602 = vmatpush1.bf16.msra.mxu0 %v5510_v42  ;;  %3659 = vmatpush3.bf16.msra.mxu1 %v5516_v22 }
 0x693   :  { %2603 = vmatprep.subr.bf16.mxu0 %v5522_v0  ;;  %3660 = vmatprep.subr.bf16.mxu1 %v6386_v54 }
 0x694   :  { %2633 = vmatprep.mubr.bf16.mxu0 %v6387_v49  ;;  %3674 = vmatprep.mubr.msk.bf16.mxu1 %vm4252_vm0, %v6386_v54 }
 0x696   :  { %2604 = vmatpush1.bf16.msra.mxu0 %v5532_v52  ;;  %3661 = vmatpush3.bf16.msra.mxu1 %v5538_v6  ;;  %v6452_v6 = vld [vmem:[#allocation19_spill] sm:$0xff] }
 0x697   :  { %2605 = vmatprep.subr.bf16.mxu0 %v5544_v60  ;;  %3662 = vmatprep.subr.bf16.mxu1 %v6386_v54 }
 0x698   :  { %v2429_v42 = vpop.f32.mrb[72].mxu0  ;;  %v2470_v47 = vpop.f32.mrb[64].mxu1 }
 0x699   :  { %v2430_v22 = vadd.f32 %v2429_v42, %v5217_v62  ;;  %v2431_v0 = vpop.f32.mrb[73].mxu0  ;;  %v3636_v58 = vpop.f32.mrb[65].mxu1 }
 0x69a   :  { %2606 = vmatpush1.bf16.msra.mxu0 %v5552_v14  ;;  %3663 = vmatpush3.bf16.msra.mxu1 %v5558_v16  ;;  %v2432_v8 = vadd.f32 %v2431_v0, %v5222_v41  ;;  %v2433_v24 = vpop.f32.mrb[74].mxu0  ;;  %v2473_v52 = vpop.f32.mrb[66].mxu1 }
 0x69b   :  { %2607 = vmatprep.subr.bf16.mxu0 %v5565_v53  ;;  %3664 = vmatprep.subr.bf16.mxu1 %v6386_v54  ;;  %v2476_v60 = vadd.f32 %v2430_v22, %v6452_v6  ;;  %v2434_v25 = vpop.f32.mrb[75].mxu0  ;;  %v3637_v27 = vpop.f32.mrb[67].mxu1 }
 0x69c   :  { %v2483_v61 = vadd.f32 %v2432_v8, %v6453_v2  ;;  %v6456_v8 = vld [vmem:[#allocation36_spill] sm:$0xff] }
 0x69d   :  { %v3208_v48 = vmul.f32 -1.442695, %v2476_v60 }
 0x69e   :  { %2608 = vmatpush1.bf16.msra.mxu0 %v5574_v26  ;;  %3665 = vmatpush3.bf16.msra.mxu1 %v5580_v13  ;;  %v3209_v14 = vmul.f32 -1.442695, %v2483_v61 }
 0x69f   :  { %2609 = vmatprep.subr.bf16.mxu0 %v5586_v18  ;;  %3666 = vmatprep.subr.bf16.mxu1 %v6386_v54  ;;  %4084 = vpow2.f32 %v3208_v48  ;;  %v2471_v18 = vadd.f32 %v2470_v47, %v5261_v51  ;;  %v6455_v47 = vld [vmem:[#allocation34_spill] sm:$0xff]  ;;  %v6457_v48 = vld [vmem:[#allocation33_spill] sm:$0xff] }
 0x6a0   :  { %4086 = vpow2.f32 %v3209_v14 }
 0x6a2   :  { %2610 = vmatpush1.bf16.msra.mxu0 %v5593_v29  ;;  %3667 = vmatpush3.bf16.msra.mxu1 %v5599_v31 }
 0x6a3   :  { %2611 = vmatprep.subr.bf16.mxu0 %v5605_v36  ;;  %3668 = vmatprep.subr.bf16.mxu1 %v6386_v54  ;;  %v6454_v36 = vld [vmem:[#allocation46_spill] sm:$0xff] }
 0x6a6   :  { %2612 = vmatpush1.bf16.msra.mxu0 %v5612_v23  ;;  %3669 = vmatpush3.bf16.msra.mxu1 %v5618_v38 }
 0x6a7   :  { %2613 = vmatprep.subr.bf16.mxu0 %v5624_v11  ;;  %3670 = vmatprep.subr.bf16.mxu1 %v6386_v54 }
 0x6a9   :  { %v4085_v16 = vpop.eup %4084 }
 0x6aa   :  { %2614 = vmatpush1.bf16.msra.mxu0 %v5631_v32  ;;  %3671 = vmatpush3.bf16.msra.mxu1 %v6423_v59  ;;  %v2480_v53 = vadd.f32 1.0, %v4085_v16  ;;  %v4087_v26 = vpop.eup %4086 }
 0x6ab   :  { %2615 = vmatprep.subr.bf16.mxu0 %v6424_v37  ;;  %3672 = vmatprep.subr.bf16.mxu1 %v6386_v54  ;;  %v2487_v13 = vadd.f32 1.0, %v4087_v26 }
 0x6ac   :  { %4088 = vrcp.f32 %v2480_v53 }
 0x6ad   :  { %4090 = vrcp.f32 %v2487_v13 }
 0x6ae   :  { %2616 = vmatpush1.bf16.msra.mxu0 %v6425_v28  ;;  %3673 = vmatpush3.bf16.msra.mxu1 %v6426_v20 }
 0x6af   :  { %2704 = vmatprep.subr.bf16.mxu0 %v5866_v39  ;;  %3678 = vmatprep.subr.bf16.mxu1 %v6386_v54  ;;  %v4189_v39 = vld [vmem:[%s6290_s2 + $0x8] ss:$12 sps:$4 sm:$0xff]  }
 0x6b6   :  { %v4089_v29 = vpop.eup %4088 }
 0x6b7   :  { %v2490_v31 = vmul.f32 %v4089_v29, %v2471_v18  ;;  %v4091_v38 = vpop.eup %4090 }
 0x6b8   :  { %v2493_v11 = vsub.f32 1.0, %v4091_v38  ;;  %v2495_v37 = vmul.f32 %v4091_v38, %v5873_v9  ;;  %v4190_v9 = vld [vmem:[%s6290_s2 + $0x20] ss:$12 sps:$4 sm:$0xff]   ;;  %v4206_v38 = vld [vmem:[%s6291_s3 + $0x18] ss:$12 sps:$4 sm:$0xff]  }
 0x6b9   :  { %v2491_v23 = vadd.f32 %v2490_v31, %v6454_v36  ;;  %v4203_v36 = vld [vmem:[%s6291_s3] ss:$12 sps:$4 sm:$0xff]  }
 0x6bb   :  { %4092 = vtanh.f32 %v2491_v23  ;;  %v4204_v23 = vld [vmem:[%s6291_s3 + $0x8] ss:$12 sps:$4 sm:$0xff]  }
 0x6c5   :  { %v4093_v32 = vpop.eup %4092 }
 0x6c6   :  { %v2494_v59 = vmul.f32 %v4093_v32, %v2493_v11  ;;  %v4207_v11 = vld [vmem:[%s6291_s3 + $0x20] ss:$12 sps:$4 sm:$0xff]  }
 0x6c7   :  { %v4208_v32 = vld [vmem:[%s6291_s3 + $0x34] ss:$12 sps:$4 sm:$0xff]  }
 0x6c8   :  { %v5995_v28 = vadd.f32 %v2495_v37, %v2494_v59 }
 0x6ca   :  { %v2600_v20 = vpack.c.bf16 %v5995_v28, %v5995_v28 }
 0x6cc   :  { %2634 = vmatmul.mubr.bf16.vlgmr.msra.gmra.mrb[80].mxu0 %v2600_v20  ;;  %3675 = vmatmul.mubr.bf16.vlgmr.msra.gmra.mrb[72].mxu1 %v2600_v20 }
 0x6cd   :  { %2705 = vmatpush1.bf16.msra.mxu0 %v5880_v43  ;;  %3679 = vmatpush3.bf16.msra.mxu1 %v4189_v39  ;;  %v4191_v43 = vld [vmem:[%s6290_s2 + $0x38] ss:$12 sps:$4 sm:$0xff]  }
 0x6ce   :  { %2706 = vmatprep.subr.bf16.mxu0 %v5887_v57  ;;  %3680 = vmatprep.subr.bf16.mxu1 %v6386_v54  ;;  %v4192_v57 = vld [vmem:[%s6290_s2 + $0x48] ss:$12 sps:$4 sm:$0xff]  }
 0x6cf   :  { %2736 = vmatprep.mubr.bf16.mxu0 %v6387_v49  ;;  %3694 = vmatprep.mubr.msk.bf16.mxu1 %vm4252_vm0, %v6386_v54 }
 0x6d1   :  { %2707 = vmatpush1.bf16.msra.mxu0 %v5897_v21  ;;  %3681 = vmatpush3.bf16.msra.mxu1 %v4190_v9  ;;  %v4193_v21 = vld [vmem:[%s6290_s2 + $0x50] ss:$12 sps:$4 sm:$0xff]  }
 0x6d2   :  { %2708 = vmatprep.subr.bf16.mxu0 %v5904_v45  ;;  %3682 = vmatprep.subr.bf16.mxu1 %v6386_v54  ;;  %v4194_v45 = vld [vmem:[%s6290_s2 + $0x64] ss:$12 sps:$4 sm:$0xff]  }
 0x6d3   :  { %v4209_v9 = vld [vmem:[%s6291_s3 + $0x30] ss:$12 sps:$4 sm:$0xff]  }
 0x6d5   :  { %2709 = vmatpush1.bf16.msra.mxu0 %v5911_v34  ;;  %3683 = vmatpush3.bf16.msra.mxu1 %v4191_v43  ;;  %v4195_v34 = vld [vmem:[%s6290_s2 + $0x60] ss:$12 sps:$4 sm:$0xff]   ;;  %v4210_v43 = vld [vmem:[%s6291_s3 + $0x38] ss:$12 sps:$4 sm:$0xff]  }
 0x6d6   :  { %2710 = vmatprep.subr.bf16.mxu0 %v5918_v44  ;;  %3684 = vmatprep.subr.bf16.mxu1 %v6386_v54  ;;  %v4196_v44 = vld [vmem:[%s6290_s2 + $0x68] ss:$12 sps:$4 sm:$0xff]  }
 0x6d9   :  { %2711 = vmatpush1.bf16.msra.mxu0 %v4192_v57  ;;  %3685 = vmatpush3.bf16.msra.mxu1 %v4193_v21 }
 0x6da   :  { %2712 = vmatprep.subr.bf16.mxu0 %v4194_v45  ;;  %3686 = vmatprep.subr.bf16.mxu1 %v6386_v54 }
 0x6dd   :  { %2713 = vmatpush1.bf16.msra.mxu0 %v4195_v34  ;;  %3687 = vmatpush3.bf16.msra.mxu1 %v4196_v44  ;;  %v4211_v34 = vld [vmem:[%s6291_s3 + $0x4c] ss:$12 sps:$4 sm:$0xff]   ;;  %v6458_v44 = vld [vmem:[#allocation16_spill] sm:$0xff] }
 0x6de   :  { %2714 = vmatprep.subr.bf16.mxu0 %v4197_v17  ;;  %3688 = vmatprep.subr.bf16.mxu1 %v6386_v54 }
 0x6e1   :  { %2715 = vmatpush1.bf16.msra.mxu0 %v4198_v10  ;;  %3689 = vmatpush3.bf16.msra.mxu1 %v5695_v5  ;;  %v4202_v5 = vld [vmem:[%s6290_s2 + $0xa8] ss:$12 sps:$4 sm:$0xff]   ;;  %s4253_s2 = smov [#allocation2]  }
 0x6e2   :  { %2716 = vmatprep.subr.bf16.mxu0 %v4199_v15  ;;  %3690 = vmatprep.subr.bf16.mxu1 %v6386_v54  ;;  %s3026_s0 = sshll.u32 %s4253_s2, 4  ;;  %s3027_s0 = int_to_ptr.vmem [resolvable:$true] %s3026_s0 }
 0x6e3   :  { %s4226_s22 = scalar_lea.vmem %s3027_s0, 128  ;;  %p4231_p1 = scmp.lt.s32.totalorder %s3027_s0, %s3027_s0 }
 0x6e4   :  { %p4227_p0 = scmp.ne.s32.totalorder %s3027_s0, %s4226_s22  ;;  %p4232_p2 = scmp.lt.s32.totalorder %s4226_s22, %s4226_s22 }
 0x6e5   :  { %2717 = vmatpush1.bf16.msra.mxu0 %v4200_v50  ;;  %3691 = vmatpush3.bf16.msra.mxu1 %v6443_v63  ;;  %v6459_v50 = vld [vmem:[#allocation43_spill] sm:$0xff] }
 0x6e6   :  { %2718 = vmatprep.subr.bf16.mxu0 %v4201_v1  ;;  %3692 = vmatprep.subr.bf16.mxu1 %v6386_v54  ;;  %p4233_p3 = por %p4232_p2, %p4231_p1 }
 0x6e8   :  { %p4234_p4 = pnand %p4233_p3, %p4227_p0 }
 0x6e9   :  { %2719 = vmatpush1.bf16.msra.mxu0 %v4202_v5  ;;  %3693 = vmatpush3.bf16.msra.mxu1 %v6446_v46 }
 0x6ea   :  { %2807 = vmatprep.subr.bf16.mxu0 %v6447_v7  ;;  %3698 = vmatprep.subr.bf16.mxu1 %v6386_v54 }
 0x764   :  { %v2532_v35 = vpop.f32.mrb[76].mxu0  ;;  %v2573_v63 = vpop.f32.mrb[68].mxu1 }
 0x765   :  { %v2533_v3 = vadd.f32 %v2532_v35, %v6448_v33  ;;  %v2534_v40 = vpop.f32.mrb[77].mxu0  ;;  %v3656_v19 = vpop.f32.mrb[69].mxu1  ;;  %v2574_v27 = vadd.f32 %v2573_v63, %v5152_v55  ;;  %v4212_v35 = vld [vmem:[%s6291_s3 + $0x48] ss:$12 sps:$4 sm:$0xff]   ;;  %v4213_v63 = vld [vmem:[%s6291_s3 + $0x50] ss:$12 sps:$4 sm:$0xff]  }
 0x766   :  { %v2535_v56 = vadd.f32 %v2534_v40, %v5138_v4  ;;  %v2536_v30 = vpop.f32.mrb[78].mxu0  ;;  %v2576_v42 = vpop.f32.mrb[70].mxu1  ;;  %v4215_v40 = vld [vmem:[%s6291_s3 + $0x60] ss:$12 sps:$4 sm:$0xff]   ;;  %v4216_v19 = vld [vmem:[%s6291_s3 + $0x68] ss:$12 sps:$4 sm:$0xff]  }
 0x767   :  { %v2579_v22 = vadd.f32 %v2533_v3, %v6455_v47  ;;  %v2537_v0 = vpop.f32.mrb[79].mxu0  ;;  %v3657_v58 = vpop.f32.mrb[71].mxu1  ;;  %v4214_v3 = vld [vmem:[%s6291_s3 + $0x64] ss:$12 sps:$4 sm:$0xff]   ;;  %v4217_v30 = vld [vmem:[%s6291_s3 + $0x7c] ss:$12 sps:$4 sm:$0xff]  }
 0x768   :  { %v2586_v46 = vadd.f32 %v2535_v56, %v6456_v8  ;;  %v4218_v42 = vld [vmem:[%s6291_s3 + $0x78] ss:$12 sps:$4 sm:$0xff]   ;;  %v4219_v47 = vld [vmem:[%s6291_s3 + $0x80] ss:$12 sps:$4 sm:$0xff]   ;;  %v4221_v58 = vld [vmem:[%s6291_s3 + $0x90] ss:$12 sps:$4 sm:$0xff]  }
 0x769   :  { %v3210_v24 = vmul.f32 -1.442695, %v2579_v22  ;;  %v4220_v22 = vld [vmem:[%s6291_s3 + $0x94] ss:$12 sps:$4 sm:$0xff]   ;;  %v4222_v8 = vld [vmem:[%s6291_s3 + $0x98] ss:$12 sps:$4 sm:$0xff]  }
 0x76a   :  { %v3211_v7 = vmul.f32 -1.442695, %v2586_v46 }
 0x76b   :  { %4094 = vpow2.f32 %v3210_v24  ;;  %v4223_v24 = vld [vmem:[%s6291_s3 + $0xac] ss:$12 sps:$4 sm:$0xff]  }
 0x76c   :  { %4096 = vpow2.f32 %v3211_v7  ;;  %v4224_v7 = vld [vmem:[%s6291_s3 + $0xa8] ss:$12 sps:$4 sm:$0xff]  }
 0x775   :  { %v4095_v52 = vpop.eup %4094 }
 0x776   :  { %v2583_v6 = vadd.f32 1.0, %v4095_v52  ;;  %v4097_v60 = vpop.eup %4096  ;;  %v4225_v52 = vld [vmem:[%s6291_s3 + $0xb0] ss:$12 sps:$4 sm:$0xff]  }
 0x777   :  { %v2590_v25 = vadd.f32 1.0, %v4097_v60 }
 0x778   :  { %4098 = vrcp.f32 %v2583_v6 }
 0x779   :  { %4100 = vrcp.f32 %v2590_v25 }
 0x782   :  { %v4099_v2 = vpop.eup %4098 }
 0x783   :  { %v2593_v61 = vmul.f32 %v4099_v2, %v2574_v27  ;;  %v4101_v16 = vpop.eup %4100 }
 0x784   :  { %v2596_v53 = vsub.f32 1.0, %v4101_v16  ;;  %v2598_v18 = vmul.f32 %v4101_v16, %v5949_v12  ;;  %v4205_v12 = vld [vmem:[%s6291_s3 + $0x1c] ss:$12 sps:$4 sm:$0xff]  }
 0x785   :  { %v2594_v14 = vadd.f32 %v2593_v61, %v6457_v48  ;;  %v6460_v61 = vld [vmem:[#allocation44_spill] sm:$0xff] }
 0x787   :  { %4102 = vtanh.f32 %v2594_v14 }
 0x791   :  { %v4103_v26 = vpop.eup %4102 }
 0x792   :  { %v2597_v13 = vmul.f32 %v4103_v26, %v2596_v53 }
 0x794   :  { %v6069_v29 = vadd.f32 %v2598_v18, %v2597_v13 }
 0x796   :  { %v2703_v31 = vpack.c.bf16 %v6069_v29, %v6069_v29 }
 0x798   :  { %2737 = vmatmul.mubr.bf16.vlgmr.msra.gmra.mrb[84].mxu0 %v2703_v31  ;;  %3695 = vmatmul.mubr.bf16.vlgmr.msra.gmra.mrb[76].mxu1 %v2703_v31  ;;  %v2925_v31 = vld [vmem:[%s6295_s7 + $0x80] sm:$0xff] }
 0x799   :  { %2808 = vmatpush1.bf16.msra.mxu0 %v4203_v36  ;;  %3699 = vmatpush3.bf16.msra.mxu1 %v4204_v23  ;;  %v2926_v36 = vld [vmem:[%s6295_s7 + $0x88] sm:$0xff] }
 0x79a   :  { %2809 = vmatprep.subr.bf16.mxu0 %v4205_v12  ;;  %3700 = vmatprep.subr.bf16.mxu1 %v6386_v54  ;;  %v3718_v23 = vpack.c.bf16 %v2926_v36, %v2925_v31  ;;  %v2910_v12 = vld [vmem:[%s6295_s7 + $0x8] sm:$0xff]  ;;  %v6461_v31 = vld [vmem:[#allocation38_spill] sm:$0xff] }
 0x79b   :  { %2839 = vmatprep.mubr.bf16.mxu0 %v6387_v49  ;;  %3714 = vmatprep.mubr.msk.bf16.mxu1 %vm4252_vm0, %v6386_v54 }
 0x79d   :  { %2810 = vmatpush1.bf16.msra.mxu0 %v4206_v38  ;;  %3701 = vmatpush3.bf16.msra.mxu1 %v4207_v11  ;;  %v2927_v11 = vld [vmem:[%s6295_s7 + $0x90] sm:$0xff] }
 0x79e   :  { %2811 = vmatprep.subr.bf16.mxu0 %v4208_v32  ;;  %3702 = vmatprep.subr.bf16.mxu1 %v6386_v54  ;;  %v2928_v32 = vld [vmem:[%s6295_s7 + $0x98] sm:$0xff] }
 0x79f   :  { %v2635_v49 = vpop.f32.mrb[80].mxu0  ;;  %v2676_v59 = vpop.f32.mrb[72].mxu1 }
 0x7a0   :  { %v2636_v37 = vadd.f32 %v2635_v49, %v5217_v62  ;;  %v2637_v20 = vpop.f32.mrb[81].mxu0  ;;  %v3676_v39 = vpop.f32.mrb[73].mxu1  ;;  %v2677_v25 = vadd.f32 %v2676_v59, %v5261_v51  ;;  %v3722_v49 = vpack.c.bf16 %v2928_v32, %v2927_v11  ;;  %v2911_v59 = vld [vmem:[%s6295_s7 + $0x10] sm:$0xff] }
 0x7a1   :  { %2812 = vmatpush1.bf16.msra.mxu0 %v4209_v9  ;;  %3703 = vmatpush3.bf16.msra.mxu1 %v4210_v43  ;;  %v2638_v57 = vadd.f32 %v2637_v20, %v5222_v41  ;;  %v2639_v21 = vpop.f32.mrb[82].mxu0  ;;  %v2679_v45 = vpop.f32.mrb[74].mxu1  ;;  %v2929_v39 = vld [vmem:[%s6295_s7 + $0xa0] sm:$0xff]  ;;  %v2930_v9 = vld [vmem:[%s6295_s7 + $0xa8] sm:$0xff] }
 0x7a2   :  { %2813 = vmatprep.subr.bf16.mxu0 %v4211_v34  ;;  %3704 = vmatprep.subr.bf16.mxu1 %v6386_v54  ;;  %v2682_v17 = vadd.f32 %v2636_v37, %v6458_v44  ;;  %v2640_v10 = vpop.f32.mrb[83].mxu0  ;;  %v3677_v15 = vpop.f32.mrb[75].mxu1  ;;  %v2912_v37 = vld [vmem:[%s6295_s7 + $0x18] sm:$0xff]  ;;  %v3726_v43 = vpack.c.bf16 %v2930_v9, %v2929_v39  ;;  %v2914_v21 = vld [vmem:[%s6295_s7 + $0x28] sm:$0xff]  ;;  %v2931_v34 = vld [vmem:[%s6295_s7 + $0xb0] sm:$0xff] }
 0x7a3   :  { %v2689_v1 = vadd.f32 %v2638_v57, %v6459_v50  ;;  %v3724_v20 = vpack.c.bf16 %v2912_v37, %v2911_v59  ;;  %v2913_v57 = vld [vmem:[%s6295_s7 + $0x20] sm:$0xff]  ;;  %v2932_v44 = vld [vmem:[%s6295_s7 + $0xb8] sm:$0xff]  ;;  %v2915_v10 = vld [vmem:[%s6295_s7 + $0x30] sm:$0xff] }
 0x7a4   :  { %v3212_v5 = vmul.f32 -1.442695, %v2682_v17  ;;  %v3728_v45 = vpack.c.bf16 %v2914_v21, %v2913_v57  ;;  %v3730_v17 = vpack.c.bf16 %v2932_v44, %v2931_v34  ;;  %v2916_v15 = vld [vmem:[%s6295_s7 + $0x38] sm:$0xff]  ;;  %v6463_v9 = vld [vmem:[#allocation37_spill] sm:$0xff] }
 0x7a5   :  { %2814 = vmatpush1.bf16.msra.mxu0 %v4212_v35  ;;  %3705 = vmatpush3.bf16.msra.mxu1 %v4213_v63  ;;  %v3213_v56 = vmul.f32 -1.442695, %v2689_v1  ;;  %v3732_v50 = vpack.c.bf16 %v2916_v15, %v2915_v10  ;;  %v2933_v1 = vld [vmem:[%s6295_s7 + $0xc0] sm:$0xff] }
 0x7a6   :  { %2815 = vmatprep.subr.bf16.mxu0 %v4214_v3  ;;  %3706 = vmatprep.subr.bf16.mxu1 %v6386_v54  ;;  %4104 = vpow2.f32 %v3212_v5  ;;  %v2934_v5 = vld [vmem:[%s6295_s7 + $0xc8] sm:$0xff]  ;;  %v2917_v63 = vld [vmem:[%s6295_s7 + $0x40] sm:$0xff] }
 0x7a7   :  { %4106 = vpow2.f32 %v3213_v56  ;;  %v3734_v35 = vpack.c.bf16 %v2934_v5, %v2933_v1  ;;  %v2918_v3 = vld [vmem:[%s6295_s7 + $0x48] sm:$0xff]  ;;  %v2936_v56 = vld [vmem:[%s6295_s7 + $0xd8] sm:$0xff] }
 0x7a9   :  { %2816 = vmatpush1.bf16.msra.mxu0 %v4215_v40  ;;  %3707 = vmatpush3.bf16.msra.mxu1 %v4216_v19  ;;  %v3736_v40 = vpack.c.bf16 %v2918_v3, %v2917_v63  ;;  %v2935_v19 = vld [vmem:[%s6295_s7 + $0xd0] sm:$0xff]  ;;  %v6464_v3 = vld [vmem:[#allocation12_spill] sm:$0xff] }
 0x7aa   :  { %2817 = vmatprep.subr.bf16.mxu0 %v4217_v30  ;;  %3708 = vmatprep.subr.bf16.mxu1 %v6386_v54  ;;  %v2919_v30 = vld [vmem:[%s6295_s7 + $0x50] sm:$0xff] }
 0x7ad   :  { %2818 = vmatpush1.bf16.msra.mxu0 %v4218_v42  ;;  %3709 = vmatpush3.bf16.msra.mxu1 %v4219_v47  ;;  %v3738_v42 = vpack.c.bf16 %v2936_v56, %v2935_v19  ;;  %v2920_v47 = vld [vmem:[%s6295_s7 + $0x58] sm:$0xff] }
 0x7ae   :  { %2819 = vmatprep.subr.bf16.mxu0 %v4220_v22  ;;  %3710 = vmatprep.subr.bf16.mxu1 %v6386_v54  ;;  %v2937_v22 = vld [vmem:[%s6295_s7 + $0xe0] sm:$0xff] }
 0x7b0   :  { %v4105_v0 = vpop.eup %4104 }
 0x7b1   :  { %2820 = vmatpush1.bf16.msra.mxu0 %v4221_v58  ;;  %3711 = vmatpush3.bf16.msra.mxu1 %v4222_v8  ;;  %v2686_v46 = vadd.f32 1.0, %v4105_v0  ;;  %v4107_v6 = vpop.eup %4106  ;;  %v2938_v0 = vld [vmem:[%s6295_s7 + $0xe8] sm:$0xff]  ;;  %v3740_v58 = vpack.c.bf16 %v2920_v47, %v2919_v30 }
 0x7b2   :  { %2821 = vmatprep.subr.bf16.mxu0 %v4223_v24  ;;  %3712 = vmatprep.subr.bf16.mxu1 %v6386_v54  ;;  %v2693_v60 = vadd.f32 1.0, %v4107_v6  ;;  %v3742_v8 = vpack.c.bf16 %v2938_v0, %v2937_v22  ;;  %v2922_v24 = vld [vmem:[%s6295_s7 + $0x68] sm:$0xff] }
 0x7b3   :  { %4108 = vrcp.f32 %v2686_v46  ;;  %v2921_v46 = vld [vmem:[%s6295_s7 + $0x60] sm:$0xff]  ;;  %v6465_v30 = vld [vmem:[#allocation41_spill] sm:$0xff] }
 0x7b4   :  { %4110 = vrcp.f32 %v2693_v60  ;;  %v3744_v6 = vpack.c.bf16 %v2922_v24, %v2921_v46  ;;  %v6466_v24 = vld [vmem:[#allocation42_spill] sm:$0xff] }
 0x7b5   :  { %2822 = vmatpush1.bf16.msra.mxu0 %v4224_v7  ;;  %3713 = vmatpush3.bf16.msra.mxu1 %v4225_v52  ;;  %v2939_v7 = vld [vmem:[%s6295_s7 + $0xf0] sm:$0xff]  ;;  %v2940_v52 = vld [vmem:[%s6295_s7 + $0xf8] sm:$0xff] }
 0x7b6   :  { %3719 = vmatprep.subr.bf16.mxu0 %v3718_v23  ;;  %v3746_v60 = vpack.c.bf16 %v2940_v52, %v2939_v7 }
 0x7bd   :  { %v4109_v27 = vpop.eup %4108 }
 0x7be   :  { %v2696_v2 = vmul.f32 %v4109_v27, %v2677_v25  ;;  %v4111_v48 = vpop.eup %4110  ;;  %v2923_v25 = vld [vmem:[%s6295_s7 + $0x70] sm:$0xff]  ;;  %v2924_v27 = vld [vmem:[%s6295_s7 + $0x78] sm:$0xff] }
 0x7bf   :  { %v2699_v14 = vsub.f32 1.0, %v4111_v48  ;;  %v2701_v26 = vmul.f32 %v4111_v48, %v5995_v28  ;;  %v2909_v28 = vld [vmem:[%s6295_s7] sm:$0xff] }
 0x7c0   :  { %v2697_v54 = vadd.f32 %v2696_v2, %v6460_v61  ;;  %v3720_v38 = vpack.c.bf16 %v2910_v12, %v2909_v28  ;;  %v3748_v2 = vpack.c.bf16 %v2924_v27, %v2923_v25  ;;  %v6462_v12 = vld [vmem:[#allocation39_spill] sm:$0xff] }
 0x7c2   :  { %4112 = vtanh.f32 %v2697_v54 }
 0x7cc   :  { %v4113_v16 = vpop.eup %4112 }
 0x7cd   :  { %v2700_v53 = vmul.f32 %v4113_v16, %v2699_v14 }
 0x7cf   :  { %v6159_v13 = vadd.f32 %v2701_v26, %v2700_v53 }
 0x7d1   :  { %v2806_v18 = vpack.c.bf16 %v6159_v13, %v6159_v13 }
 0x7d3   :  { %2840 = vmatmul.mubr.bf16.vlgmr.msra.gmra.mrb[88].mxu0 %v2806_v18  ;;  %3715 = vmatmul.mubr.bf16.vlgmr.msra.gmra.mrb[80].mxu1 %v2806_v18 }
 0x7d4   :  { %3721 = vmatpush3.bf16.msra.mxu0 %v3720_v38 }
 0x7d5   :  { %3723 = vmatprep.subr.bf16.mxu0 %v3722_v49 }
 0x7d8   :  { %3725 = vmatpush3.bf16.msra.mxu0 %v3724_v20 }
 0x7d9   :  { %3727 = vmatprep.subr.bf16.mxu0 %v3726_v43 }
 0x7dc   :  { %3729 = vmatpush3.bf16.msra.mxu0 %v3728_v45 }
 0x7dd   :  { %3731 = vmatprep.subr.bf16.mxu0 %v3730_v17 }
 0x7e0   :  { %3733 = vmatpush3.bf16.msra.mxu0 %v3732_v50 }
 0x7e1   :  { %3735 = vmatprep.subr.bf16.mxu0 %v3734_v35 }
 0x7e4   :  { %3737 = vmatpush3.bf16.msra.mxu0 %v3736_v40 }
 0x7e5   :  { %3739 = vmatprep.subr.bf16.mxu0 %v3738_v42 }
 0x7e8   :  { %3741 = vmatpush3.bf16.msra.mxu0 %v3740_v58 }
 0x7e9   :  { %3743 = vmatprep.subr.bf16.mxu0 %v3742_v8 }
 0x7ec   :  { %3745 = vmatpush3.bf16.msra.mxu0 %v3744_v6 }
 0x7ed   :  { %3747 = vmatprep.subr.bf16.mxu0 %v3746_v60 }
 0x7f0   :  { %3749 = vmatpush3.bf16.msra.mxu0 %v3748_v2 }
 0x86b   :  { %v2738_v61 = vpop.f32.mrb[84].mxu0  ;;  %v2779_v54 = vpop.f32.mrb[76].mxu1 }
 0x86c   :  { %v2739_v48 = vadd.f32 %v2738_v61, %v6448_v33  ;;  %v2740_v14 = vpop.f32.mrb[85].mxu0  ;;  %v3696_v16 = vpop.f32.mrb[77].mxu1  ;;  %v2780_v20 = vadd.f32 %v2779_v54, %v5152_v55 }
 0x86d   :  { %v2741_v53 = vadd.f32 %v2740_v14, %v5138_v4  ;;  %v2742_v26 = vpop.f32.mrb[86].mxu0  ;;  %v2782_v18 = vpop.f32.mrb[78].mxu1 }
 0x86e   :  { %v2785_v36 = vadd.f32 %v2739_v48, %v6461_v31  ;;  %v2743_v23 = vpop.f32.mrb[87].mxu0  ;;  %v3697_v28 = vpop.f32.mrb[79].mxu1 }
 0x86f   :  { %v2792_v38 = vadd.f32 %v2741_v53, %v6462_v12 }
 0x870   :  { %v3214_v11 = vmul.f32 -1.442695, %v2785_v36 }
 0x871   :  { %v3215_v32 = vmul.f32 -1.442695, %v2792_v38 }
 0x872   :  { %4114 = vpow2.f32 %v3214_v11 }
 0x873   :  { %4116 = vpow2.f32 %v3215_v32 }
 0x87c   :  { %v4115_v49 = vpop.eup %4114 }
 0x87d   :  { %v2789_v59 = vadd.f32 1.0, %v4115_v49  ;;  %v4117_v33 = vpop.eup %4116 }
 0x87e   :  { %v2796_v37 = vadd.f32 1.0, %v4117_v33 }
 0x87f   :  { %4118 = vrcp.f32 %v2789_v59 }
 0x880   :  { %4120 = vrcp.f32 %v2796_v37 }
 0x889   :  { %v4119_v4 = vpop.eup %4118 }
 0x88a   :  { %v2799_v39 = vmul.f32 %v4119_v4, %v2780_v20  ;;  %v4121_v57 = vpop.eup %4120 }
 0x88b   :  { %v2802_v21 = vsub.f32 1.0, %v4121_v57  ;;  %v2804_v44 = vmul.f32 %v4121_v57, %v6069_v29 }
 0x88c   :  { %v2800_v43 = vadd.f32 %v2799_v39, %v6463_v9 }
 0x88e   :  { %4122 = vtanh.f32 %v2800_v43 }
 0x898   :  { %v4123_v45 = vpop.eup %4122 }
 0x899   :  { %v2803_v34 = vmul.f32 %v4123_v45, %v2802_v21 }
 0x89b   :  { %v2805_v17 = vadd.f32 %v2804_v44, %v2803_v34 }
 0x8a6   :  { %v2841_v10 = vpop.f32.mrb[88].mxu0  ;;  %v2882_v15 = vpop.f32.mrb[80].mxu1 }
 0x8a7   :  { %v2842_v50 = vadd.f32 %v2841_v10, %v5217_v62  ;;  %v2843_v1 = vpop.f32.mrb[89].mxu0  ;;  %v3716_v5 = vpop.f32.mrb[81].mxu1  ;;  %v2883_v8 = vadd.f32 %v2882_v15, %v5261_v51  ;;  %v3218_v51 = vld [vmem:[%s6296_s8] ss:$0 sm:$0xff] }
 0x8a8   :  { %v2844_v55 = vadd.f32 %v2843_v1, %v5222_v41  ;;  %v2845_v35 = vpop.f32.mrb[90].mxu0  ;;  %v2885_v63 = vpop.f32.mrb[82].mxu1 }
 0x8a9   :  { %v2888_v40 = vadd.f32 %v2842_v50, %v6464_v3  ;;  %v2846_v19 = vpop.f32.mrb[91].mxu0  ;;  %v3717_v56 = vpop.f32.mrb[83].mxu1 }
 0x8aa   :  { %v2895_v42 = vadd.f32 %v2844_v55, %v6465_v30 }
 0x8ab   :  { %v3216_v47 = vmul.f32 -1.442695, %v2888_v40 }
 0x8ac   :  { %v3217_v29 = vmul.f32 -1.442695, %v2895_v42 }
 0x8ad   :  { %4124 = vpow2.f32 %v3216_v47 }
 0x8ae   :  { %4126 = vpow2.f32 %v3217_v29 }
 0x8b7   :  { %v4125_v22 = vpop.eup %4124 }
 0x8b8   :  { %v2892_v0 = vadd.f32 1.0, %v4125_v22  ;;  %v4127_v62 = vpop.eup %4126 }
 0x8b9   :  { %v2899_v58 = vadd.f32 1.0, %v4127_v62 }
 0x8ba   :  { %4128 = vrcp.f32 %v2892_v0 }
 0x8bb   :  { %4130 = vrcp.f32 %v2899_v58 }
 0x8c4   :  { %v4129_v41 = vpop.eup %4128 }
 0x8c5   :  { %v2902_v46 = vmul.f32 %v4129_v41, %v2883_v8  ;;  %v4131_v52 = vpop.eup %4130 }
 0x8c6   :  { %v2905_v6 = vsub.f32 1.0, %v4131_v52  ;;  %v2907_v27 = vmul.f32 %v4131_v52, %v6159_v13 }
 0x8c7   :  { %v2903_v7 = vadd.f32 %v2902_v46, %v6466_v24 }
 0x8c9   :  { %4132 = vtanh.f32 %v2903_v7 }
 0x8d3   :  { %v4133_v60 = vpop.eup %4132 }
 0x8d4   :  { %v2906_v25 = vmul.f32 %v4133_v60, %v2905_v6 }
 0x8d6   :  { %v2908_v2 = vadd.f32 %v2907_v27, %v2906_v25 }
 0x8d8   :  { %3012 = vmatprep.mubr.f32.mxu0 %v2908_v2 }
 0x8d9   :  { %3013 = vmatmul.mubr.f32.vlgmr.msra.gmra.mrb[92].mxu0 %v2805_v17 }
 0x9ac   :  { %v3395_v61 = vpop.f32.mrb[92].mxu0 }
 0x9ad   :  { %v3396_v54 = vpop.f32.mrb[93].mxu0 }
 0x9ae   :  { %v3397_v48 = vadd.f32 %v3396_v54, %v3395_v61 }
 0x9b0   :  { %v3015_v14 = vadd.f32 %v3397_v48, %v3218_v51 }
 0x9b2   :  { %3019 = vst.msk [vmem:[#allocation2] sm:$0xff] %vm3018_vm1, %v3015_v14 }
 0x9b3   :  { %4237 = shalt.err (!%p4234_p4)
}
 0x9b4   :  { %s4238_s25 = scalar_lea.hbm %s6297_s9, 128 }
 0x9b5   :  { %p4239_p5 = scmp.ne.s32.totalorder %s6297_s9, %s4238_s25  ;;  %p4242_p6 = scmp.lt.u32.totalorder %s4238_s25, %s6297_s9 }
 0x9b7   :  { %p4244_p7 = pnand %p4242_p6, %p4239_p5 }
 0x9b9   :  { %4247 = shalt.err (!%p4244_p7)
}
 0x9ba   :  { %3029 = dma.vmem_to_hbm [thread:$0]  %s3027_s0, 128, %s6297_s9, [#allocation3]  }
 0x9bb   :  { %4248 = dma.done.wait [#allocation3], 128  }
 0x9bc   :  { %4249 = vsyncadd [#allocation3], 4294967168 }
 0x9bd   :  { %3033 = vsyncpa [#allocation3], 1 }

</bundles_post_ra>
